<compile_context>
chip_gen: v5e
topology: v5e:2x2
jax: 0.10.0
libtpu: 0.0.40
codegen_flags: <defaults>
</compile_context>

<pallas_src>
import functools

import jax
import jax.numpy as jnp
from jax import lax
from jax.experimental import pallas as pl
from jax.experimental.pallas import tpu as pltpu


def _silu(x):
    return x * jax.nn.sigmoid(x)


def bottleneck_kernel(x_ref, bd1_ref, b1_ref, bw2_ref, b2_ref, o_ref, *,
                      rows_per_image, use_add):
    # x_ref   : (M, W*Cin)        f32   M = N*H rows, lane-dense
    # bd1_ref : (W*Cin, W*Ch)     bf16  block-diag 1x1 weight, BN1 scale folded
    # b1_ref  : (1, W*Ch)         f32   folded BN1 bias (tiled over W)
    # bw2_ref : (3*W*Ch, W*Cout)  bf16  banded 3x3 weight (K-concat of the 3 dy
    #                                   taps), BN2 scale folded
    # b2_ref  : (1, W*Cout)       f32   folded BN2 bias (tiled over W)
    # o_ref   : (M, W*Cout)       f32
    x = x_ref[...]                                          # (M, W*Cin) f32

    # ---- conv1: 1x1 conv (+BN scale in weight) + bias + SiLU, one matmul ----
    h = jnp.dot(x.astype(jnp.bfloat16), bd1_ref[...],
                preferred_element_type=jnp.float32)         # (M, W*Ch) f32
    h = _silu(h + b1_ref[...])

    # ---- conv2: 3x3 conv, stride 1, pad 1, as ONE K-concatenated matmul ----
    # dx taps + width zero-padding live inside the banded weight; only the
    # dy = -1 / +1 row shifts are done here, on the bf16 copy (single cast).
    h_bf = h.astype(jnp.bfloat16)
    M = x_ref.shape[0]
    zrow = jnp.zeros((1, h_bf.shape[1]), h_bf.dtype)
    h_m1 = jnp.concatenate([zrow, h_bf[:-1, :]], axis=0)    # h[i-1]
    h_p1 = jnp.concatenate([h_bf[1:, :], zrow], axis=0)     # h[i+1]
    if rows_per_image != M:
        # Batch folded into M: zero the rows that would otherwise leak data
        # across image (batch-element) seams.
        row = lax.broadcasted_iota(jnp.int32, (M, 1), 0) % rows_per_image
        h_m1 = jnp.where(row != 0, h_m1, jnp.zeros_like(h_m1))
        h_p1 = jnp.where(row != rows_per_image - 1, h_p1, jnp.zeros_like(h_p1))

    hcat = jnp.concatenate([h_m1, h_bf, h_p1], axis=1)      # (M, 3*W*Ch) bf16
    acc = jnp.dot(hcat, bw2_ref[...],
                  preferred_element_type=jnp.float32)       # (M, W*Cout) f32

    y = _silu(acc + b2_ref[...])
    if use_add:                                             # shortcut (Cin==Cout)
        y = y + x
    o_ref[...] = y.astype(o_ref.dtype)


def prepare_bottleneck_params(w1, s1, b1, w2, s2, b2, W):
    """Build the fused (BN-scale-folded) bf16 weights once, outside the hot path.

    w1: (Cin, Ch) 1x1 conv weight;  w2: (3, 3, Ch, Cout) HWIO 3x3 conv weight;
    s*/b*: folded BatchNorm scale/bias per output channel.
    """
    Cin, Ch = w1.shape
    Cout = w2.shape[-1]

    # conv1 as a block-diagonal matmul over the fused (W*Cin) lane axis, with
    # the BN1 scale folded into the weight columns.
    w1s = w1 * s1[None, :]
    eye = jnp.eye(W, dtype=w1.dtype)
    bd1 = jnp.einsum('uw,kc->ukwc', eye, w1s).reshape(W * Cin, W * Ch)
    bd1 = bd1.astype(jnp.bfloat16)

    # conv2 as one banded matmul over the K-concatenated [h(i-1)|h(i)|h(i+1)]:
    #   B[dy*W*Ch + u*Ch + k, w*Cout + c] = w2[dy, u-w+1, k, c] * s2[c]
    # for u-w+1 in [0,2], zero otherwise (folds dx taps + width zero padding).
    w2s = w2 * s2
    u = jnp.arange(W)[:, None]
    wi = jnp.arange(W)[None, :]
    dx = u - wi + 1                                   # (W, W)
    valid = (dx >= 0) & (dx <= 2)
    dx_c = jnp.clip(dx, 0, 2)
    taps = w2s[:, dx_c]                               # (3, W, W, Ch, Cout)
    taps = jnp.where(valid[None, :, :, None, None], taps, 0.0)
    bw2 = jnp.transpose(taps, (0, 1, 3, 2, 4)).reshape(3 * W * Ch, W * Cout)
    bw2 = bw2.astype(jnp.bfloat16)

    # Biases stay f32, tiled over W to broadcast along the fused lane axis.
    b1t = jnp.tile(b1, W).reshape(1, W * Ch)
    b2t = jnp.tile(b2, W).reshape(1, W * Cout)
    return bd1, b1t, bw2, b2t


@functools.partial(jax.jit, static_argnames=("use_add",))
def bottleneck_pallas(x_nhwc, bd1, b1t, bw2, b2t, *, use_add):
    N, H, W, Cin = x_nhwc.shape
    WCh = bd1.shape[1]
    WCout = bw2.shape[1]
    Cout = WCout // W
    M = N * H

    # VMEM-scaling guard: the banded weights are O(W^2 * C^2); at this size
    # (~1 MiB) they comfortably fit, but they must be tiled at larger W/C.
    weight_bytes = bd1.size * 2 + bw2.size * 2
    if weight_bytes > 48 * 1024 * 1024:
        raise NotImplementedError(
            "banded weights exceed VMEM budget; tile the W*Cout axis")

    # Lane-dense view: fold W into the channel axis and the batch into M
    # (free, same memory layout).
    x_flat = x_nhwc.reshape(M, W * Cin)

    flops = 2 * M * (W * Cin) * WCh + 2 * M * (3 * WCh) * WCout \
        + 8 * M * (WCh + WCout)
    transc = M * (WCh + WCout)
    bytes_acc = (x_flat.size + M * WCout) * 4 + weight_bytes \
        + (b1t.size + b2t.size) * 4

    kernel = functools.partial(bottleneck_kernel,
                               rows_per_image=H, use_add=use_add)
    # NOTE: grid has a single step, so the weight blocks are loaded once and
    # double-buffering / pl.Buffered(1) is irrelevant here.
    out_flat = pl.pallas_call(
        kernel,
        out_shape=jax.ShapeDtypeStruct((M, WCout), x_nhwc.dtype),
        grid_spec=pltpu.PrefetchScalarGridSpec(
            num_scalar_prefetch=0,
            grid=(1,),
            in_specs=[
                pl.BlockSpec((M, W * Cin), lambda n: (0, 0)),
                pl.BlockSpec((W * Cin, WCh), lambda n: (0, 0)),
                pl.BlockSpec((1, WCh), lambda n: (0, 0)),
                pl.BlockSpec((3 * WCh, WCout), lambda n: (0, 0)),
                pl.BlockSpec((1, WCout), lambda n: (0, 0)),
            ],
            out_specs=pl.BlockSpec((M, WCout), lambda n: (0, 0)),
        ),
        compiler_params=pltpu.CompilerParams(
            dimension_semantics=("arbitrary",)),
        cost_estimate=pl.CostEstimate(
            flops=int(flops), transcendentals=int(transc),
            bytes_accessed=int(bytes_acc)),
    )(x_flat, bd1, b1t, bw2, b2t)
    return out_flat.reshape(N, H, W, Cout)


# ------------------------- parameter construction -------------------------

def fold_bn(gamma, beta, mean, var, eps=1e-5):
    scale = gamma / jnp.sqrt(var + eps)
    bias = beta - mean * scale
    return scale, bias


def make_params(key, in_channels, out_channels, expansion=0.5):
    hidden = int(out_channels * expansion)
    ks = jax.random.split(key, 10)
    # conv1: 1x1, (Cin, Ch) — equivalent to torch weight (Ch, Cin, 1, 1)
    w1 = jax.random.normal(ks[0], (in_channels, hidden), jnp.float32) * 0.1
    # conv2: 3x3, stored HWIO (3, 3, Ch, Cout)
    w2 = jax.random.normal(ks[1], (3, 3, hidden, out_channels), jnp.float32) * 0.1
    # BN1 params (deterministic, inference form)
    g1 = 1.0 + 0.1 * jax.random.normal(ks[2], (hidden,), jnp.float32)
    be1 = 0.1 * jax.random.normal(ks[3], (hidden,), jnp.float32)
    m1 = 0.1 * jax.random.normal(ks[4], (hidden,), jnp.float32)
    v1 = jnp.abs(jax.random.normal(ks[5], (hidden,), jnp.float32)) + 0.5
    # BN2 params
    g2 = 1.0 + 0.1 * jax.random.normal(ks[6], (out_channels,), jnp.float32)
    be2 = 0.1 * jax.random.normal(ks[7], (out_channels,), jnp.float32)
    m2 = 0.1 * jax.random.normal(ks[8], (out_channels,), jnp.float32)
    v2 = jnp.abs(jax.random.normal(ks[9], (out_channels,), jnp.float32)) + 0.5
    s1, b1 = fold_bn(g1, be1, m1, v1)
    s2, b2 = fold_bn(g2, be2, m2, v2)
    return w1, s1, b1, w2, s2, b2


# ---------------------------- pure-JAX reference ---------------------------

def bottleneck_ref(x_nhwc, w1, s1, b1, w2, s2, b2, use_add):
    def conv(x, w, pad):
        return lax.conv_general_dilated(
            x, w, window_strides=(1, 1), padding=[(pad, pad), (pad, pad)],
            dimension_numbers=("NHWC", "HWIO", "NHWC"))

    h = conv(x_nhwc, w1.reshape(1, 1, *w1.shape), 0)
    h = _silu(h * s1 + b1)
    y = conv(h, w2, 1)
    y = _silu(y * s2 + b2)
    if use_add:
        y = y + x_nhwc
    return y


if __name__ == "__main__":
    # Bottleneck(in_channels=32, out_channels=32, shortcut=True,
    #            expansion=0.5, depthwise=False, act='silu')
    N, C, Hs, Ws = 2, 32, 16, 16
    in_channels = out_channels = C
    use_add = True  # shortcut and in_channels == out_channels

    key = jax.random.PRNGKey(0)
    kx, kp = jax.random.split(key)

    # PyTorch-style NCHW input, transposed to NHWC for the kernel.
    x_nchw = jax.random.normal(kx, (N, C, Hs, Ws), jnp.float32)
    x_nhwc = jnp.transpose(x_nchw, (0, 2, 3, 1))

    w1, s1, b1, w2, s2, b2 = make_params(kp, in_channels, out_channels)

    # Weight fusion / BN-scale folding is done ONCE, outside the hot path.
    bd1, b1t, bw2, b2t = prepare_bottleneck_params(w1, s1, b1, w2, s2, b2, Ws)
    bd1, b1t, bw2, b2t = jax.block_until_ready((bd1, b1t, bw2, b2t))

    out_nhwc = bottleneck_pallas(x_nhwc, bd1, b1t, bw2, b2t, use_add=use_add)
    out_nhwc = jax.block_until_ready(out_nhwc)

    ref_nhwc = bottleneck_ref(x_nhwc, w1, s1, b1, w2, s2, b2, use_add)
    ref_nhwc = jax.block_until_ready(ref_nhwc)

    assert out_nhwc.shape == (N, Hs, Ws, out_channels)
    # bf16 matmul operands (f32 accumulation) -> looser tolerance than pure f32.
    assert jnp.allclose(out_nhwc, ref_nhwc, atol=5e-2, rtol=5e-2), (
        float(jnp.max(jnp.abs(out_nhwc - ref_nhwc))))

    # Convert back to NCHW to match the PyTorch module's output convention.
    out_nchw = jnp.transpose(out_nhwc, (0, 3, 1, 2))
    jax.block_until_ready(out_nchw)
    print("KERNEL_OK")
</pallas_src>

<mosaic_0001>
module attributes {stable_mosaic.version = 11 : i64} {
  func.func @bottleneck_kernel(%arg0: i32, %arg1: memref<32x512xf32, #tpu.memory_space<vmem>>, %arg2: memref<512x256xbf16, #tpu.memory_space<vmem>>, %arg3: memref<1x256xf32, #tpu.memory_space<vmem>>, %arg4: memref<768x512xbf16, #tpu.memory_space<vmem>>, %arg5: memref<1x512xf32, #tpu.memory_space<vmem>>, %arg6: memref<32x512xf32, #tpu.memory_space<vmem>>) attributes {dimension_semantics = [#tpu.dimension_semantics<arbitrary>], iteration_bounds = array<i64: 1>, scalar_prefetch = 0 : i64, scratch_operands = 0 : i64, tpu.core_type = #tpu.core_type<tc>, window_params = [{pipeline_mode = #tpu.pipeline_mode<synchronous>, transform_indices = @transform_0, window_bounds = array<i64: 32, 512>}, {pipeline_mode = #tpu.pipeline_mode<synchronous>, transform_indices = @transform_1, window_bounds = array<i64: 512, 256>}, {pipeline_mode = #tpu.pipeline_mode<synchronous>, transform_indices = @transform_2, window_bounds = array<i64: 1, 256>}, {pipeline_mode = #tpu.pipeline_mode<synchronous>, transform_indices = @transform_3, window_bounds = array<i64: 768, 512>}, {pipeline_mode = #tpu.pipeline_mode<synchronous>, transform_indices = @transform_4, window_bounds = array<i64: 1, 512>}, {pipeline_mode = #tpu.pipeline_mode<synchronous>, transform_indices = @transform_5, window_bounds = array<i64: 32, 512>}]} {
    %c0 = arith.constant 0 : index
    %c0_0 = arith.constant 0 : index
    %0 = vector.load %arg1[%c0, %c0_0] : memref<32x512xf32, #tpu.memory_space<vmem>>, vector<32x512xf32>
    %1 = arith.truncf %0 : vector<32x512xf32> to vector<32x512xbf16>
    %c0_1 = arith.constant 0 : index
    %c0_2 = arith.constant 0 : index
    %2 = vector.load %arg2[%c0_1, %c0_2] : memref<512x256xbf16, #tpu.memory_space<vmem>>, vector<512x256xbf16>
    %cst = arith.constant dense<0.000000e+00> : vector<32x256xf32>
    %3 = tpu.matmul %1, %2, %cst {dimension_numbers = #tpu.dot_dimension_numbers<[1], [0], [0], [1], [0, 0, 1, 1], [], []>} : vector<32x512xbf16>, vector<512x256xbf16>, vector<32x256xf32> -> vector<32x256xf32>
    %c0_3 = arith.constant 0 : index
    %c0_4 = arith.constant 0 : index
    %4 = vector.load %arg3[%c0_3, %c0_4] : memref<1x256xf32, #tpu.memory_space<vmem>>, vector<1x256xf32>
    %5 = vector.broadcast %4 : vector<1x256xf32> to vector<32x256xf32>
    %6 = arith.addf %3, %5 : vector<32x256xf32>
    %7 = arith.negf %6 : vector<32x256xf32>
    %8 = math.exp %7 : vector<32x256xf32>
    %cst_5 = arith.constant 1.000000e+00 : f32
    %9 = vector.broadcast %cst_5 : f32 to vector<32x256xf32>
    %10 = arith.addf %9, %8 : vector<32x256xf32>
    %11 = arith.divf %9, %10 : vector<32x256xf32>
    %12 = arith.mulf %6, %11 : vector<32x256xf32>
    %13 = arith.truncf %12 : vector<32x256xf32> to vector<32x256xbf16>
    %cst_6 = arith.constant 0.000000e+00 : bf16
    %14 = vector.broadcast %cst_6 : bf16 to vector<1x256xbf16>
    %15 = vector.extract_strided_slice %13 {offsets = [0, 0], sizes = [31, 256], strides = [1, 1]} : vector<32x256xbf16> to vector<31x256xbf16>
    %16 = tpu.concatenate %14, %15 in 0 : vector<1x256xbf16>, vector<31x256xbf16> -> vector<32x256xbf16>
    %17 = vector.extract_strided_slice %13 {offsets = [1, 0], sizes = [31, 256], strides = [1, 1]} : vector<32x256xbf16> to vector<31x256xbf16>
    %18 = tpu.concatenate %17, %14 in 0 : vector<31x256xbf16>, vector<1x256xbf16> -> vector<32x256xbf16>
    %19 = tpu.iota {dimensions = array<i32: 0>} : vector<32x1xi32>
    %c16_i32 = arith.constant 16 : i32
    %c0_i32 = arith.constant 0 : i32
    %20 = arith.cmpi eq, %c16_i32, %c0_i32 : i32
    %c1_i32 = arith.constant 1 : i32
    %21 = arith.select %20, %c1_i32, %c16_i32 : i32
    %22 = vector.broadcast %21 : i32 to vector<32x1xi32>
    %23 = arith.remsi %19, %22 : vector<32x1xi32>
    %c0_i32_7 = arith.constant 0 : i32
    %24 = vector.broadcast %c0_i32_7 : i32 to vector<32x1xi32>
    %25 = arith.cmpi ne, %23, %24 : vector<32x1xi32>
    %c0_i32_8 = arith.constant 0 : i32
    %26 = vector.broadcast %c0_i32_8 : i32 to vector<32x1xi32>
    %27 = arith.cmpi slt, %23, %26 : vector<32x1xi32>
    %c0_i32_9 = arith.constant 0 : i32
    %28 = arith.cmpi slt, %21, %c0_i32_9 : i32
    %29 = vector.broadcast %28 : i1 to vector<32x1xi1>
    %30 = vector.broadcast %29 : vector<32x1xi1> to vector<32x1xi1>
    %31 = arith.xori %27, %30 : vector<32x1xi1>
    %32 = arith.andi %31, %25 : vector<32x1xi1>
    %33 = vector.broadcast %21 : i32 to vector<32x1xi32>
    %34 = arith.addi %23, %33 : vector<32x1xi32>
    %35 = arith.select %32, %34, %23 : vector<32x1xi1>, vector<32x1xi32>
    %c0_i32_10 = arith.constant 0 : i32
    %36 = vector.broadcast %c0_i32_10 : i32 to vector<32x1xi32>
    %37 = arith.cmpi ne, %35, %36 : vector<32x1xi32>
    %cst_11 = arith.constant 0.000000e+00 : bf16
    %38 = vector.broadcast %cst_11 : bf16 to vector<32x256xbf16>
    %39 = vector.shape_cast %37 : vector<32x1xi1> to vector<32x1xi1>
    %40 = vector.broadcast %39 : vector<32x1xi1> to vector<32x256xi1>
    %41 = arith.select %40, %16, %38 : vector<32x256xi1>, vector<32x256xbf16>
    %c15_i32 = arith.constant 15 : i32
    %42 = vector.broadcast %c15_i32 : i32 to vector<32x1xi32>
    %43 = arith.cmpi ne, %35, %42 : vector<32x1xi32>
    %cst_12 = arith.constant 0.000000e+00 : bf16
    %44 = vector.broadcast %cst_12 : bf16 to vector<32x256xbf16>
    %45 = vector.shape_cast %43 : vector<32x1xi1> to vector<32x1xi1>
    %46 = vector.broadcast %45 : vector<32x1xi1> to vector<32x256xi1>
    %47 = arith.select %46, %18, %44 : vector<32x256xi1>, vector<32x256xbf16>
    %48 = tpu.concatenate %41, %13, %47 in 1 : vector<32x256xbf16>, vector<32x256xbf16>, vector<32x256xbf16> -> vector<32x768xbf16>
    %c0_13 = arith.constant 0 : index
    %c0_14 = arith.constant 0 : index
    %49 = vector.load %arg4[%c0_13, %c0_14] : memref<768x512xbf16, #tpu.memory_space<vmem>>, vector<768x512xbf16>
    %cst_15 = arith.constant dense<0.000000e+00> : vector<32x512xf32>
    %50 = tpu.matmul %48, %49, %cst_15 {dimension_numbers = #tpu.dot_dimension_numbers<[1], [0], [0], [1], [0, 0, 1, 1], [], []>} : vector<32x768xbf16>, vector<768x512xbf16>, vector<32x512xf32> -> vector<32x512xf32>
    %c0_16 = arith.constant 0 : index
    %c0_17 = arith.constant 0 : index
    %51 = vector.load %arg5[%c0_16, %c0_17] : memref<1x512xf32, #tpu.memory_space<vmem>>, vector<1x512xf32>
    %52 = vector.broadcast %51 : vector<1x512xf32> to vector<32x512xf32>
    %53 = arith.addf %50, %52 : vector<32x512xf32>
    %54 = arith.negf %53 : vector<32x512xf32>
    %55 = math.exp %54 : vector<32x512xf32>
    %cst_18 = arith.constant 1.000000e+00 : f32
    %56 = vector.broadcast %cst_18 : f32 to vector<32x512xf32>
    %57 = arith.addf %56, %55 : vector<32x512xf32>
    %58 = arith.divf %56, %57 : vector<32x512xf32>
    %59 = arith.mulf %53, %58 : vector<32x512xf32>
    %60 = arith.addf %59, %0 : vector<32x512xf32>
    %c0_19 = arith.constant 0 : index
    %c0_20 = arith.constant 0 : index
    %61 = vector.load %arg6[%c0_19, %c0_20] : memref<32x512xf32, #tpu.memory_space<vmem>>, vector<32x512xf32>
    tpu.vector_store %arg6[%c0_19, %c0_20], %60 {strides = array<i32>} : memref<32x512xf32, #tpu.memory_space<vmem>>, vector<32x512xf32>,
    return
  }
  func.func @transform_0(%arg0: i32) -> (i32, i32) {
    %c0_i32 = arith.constant 0 : i32
    %c0_i32_0 = arith.constant 0 : i32
    %c0_i32_1 = arith.constant 0 : i32
    return %c0_i32, %c0_i32_0 : i32, i32
  }
  func.func @transform_1(%arg0: i32) -> (i32, i32) {
    %c0_i32 = arith.constant 0 : i32
    %c0_i32_0 = arith.constant 0 : i32
    %c0_i32_1 = arith.constant 0 : i32
    return %c0_i32, %c0_i32_0 : i32, i32
  }
  func.func @transform_2(%arg0: i32) -> (i32, i32) {
    %c0_i32 = arith.constant 0 : i32
    %c0_i32_0 = arith.constant 0 : i32
    %c0_i32_1 = arith.constant 0 : i32
    return %c0_i32, %c0_i32_0 : i32, i32
  }
  func.func @transform_3(%arg0: i32) -> (i32, i32) {
    %c0_i32 = arith.constant 0 : i32
    %c0_i32_0 = arith.constant 0 : i32
    %c0_i32_1 = arith.constant 0 : i32
    return %c0_i32, %c0_i32_0 : i32, i32
  }
  func.func @transform_4(%arg0: i32) -> (i32, i32) {
    %c0_i32 = arith.constant 0 : i32
    %c0_i32_0 = arith.constant 0 : i32
    %c0_i32_1 = arith.constant 0 : i32
    return %c0_i32, %c0_i32_0 : i32, i32
  }
  func.func @transform_5(%arg0: i32) -> (i32, i32) {
    %c0_i32 = arith.constant 0 : i32
    %c0_i32_0 = arith.constant 0 : i32
    %c0_i32_1 = arith.constant 0 : i32
    return %c0_i32, %c0_i32_0 : i32, i32
  }
}

</mosaic_0001>

<bundles_post_ra>
// kernel: bottleneck_pallas.1
= control target key start
LH: loop header
LB: loop body
LE: loop exit
PB: predicated region body
PF: predicated region fallthrough
CT: control target
= control target key end

     0   :  { %10 = vsyncpa [#allocation3], 0  ;;  %s4418_s21 = smov [#allocation2]   ;;  %s4419_s23 = smov 256   ;;  %s5802_s0 = inlined_call_operand.vmem [shape: f32[32,512], index: 0, kind: input, shape index: {}]   ;;  %s5803_s1 = inlined_call_operand.vmem [shape: bf16[512,256], index: 1, kind: input, shape index: {}]   ;;  %s5804_s2 = inlined_call_operand.vmem [shape: f32[1,256], index: 2, kind: input, shape index: {}]   ;;  %s5805_s3 = inlined_call_operand.hbm [shape: bf16[768,512], index: 3, kind: input, shape index: {}]   ;;  %s5806_s4 = inlined_call_operand.vmem [shape: f32[1,512], index: 4, kind: input, shape index: {}]   ;;  %s5807_s5 = inlined_call_operand.vmem [shape: f32[32,512], index: 5, kind: output, shape index: {}]  }
   0x1   :  { %s21_s20 = sshll.u32 %s5805_s3, 4  ;;  %s23_s22 = sshll.u32 %s4418_s21, 4  ;;  %s22_s20 = int_to_ptr.hbm [resolvable:$true] %s21_s20  ;;  %s24_s22 = int_to_ptr.vmem [resolvable:$true] %s23_s22 }
   0x2   :  { %s4420_s24 = smov 16  }
   0x3   :  { %29 = dma.hbm_to_vmem [thread:$0]  %s22_s20, 24576, %s24_s22, [#allocation3], %s4419_s23, %s4419_s23, %s4420_s24  }
   0x4   :  { %4416 = dma.done.wait [#allocation3], 24576  }
   0x5   :  { %4417 = vsyncadd [#allocation3], 4294942720  ;;  %v3021_v0 = vld [vmem:[%s5803_s1 + $0x70] sm:$0xf]  ;;  %v4034_v1 = vld [vmem:[%s5803_s1 + $0x74] sm:$0xf0] }
   0x6   :  { %v3085_v2 = vld [vmem:[%s5803_s1 + $0xf0] sm:$0xf]  ;;  %v3022_v3 = vor.u32 %v4034_v1, %v3021_v0  ;;  %v4050_v4 = vld [vmem:[%s5803_s1 + $0xf4] sm:$0xf0]  ;;  %v3013_v11 = vld [vmem:[%s5803_s1 + $0x60] sm:$0xf] }
   0x7   :  { %v3149_v5 = vld [vmem:[%s5803_s1 + $0x170] sm:$0xf]  ;;  %v4066_v6 = vld [vmem:[%s5803_s1 + $0x174] sm:$0xf0]  ;;  %v3086_v7 = vor.u32 %v4050_v4, %v3085_v2  ;;  %v4032_v13 = vld [vmem:[%s5803_s1 + $0x64] sm:$0xf0] }
   0x8   :  { %v3150_v8 = vor.u32 %v4066_v6, %v3149_v5  ;;  %v3213_v9 = vld [vmem:[%s5803_s1 + $0x1f0] sm:$0xf]  ;;  %v4082_v10 = vld [vmem:[%s5803_s1 + $0x1f4] sm:$0xf0]  ;;  %453 = vmatpush.bf16.msra.mxu0 %v3022_v3  ;;  %v3077_v14 = vld [vmem:[%s5803_s1 + $0xe0] sm:$0xf]  ;;  %v3014_v16 = vor.u32 %v4032_v13, %v3013_v11 }
   0x9   :  { %v3214_v12 = vor.u32 %v4082_v10, %v3213_v9  ;;  %v4048_v15 = vld [vmem:[%s5803_s1 + $0xe4] sm:$0xf0]  ;;  %472 = vmatpush.bf16.msra.mxu1 %v3086_v7  ;;  %v3141_v18 = vld [vmem:[%s5803_s1 + $0x160] sm:$0xf]  ;;  %v3005_v23 = vld [vmem:[%s5803_s1 + $0x50] sm:$0xf] }
   0xa   :  { %491 = vmatpush.bf16.msra.mxu2 %v3150_v8  ;;  %v3078_v17 = vor.u32 %v4048_v15, %v3077_v14  ;;  %v4064_v19 = vld [vmem:[%s5803_s1 + $0x164] sm:$0xf0]  ;;  %v3205_v20 = vld [vmem:[%s5803_s1 + $0x1e0] sm:$0xf]  ;;  %v4030_v24 = vld [vmem:[%s5803_s1 + $0x54] sm:$0xf0] }
   0xb   :  { %510 = vmatpush.bf16.msra.mxu3 %v3214_v12  ;;  %v3142_v21 = vor.u32 %v4064_v19, %v3141_v18  ;;  %v4080_v22 = vld [vmem:[%s5803_s1 + $0x1e4] sm:$0xf0]  ;;  %v3069_v26 = vld [vmem:[%s5803_s1 + $0xd0] sm:$0xf]  ;;  %v4046_v27 = vld [vmem:[%s5803_s1 + $0xd4] sm:$0xf0]  ;;  %v3006_v29 = vor.u32 %v4030_v24, %v3005_v23 }
   0xc   :  { %v3206_v25 = vor.u32 %v4080_v22, %v3205_v20  ;;  %v3133_v28 = vld [vmem:[%s5803_s1 + $0x150] sm:$0xf]  ;;  %454 = vmatpush.bf16.msra.mxu0 %v3014_v16  ;;  %v4062_v30 = vld [vmem:[%s5803_s1 + $0x154] sm:$0xf0]  ;;  %v3070_v33 = vor.u32 %v4046_v27, %v3069_v26  ;;  %v2997_v35 = vld [vmem:[%s5803_s1 + $0x40] sm:$0xf] }
   0xd   :  { %v3197_v31 = vld [vmem:[%s5803_s1 + $0x1d0] sm:$0xf]  ;;  %v4078_v32 = vld [vmem:[%s5803_s1 + $0x1d4] sm:$0xf0]  ;;  %473 = vmatpush.bf16.msra.mxu1 %v3078_v17  ;;  %v3134_v34 = vor.u32 %v4062_v30, %v3133_v28  ;;  %v4028_v36 = vld [vmem:[%s5803_s1 + $0x44] sm:$0xf0] }
   0xe   :  { %492 = vmatpush.bf16.msra.mxu2 %v3142_v21  ;;  %v3061_v37 = vld [vmem:[%s5803_s1 + $0xc0] sm:$0xf]  ;;  %v3198_v38 = vor.u32 %v4078_v32, %v3197_v31  ;;  %v4044_v39 = vld [vmem:[%s5803_s1 + $0xc4] sm:$0xf0]  ;;  %v2998_v44 = vor.u32 %v4028_v36, %v2997_v35  ;;  %v2989_v47 = vld [vmem:[%s5803_s1 + $0x30] sm:$0xf] }
   0xf   :  { %511 = vmatpush.bf16.msra.mxu3 %v3206_v25  ;;  %v3125_v40 = vld [vmem:[%s5803_s1 + $0x140] sm:$0xf]  ;;  %v4060_v41 = vld [vmem:[%s5803_s1 + $0x144] sm:$0xf0]  ;;  %v3062_v45 = vor.u32 %v4044_v39, %v3061_v37  ;;  %v4026_v48 = vld [vmem:[%s5803_s1 + $0x34] sm:$0xf0] }
  0x10   :  { %v3189_v42 = vld [vmem:[%s5803_s1 + $0x1c0] sm:$0xf]  ;;  %v4076_v43 = vld [vmem:[%s5803_s1 + $0x1c4] sm:$0xf0]  ;;  %455 = vmatpush.bf16.msra.mxu0 %v3006_v29  ;;  %v3126_v46 = vor.u32 %v4060_v41, %v3125_v40  ;;  %v3053_v49 = vld [vmem:[%s5803_s1 + $0xb0] sm:$0xf]  ;;  %v2990_v56 = vor.u32 %v4026_v48, %v2989_v47 }
  0x11   :  { %474 = vmatpush.bf16.msra.mxu1 %v3070_v33  ;;  %v3190_v50 = vor.u32 %v4076_v43, %v3189_v42  ;;  %v4042_v51 = vld [vmem:[%s5803_s1 + $0xb4] sm:$0xf0]  ;;  %v3117_v52 = vld [vmem:[%s5803_s1 + $0x130] sm:$0xf]  ;;  %v2981_v59 = vld [vmem:[%s5803_s1 + $0x20] sm:$0xf] }
  0x12   :  { %493 = vmatpush.bf16.msra.mxu2 %v3134_v34  ;;  %v4058_v53 = vld [vmem:[%s5803_s1 + $0x134] sm:$0xf0]  ;;  %v3181_v54 = vld [vmem:[%s5803_s1 + $0x1b0] sm:$0xf]  ;;  %v3054_v57 = vor.u32 %v4042_v51, %v3053_v49  ;;  %v4024_v60 = vld [vmem:[%s5803_s1 + $0x24] sm:$0xf0] }
  0x13   :  { %512 = vmatpush.bf16.msra.mxu3 %v3198_v38  ;;  %v4074_v55 = vld [vmem:[%s5803_s1 + $0x1b4] sm:$0xf0]  ;;  %v3118_v58 = vor.u32 %v4058_v53, %v3117_v52  ;;  %v3045_v61 = vld [vmem:[%s5803_s1 + $0xa0] sm:$0xf]  ;;  %v4040_v63 = vld [vmem:[%s5803_s1 + $0xa4] sm:$0xf0]  ;;  %v2982_v4 = vor.u32 %v4024_v60, %v2981_v59 }
  0x14   :  { %456 = vmatpush.bf16.msra.mxu0 %v2998_v44  ;;  %v3182_v62 = vor.u32 %v4074_v55, %v3181_v54  ;;  %v3109_v0 = vld [vmem:[%s5803_s1 + $0x120] sm:$0xf]  ;;  %v4056_v1 = vld [vmem:[%s5803_s1 + $0x124] sm:$0xf0]  ;;  %v3046_v5 = vor.u32 %v4040_v63, %v3045_v61  ;;  %v2973_v7 = vld [vmem:[%s5803_s1 + $0x10] sm:$0xf] }
  0x15   :  { %475 = vmatpush.bf16.msra.mxu1 %v3062_v45  ;;  %v3173_v2 = vld [vmem:[%s5803_s1 + $0x1a0] sm:$0xf]  ;;  %v4072_v3 = vld [vmem:[%s5803_s1 + $0x1a4] sm:$0xf0]  ;;  %v3110_v6 = vor.u32 %v4056_v1, %v3109_v0  ;;  %v4022_v8 = vld [vmem:[%s5803_s1 + $0x14] sm:$0xf0] }
  0x16   :  { %494 = vmatpush.bf16.msra.mxu2 %v3126_v46  ;;  %v3037_v9 = vld [vmem:[%s5803_s1 + $0x90] sm:$0xf]  ;;  %v3174_v10 = vor.u32 %v4072_v3, %v3173_v2  ;;  %v4038_v11 = vld [vmem:[%s5803_s1 + $0x94] sm:$0xf0]  ;;  %v2965_v16 = vld [vmem:[%s5803_s1] sm:$0xf]  ;;  %v2974_v17 = vor.u32 %v4022_v8, %v2973_v7 }
  0x17   :  { %513 = vmatpush.bf16.msra.mxu3 %v3190_v50  ;;  %v3101_v12 = vld [vmem:[%s5803_s1 + $0x110] sm:$0xf]  ;;  %v4054_v13 = vld [vmem:[%s5803_s1 + $0x114] sm:$0xf0]  ;;  %v4020_v18 = vld [vmem:[%s5803_s1 + $0x4] sm:$0xf0]  ;;  %v3038_v21 = vor.u32 %v4038_v11, %v3037_v9 }
  0x18   :  { %457 = vmatpush.bf16.msra.mxu0 %v2990_v56  ;;  %v3165_v14 = vld [vmem:[%s5803_s1 + $0x190] sm:$0xf]  ;;  %v4070_v15 = vld [vmem:[%s5803_s1 + $0x194] sm:$0xf0]  ;;  %v3029_v19 = vld [vmem:[%s5803_s1 + $0x80] sm:$0xf]  ;;  %v3102_v22 = vor.u32 %v4054_v13, %v3101_v12  ;;  %v2966_v34 = vor.u32 %v4020_v18, %v2965_v16 }
  0x19   :  { %476 = vmatpush.bf16.msra.mxu1 %v3054_v57  ;;  %v4036_v20 = vld [vmem:[%s5803_s1 + $0x84] sm:$0xf0]  ;;  %v3093_v23 = vld [vmem:[%s5803_s1 + $0x100] sm:$0xf]  ;;  %v3166_v26 = vor.u32 %v4070_v15, %v3165_v14  ;;  %v4065_v32 = vld [vmem:[%s5803_s1 + $0x174] sm:$0xf] }
  0x1a   :  { %495 = vmatpush.bf16.msra.mxu2 %v3118_v58  ;;  %v4052_v24 = vld [vmem:[%s5803_s1 + $0x104] sm:$0xf0]  ;;  %v3157_v25 = vld [vmem:[%s5803_s1 + $0x180] sm:$0xf]  ;;  %v3151_v33 = vld [vmem:[%s5803_s1 + $0x178] sm:$0xf0]  ;;  %v3030_v38 = vor.u32 %v4036_v20, %v3029_v19 }
  0x1b   :  { %514 = vmatpush.bf16.msra.mxu3 %v3182_v62  ;;  %v4068_v27 = vld [vmem:[%s5803_s1 + $0x184] sm:$0xf0]  ;;  %v39_v28 = vld [vmem:[%s5802_s0] sm:$0xff]  ;;  %v41_v35 = vld [vmem:[%s5802_s0 + $0x10] sm:$0xff]  ;;  %v3094_v39 = vor.u32 %v4052_v24, %v3093_v23  ;;  %v3154_v44 = vor.u32 %v4065_v32, %v3151_v33  ;;  %vm4421_vm12 = vmmov 1  }
  0x1c   :  { %458 = vmatpush.bf16.msra.mxu0 %v2982_v4  ;;  %v43_v29 = vld [vmem:[%s5802_s0 + $0x20] sm:$0xff]  ;;  %v40_v30 = vld [vmem:[%s5802_s0 + $0x8] sm:$0xff]  ;;  %v4049_v36 = vld [vmem:[%s5803_s1 + $0xf4] sm:$0xf]  ;;  %v3158_v43 = vor.u32 %v4068_v27, %v3157_v25 }
  0x1d   :  { %477 = vmatpush.bf16.msra.mxu1 %v3046_v5  ;;  %v44_v31 = vld [vmem:[%s5802_s0 + $0x28] sm:$0xff]  ;;  %v3087_v37 = vld [vmem:[%s5803_s1 + $0xf8] sm:$0xf0]  ;;  %v45_v40 = vld [vmem:[%s5802_s0 + $0x30] sm:$0xff]  ;;  %v4693_v48 = vpack.c.bf16 %v43_v29, %v39_v28 }
  0x1e   :  { %496 = vmatpush.bf16.msra.mxu2 %v3110_v6  ;;  %v42_v41 = vld [vmem:[%s5802_s0 + $0x18] sm:$0xff]  ;;  %v4033_v45 = vld [vmem:[%s5803_s1 + $0x74] sm:$0xf]  ;;  %v3090_v49 = vor.u32 %v4049_v36, %v3087_v37  ;;  %v4063_v51 = vld [vmem:[%s5803_s1 + $0x164] sm:$0xf]  ;;  %v4704_v53 = vpack.c.bf16 %v44_v31, %v40_v30  ;;  %v4706_v54 = vpack.c.bf16 %v45_v40, %v41_v35 }
  0x1f   :  { %515 = vmatpush.bf16.msra.mxu3 %v3174_v10  ;;  %v46_v42 = vld [vmem:[%s5802_s0 + $0x38] sm:$0xff]  ;;  %v4081_v47 = vld [vmem:[%s5803_s1 + $0x1f4] sm:$0xf]  ;;  %v3143_v52 = vld [vmem:[%s5803_s1 + $0x168] sm:$0xf0] }
  0x20   :  { %459 = vmatpush.bf16.msra.mxu0 %v2974_v17  ;;  %v3023_v46 = vld [vmem:[%s5803_s1 + $0x78] sm:$0xf0]  ;;  %v4047_v55 = vld [vmem:[%s5803_s1 + $0xe4] sm:$0xf]  ;;  %v3079_v56 = vld [vmem:[%s5803_s1 + $0xe8] sm:$0xf0]  ;;  %v4714_v57 = vpack.c.bf16 %v46_v42, %v42_v41  ;;  %v3146_v60 = vor.u32 %v4063_v51, %v3143_v52 }
  0x21   :  { %478 = vmatpush.bf16.msra.mxu1 %v3038_v21  ;;  %v3215_v50 = vld [vmem:[%s5803_s1 + $0x1f8] sm:$0xf0]  ;;  %v3026_v58 = vor.u32 %v4033_v45, %v3023_v46  ;;  %v4031_v61 = vld [vmem:[%s5803_s1 + $0x64] sm:$0xf]  ;;  %v3015_v62 = vld [vmem:[%s5803_s1 + $0x68] sm:$0xf0]  ;;  %v3082_v0 = vor.u32 %v4047_v55, %v3079_v56 }
  0x22   :  { %497 = vmatpush.bf16.msra.mxu2 %v3102_v22  ;;  %v3218_v59 = vor.u32 %v4081_v47, %v3215_v50  ;;  %v4079_v63 = vld [vmem:[%s5803_s1 + $0x1e4] sm:$0xf]  ;;  %v3207_v1 = vld [vmem:[%s5803_s1 + $0x1e8] sm:$0xf0]  ;;  %v4061_v2 = vld [vmem:[%s5803_s1 + $0x154] sm:$0xf]  ;;  %v3018_v6 = vor.u32 %v4031_v61, %v3015_v62 }
  0x23   :  { %516 = vmatpush.bf16.msra.mxu3 %v3166_v26  ;;  %v3135_v3 = vld [vmem:[%s5803_s1 + $0x158] sm:$0xf0]  ;;  %v4045_v4 = vld [vmem:[%s5803_s1 + $0xd4] sm:$0xf]  ;;  %v3210_v7 = vor.u32 %v4079_v63, %v3207_v1  ;;  %v4059_v14 = vld [vmem:[%s5803_s1 + $0x144] sm:$0xf] }
  0x24   :  { %460 = vmatpush.bf16.msra.mxu0 %v2966_v34  ;;  %v3071_v5 = vld [vmem:[%s5803_s1 + $0xd8] sm:$0xf0]  ;;  %v3138_v8 = vor.u32 %v4061_v2, %v3135_v3  ;;  %v4029_v9 = vld [vmem:[%s5803_s1 + $0x54] sm:$0xf]  ;;  %v3127_v15 = vld [vmem:[%s5803_s1 + $0x148] sm:$0xf0] }
  0x25   :  { %479 = vmatpush.bf16.msra.mxu1 %v3030_v38  ;;  %v3007_v10 = vld [vmem:[%s5803_s1 + $0x58] sm:$0xf0]  ;;  %v4077_v11 = vld [vmem:[%s5803_s1 + $0x1d4] sm:$0xf]  ;;  %v3074_v12 = vor.u32 %v4045_v4, %v3071_v5  ;;  %v4043_v16 = vld [vmem:[%s5803_s1 + $0xc4] sm:$0xf]  ;;  %v3130_v23 = vor.u32 %v4059_v14, %v3127_v15 }
  0x26   :  { %498 = vmatpush.bf16.msra.mxu2 %v3094_v39  ;;  %v3199_v13 = vld [vmem:[%s5803_s1 + $0x1d8] sm:$0xf0]  ;;  %v3063_v17 = vld [vmem:[%s5803_s1 + $0xc8] sm:$0xf0]  ;;  %v3010_v18 = vor.u32 %v4029_v9, %v3007_v10  ;;  %v4027_v19 = vld [vmem:[%s5803_s1 + $0x44] sm:$0xf] }
  0x27   :  { %517 = vmatpush.bf16.msra.mxu3 %v3158_v43  ;;  %461 = vmatmul.bf16.vlgmr.msra.gmra.mxu0 %v4693_v48  ;;  %v2999_v20 = vld [vmem:[%s5803_s1 + $0x48] sm:$0xf0]  ;;  %v4075_v21 = vld [vmem:[%s5803_s1 + $0x1c4] sm:$0xf]  ;;  %v3202_v22 = vor.u32 %v4077_v11, %v3199_v13  ;;  %v3066_v27 = vor.u32 %v4043_v16, %v3063_v17  ;;  %v4057_v30 = vld [vmem:[%s5803_s1 + $0x134] sm:$0xf] }
  0x28   :  { %480 = vmatmul.bf16.vlgmr.msra.gmra.mxu1 %v4704_v53  ;;  %529 = vmatpush.bf16.msrb.mxu0 %v3026_v58  ;;  %v3191_v24 = vld [vmem:[%s5803_s1 + $0x1c8] sm:$0xf0]  ;;  %v47_v25 = vld [vmem:[%s5802_s0 + $0x40] sm:$0xff]  ;;  %v3119_v31 = vld [vmem:[%s5803_s1 + $0x138] sm:$0xf0]  ;;  %v3002_v35 = vor.u32 %v4027_v19, %v2999_v20 }
  0x29   :  { %548 = vmatpush.bf16.msrb.mxu1 %v3090_v49  ;;  %499 = vmatmul.bf16.vlgmr.msra.gmra.mxu2 %v4706_v54  ;;  %v51_v26 = vld [vmem:[%s5802_s0 + $0x60] sm:$0xff]  ;;  %v48_v28 = vld [vmem:[%s5802_s0 + $0x48] sm:$0xff]  ;;  %v49_v32 = vld [vmem:[%s5802_s0 + $0x50] sm:$0xff]  ;;  %v3194_v39 = vor.u32 %v4075_v21, %v3191_v24  ;;  %v3122_v40 = vor.u32 %v4057_v30, %v3119_v31 }
  0x2a   :  { %567 = vmatpush.bf16.msrb.mxu2 %v3154_v44  ;;  %518 = vmatmul.bf16.vlgmr.msra.gmra.mxu3 %v4714_v57  ;;  %v52_v29 = vld [vmem:[%s5802_s0 + $0x68] sm:$0xff]  ;;  %v4041_v33 = vld [vmem:[%s5803_s1 + $0xb4] sm:$0xf]  ;;  %v3055_v34 = vld [vmem:[%s5803_s1 + $0xb8] sm:$0xf0]  ;;  %v4825_v44 = vpack.c.bf16 %v51_v26, %v47_v25 }
  0x2b   :  { %586 = vmatpush.bf16.msrb.mxu3 %v3218_v59  ;;  %v53_v36 = vld [vmem:[%s5802_s0 + $0x70] sm:$0xff]  ;;  %v50_v37 = vld [vmem:[%s5802_s0 + $0x58] sm:$0xff]  ;;  %v3058_v45 = vor.u32 %v4041_v33, %v3055_v34  ;;  %v4055_v47 = vld [vmem:[%s5803_s1 + $0x124] sm:$0xf]  ;;  %v4836_v50 = vpack.c.bf16 %v52_v29, %v48_v28 }
  0x2c   :  { %530 = vmatpush.bf16.msrb.mxu0 %v3018_v6  ;;  %v54_v38 = vld [vmem:[%s5802_s0 + $0x78] sm:$0xff]  ;;  %v4025_v41 = vld [vmem:[%s5803_s1 + $0x34] sm:$0xf]  ;;  %v3111_v49 = vld [vmem:[%s5803_s1 + $0x128] sm:$0xf0]  ;;  %v4838_v51 = vpack.c.bf16 %v53_v36, %v49_v32 }
  0x2d   :  { %549 = vmatpush.bf16.msrb.mxu1 %v3082_v0  ;;  %v2991_v42 = vld [vmem:[%s5803_s1 + $0x38] sm:$0xf0]  ;;  %v4073_v43 = vld [vmem:[%s5803_s1 + $0x1b4] sm:$0xf]  ;;  %v4039_v52 = vld [vmem:[%s5803_s1 + $0xa4] sm:$0xf]  ;;  %v62_v56 = vpack.c.bf16 %v54_v38, %v50_v37 }
  0x2e   :  { %568 = vmatpush.bf16.msrb.mxu2 %v3146_v60  ;;  %v3183_v46 = vld [vmem:[%s5803_s1 + $0x1b8] sm:$0xf0]  ;;  %v3047_v55 = vld [vmem:[%s5803_s1 + $0xa8] sm:$0xf0]  ;;  %v2994_v58 = vor.u32 %v4025_v41, %v2991_v42  ;;  %v3114_v60 = vor.u32 %v4055_v47, %v3111_v49  ;;  %v4023_v61 = vld [vmem:[%s5803_s1 + $0x24] sm:$0xf] }
  0x2f   :  { %587 = vmatpush.bf16.msrb.mxu3 %v3210_v7  ;;  %v3186_v59 = vor.u32 %v4073_v43, %v3183_v46  ;;  %v2983_v62 = vld [vmem:[%s5803_s1 + $0x28] sm:$0xf0]  ;;  %v4071_v63 = vld [vmem:[%s5803_s1 + $0x1a4] sm:$0xf]  ;;  %v3050_v0 = vor.u32 %v4039_v52, %v3047_v55  ;;  %v4053_v2 = vld [vmem:[%s5803_s1 + $0x114] sm:$0xf] }
  0x30   :  { %531 = vmatpush.bf16.msrb.mxu0 %v3010_v18  ;;  %v3175_v1 = vld [vmem:[%s5803_s1 + $0x1a8] sm:$0xf0]  ;;  %v3103_v3 = vld [vmem:[%s5803_s1 + $0x118] sm:$0xf0]  ;;  %v4037_v4 = vld [vmem:[%s5803_s1 + $0x94] sm:$0xf]  ;;  %v2986_v6 = vor.u32 %v4023_v61, %v2983_v62 }
  0x31   :  { %550 = vmatpush.bf16.msrb.mxu1 %v3074_v12  ;;  %v3039_v5 = vld [vmem:[%s5803_s1 + $0x98] sm:$0xf0]  ;;  %v3178_v7 = vor.u32 %v4071_v63, %v3175_v1  ;;  %v4021_v9 = vld [vmem:[%s5803_s1 + $0x14] sm:$0xf]  ;;  %v4051_v14 = vld [vmem:[%s5803_s1 + $0x104] sm:$0xf] }
  0x32   :  { %569 = vmatpush.bf16.msrb.mxu2 %v3138_v8  ;;  %v3106_v8 = vor.u32 %v4053_v2, %v3103_v3  ;;  %v2975_v10 = vld [vmem:[%s5803_s1 + $0x18] sm:$0xf0]  ;;  %v4069_v11 = vld [vmem:[%s5803_s1 + $0x194] sm:$0xf]  ;;  %v3042_v12 = vor.u32 %v4037_v4, %v3039_v5  ;;  %v3095_v15 = vld [vmem:[%s5803_s1 + $0x108] sm:$0xf0] }
  0x33   :  { %588 = vmatpush.bf16.msrb.mxu3 %v3202_v22  ;;  %v3167_v13 = vld [vmem:[%s5803_s1 + $0x198] sm:$0xf0]  ;;  %v4035_v16 = vld [vmem:[%s5803_s1 + $0x84] sm:$0xf]  ;;  %v3031_v17 = vld [vmem:[%s5803_s1 + $0x88] sm:$0xf0]  ;;  %v2978_v18 = vor.u32 %v4021_v9, %v2975_v10  ;;  %v3098_v20 = vor.u32 %v4051_v14, %v3095_v15 }
  0x34   :  { %532 = vmatpush.bf16.msrb.mxu0 %v3002_v35  ;;  %v3170_v19 = vor.u32 %v4069_v11, %v3167_v13  ;;  %v4019_v21 = vld [vmem:[%s5803_s1 + $0x4] sm:$0xf]  ;;  %v2967_v22 = vld [vmem:[%s5803_s1 + $0x8] sm:$0xf0]  ;;  %v127_v28 = vld [vmem:[%s5804_s2] sm:$0x3] }
  0x35   :  { %551 = vmatpush.bf16.msrb.mxu1 %v3066_v27  ;;  %v4067_v24 = vld [vmem:[%s5803_s1 + $0x184] sm:$0xf]  ;;  %v3159_v25 = vld [vmem:[%s5803_s1 + $0x188] sm:$0xf0]  ;;  %v2970_v26 = vor.u32 %v4019_v21, %v2967_v22  ;;  %v129_v29 = vperm.slane %v127_v28, 0  ;;  %vm5093_vm13 = vmpackc.low %vm4421_vm12, %vm4421_vm12 }
  0x36   :  { %570 = vmatpush.bf16.msrb.mxu2 %v3130_v23  ;;  %v3034_v23 = vor.u32 %v4035_v16, %v3031_v17  ;;  %v3162_v27 = vor.u32 %v4067_v24, %v3159_v25  ;;  %v3605_v61 = vld [vmem:[#allocation2 + $0x2e0] sm:$0xf]  ;;  %v4177_v62 = vld [vmem:[#allocation2 + $0x2ec] sm:$0xf0]  ;;  %vm785_vm12 = vsmask.f32 256 }
  0x37   :  { %589 = vmatpush.bf16.msrb.mxu3 %v3194_v39  ;;  %466 = vmatmul.bf16.gmra.mxu0 %v4825_v44  ;;  %v3733_v63 = vld [vmem:[#allocation2 + $0x3e0] sm:$0xf]  ;;  %v4209_v1 = vld [vmem:[#allocation2 + $0x3ec] sm:$0xf0] }
  0x38   :  { %485 = vmatmul.bf16.gmra.mxu1 %v4836_v50  ;;  %533 = vmatpush.bf16.msrb.mxu0 %v2994_v58  ;;  %v3734_v4 = vor.u32 %v4209_v1, %v3733_v63  ;;  %v4173_v9 = vld [vmem:[#allocation2 + $0x2cc] sm:$0xf0]  ;;  %v3717_v10 = vld [vmem:[#allocation2 + $0x3c0] sm:$0xf] }
  0x39   :  { %552 = vmatpush.bf16.msrb.mxu1 %v3058_v45  ;;  %504 = vmatmul.bf16.gmra.mxu2 %v4838_v51  ;;  %v4113_v24 = vld [vmem:[#allocation2 + $0xec] sm:$0xf0]  ;;  %v3477_v25 = vld [vmem:[#allocation2 + $0x1e0] sm:$0xf] }
  0x3a   :  { %571 = vmatpush.bf16.msrb.mxu2 %v3122_v40  ;;  %523 = vmatmul.bf16.gmra.mxu3 %v62_v56  ;;  %v4197_v63 = vld [vmem:[#allocation2 + $0x38c] sm:$0xf0] }
  0x3b   :  { %590 = vmatpush.bf16.msrb.mxu3 %v3186_v59 }
  0x3c   :  { %534 = vmatpush.bf16.msrb.mxu0 %v2986_v6  ;;  %v4933_v6 = vperm.slane %v127_v28, 1  ;;  %v3573_v28 = vld [vmem:[#allocation2 + $0x2a0] sm:$0xf] }
  0x3d   :  { %553 = vmatpush.bf16.msrb.mxu1 %v3050_v0  ;;  %v3606_v0 = vor.u32 %v4177_v62, %v3605_v61 }
  0x3e   :  { %572 = vmatpush.bf16.msrb.mxu2 %v3114_v60 }
  0x3f   :  { %591 = vmatpush.bf16.msrb.mxu3 %v3178_v7 }
  0x40   :  { %535 = vmatpush.bf16.msrb.mxu0 %v2978_v18 }
  0x41   :  { %554 = vmatpush.bf16.msrb.mxu1 %v3042_v12  ;;  %v4205_v12 = vld [vmem:[#allocation2 + $0x3cc] sm:$0xf0] }
  0x42   :  { %573 = vmatpush.bf16.msrb.mxu2 %v3106_v8  ;;  %v3589_v8 = vld [vmem:[#allocation2 + $0x2c0] sm:$0xf]  ;;  %v3718_v16 = vor.u32 %v4205_v12, %v3717_v10  ;;  %v4137_v12 = vld [vmem:[#allocation2 + $0x1ac] sm:$0xf0] }
  0x43   :  { %592 = vmatpush.bf16.msrb.mxu3 %v3170_v19  ;;  %v3590_v15 = vor.u32 %v4173_v9, %v3589_v8 }
  0x44   :  { %536 = vmatpush.bf16.msrb.mxu0 %v2970_v26 }
  0x45   :  { %555 = vmatpush.bf16.msrb.mxu1 %v3034_v23  ;;  %v3349_v23 = vld [vmem:[#allocation2 + $0xe0] sm:$0xf] }
  0x46   :  { %574 = vmatpush.bf16.msrb.mxu2 %v3098_v20  ;;  %v3350_v26 = vor.u32 %v4113_v24, %v3349_v23 }
  0x47   :  { %593 = vmatpush.bf16.msrb.mxu3 %v3162_v27  ;;  %537 = vmatmul.bf16.vlgmr.msrb.gmra.mxu0 %v4693_v48  ;;  %v4145_v27 = vld [vmem:[#allocation2 + $0x1ec] sm:$0xf0] }
  0x48   :  { %556 = vmatmul.bf16.vlgmr.msrb.gmra.mxu1 %v4704_v53  ;;  %2150 = vmatpush.bf16.msra.mxu0 %v3350_v26 }
  0x49   :  { %575 = vmatmul.bf16.vlgmr.msrb.gmra.mxu2 %v4706_v54 }
  0x4a   :  { %594 = vmatmul.bf16.vlgmr.msrb.gmra.mxu3 %v4714_v57  ;;  %2188 = vmatpush.bf16.msra.mxu2 %v3606_v0 }
  0x4b   :  { %2207 = vmatpush.bf16.msra.mxu3 %v3734_v4  ;;  %v4105_v4 = vld [vmem:[#allocation2 + $0xac] sm:$0xf0] }
  0x4e   :  { %2189 = vmatpush.bf16.msra.mxu2 %v3590_v15 }
  0x4f   :  { %2208 = vmatpush.bf16.msra.mxu3 %v3718_v16 }
  0x57   :  { %542 = vmatmul.bf16.gmra.mxu0 %v4825_v44 }
  0x58   :  { %561 = vmatmul.bf16.gmra.mxu1 %v4836_v50 }
  0x59   :  { %580 = vmatmul.bf16.gmra.mxu2 %v4838_v51 }
  0x5a   :  { %599 = vmatmul.bf16.gmra.mxu3 %v62_v56 }
  0xa4   :  { %v462_v30 = vpop.f32.mrf.mxu0 }
  0xa5   :  { %v463_v48 = vadd.f32 %v462_v30, %v129_v29  ;;  %v481_v31 = vpop.f32.mrf.mxu1 }
  0xa7   :  { %v482_v53 = vadd.f32 %v481_v31, %v463_v48 }
  0xac   :  { %v500_v32 = vpop.f32.mrf.mxu2  ;;  %v464_v57 = vpop.f32.mrf.mxu0 }
  0xad   :  { %v501_v54 = vadd.f32 %v500_v32, %v482_v53  ;;  %v519_v33 = vpop.f32.mrf.mxu3  ;;  %v483_v34 = vpop.f32.mrf.mxu1  ;;  %v465_v36 = vadd.f32 %v464_v57, %v129_v29  ;;  %v3478_v53 = vor.u32 %v4145_v27, %v3477_v25  ;;  %v3701_v32 = vld [vmem:[#allocation2 + $0x3a0] sm:$0xf] }
  0xaf   :  { %v4919_v35 = vadd.f32 %v519_v33, %v501_v54  ;;  %v484_v38 = vadd.f32 %v483_v34, %v465_v36  ;;  %v4201_v54 = vld [vmem:[#allocation2 + $0x3ac] sm:$0xf0]  ;;  %2169 = vmatpush.bf16.msra.mxu1 %v3478_v53 }
  0xb1   :  { %v3219_v37 = vmul.f32 -1.442695, %v4919_v35 }
  0xb3   :  { %4280 = vpow2.f32 %v3219_v37  ;;  %v3702_v37 = vor.u32 %v4201_v54, %v3701_v32  ;;  %v4133_v32 = vld [vmem:[#allocation2 + $0x18c] sm:$0xf0]  ;;  %v3525_v54 = vld [vmem:[#allocation2 + $0x240] sm:$0xf] }
  0xb4   :  { %v502_v39 = vpop.f32.mrf.mxu2  ;;  %v467_v42 = vpop.f32.mrf.mxu0 }
  0xb5   :  { %v503_v40 = vadd.f32 %v502_v39, %v484_v38  ;;  %v521_v41 = vpop.f32.mrf.mxu3  ;;  %v468_v43 = vadd.f32 %v467_v42, %v129_v29  ;;  %v486_v44 = vpop.f32.mrf.mxu1  ;;  %v3333_v39 = vld [vmem:[#allocation2 + $0xc0] sm:$0xf]  ;;  %2209 = vmatpush.bf16.msra.mxu3 %v3702_v37 }
  0xb7   :  { %v4922_v45 = vadd.f32 %v521_v41, %v503_v40  ;;  %v487_v49 = vadd.f32 %v486_v44, %v468_v43  ;;  %v4109_v40 = vld [vmem:[#allocation2 + $0xcc] sm:$0xf0]  ;;  %v3461_v41 = vld [vmem:[#allocation2 + $0x1c0] sm:$0xf] }
  0xb8   :  { %v4141_v43 = vld [vmem:[#allocation2 + $0x1cc] sm:$0xf0]  ;;  %v3557_v44 = vld [vmem:[#allocation2 + $0x280] sm:$0xf] }
  0xb9   :  { %v4281_v46 = vpop.eup %4280  ;;  %v3221_v47 = vmul.f32 -1.442695, %v4922_v45  ;;  %v3462_v61 = vor.u32 %v4141_v43, %v3461_v41  ;;  %v3653_v41 = vld [vmem:[#allocation2 + $0x340] sm:$0xf] }
  0xba   :  { %v4925_v50 = vadd.f32 1.0, %v4281_v46 }
  0xbb   :  { %4282 = vpow2.f32 %v3221_v47  ;;  %2170 = vmatpush.bf16.msra.mxu1 %v3462_v61  ;;  %v3285_v61 = vld [vmem:[#allocation2 + $0x60] sm:$0xf] }
  0xbc   :  { %v505_v51 = vpop.f32.mrf.mxu2  ;;  %v469_v56 = vpop.f32.mrf.mxu0  ;;  %4284 = vrcp.f32 %v4925_v50  ;;  %v648_v18 = vand.u32 2147483648, %v4925_v50  ;;  %v646_v42 = vand.u32 2147483647, %v4925_v50  ;;  %vm642_vm0 = vweird.f32 %v4925_v50 }
  0xbd   :  { %v506_v52 = vadd.f32 %v505_v51, %v487_v49  ;;  %v524_v55 = vpop.f32.mrf.mxu3  ;;  %v488_v58 = vpop.f32.mrf.mxu1  ;;  %v470_v60 = vadd.f32 %v469_v56, %v129_v29  ;;  %v4169_v29 = vld [vmem:[#allocation2 + $0x2ac] sm:$0xf0]  ;;  %v3334_v51 = vor.u32 %v4109_v40, %v3333_v39 }
  0xbe   :  { %v3574_v36 = vor.u32 %v4169_v29, %v3573_v28  ;;  %v4955_v56 = vor.u32 1.1754944e-38, %v648_v18  ;;  %v4161_v18 = vld [vmem:[#allocation2 + $0x26c] sm:$0xf0]  ;;  %v3301_v28 = vld [vmem:[#allocation2 + $0x80] sm:$0xf]  ;;  %vm4974_vm2 = vcmp.eq.f32.partialorder %v646_v42, 8.507059e+37 }
  0xbf   :  { %v4927_v59 = vadd.f32 %v524_v55, %v506_v52  ;;  %v489_v7 = vadd.f32 %v488_v58, %v470_v60  ;;  %v4165_v52 = vld [vmem:[#allocation2 + $0x28c] sm:$0xf0]  ;;  %v3685_v55 = vld [vmem:[#allocation2 + $0x380] sm:$0xf]  ;;  %2151 = vmatpush.bf16.msra.mxu0 %v3334_v51 }
  0xc0   :  { %2190 = vmatpush.bf16.msra.mxu2 %v3574_v36  ;;  %v3558_v62 = vor.u32 %v4165_v52, %v3557_v44  ;;  %v4101_v29 = vld [vmem:[#allocation2 + $0x8c] sm:$0xf0] }
  0xc1   :  { %v4283_v2 = vpop.eup %4282  ;;  %v3223_v3 = vmul.f32 -1.442695, %v4927_v59  ;;  %v4157_v40 = vld [vmem:[#allocation2 + $0x24c] sm:$0xf0] }
  0xc2   :  { %v4931_v5 = vadd.f32 1.0, %v4283_v2  ;;  %v4936_v17 = vpop.eup %4284  ;;  %v3686_v2 = vor.u32 %v4197_v63, %v3685_v55 }
  0xc3   :  { %4286 = vpow2.f32 %v3223_v3  ;;  %v638_v48 = vmul.f32 %v4936_v17, %v4925_v50  ;;  %v3317_v3 = vld [vmem:[#allocation2 + $0xa0] sm:$0xf]  ;;  %vm643_vm1 = vweird.f32 %v4936_v17 }
  0xc4   :  { %4288 = vrcp.f32 %v4931_v5  ;;  %v507_v11 = vpop.f32.mrf.mxu2  ;;  %v538_v19 = vpop.f32.mrf.mxu0  ;;  %v678_v1 = vand.u32 2147483648, %v4931_v5  ;;  %2191 = vmatpush.bf16.msra.mxu2 %v3558_v62  ;;  %v3318_v10 = vor.u32 %v4105_v4, %v3317_v3  ;;  %2210 = vmatpush.bf16.msra.mxu3 %v3686_v2  ;;  %vm4991_vm3 = vmor %vm642_vm0, %vm643_vm1  ;;  %v4097_v62 = vld [vmem:[#allocation2 + $0x6c] sm:$0xf0]  ;;  %v3413_v2 = vld [vmem:[#allocation2 + $0x160] sm:$0xf]  ;;  %vm672_vm6 = vweird.f32 %v4931_v5 }
  0xc5   :  { %v508_v13 = vadd.f32 %v507_v11, %v489_v7  ;;  %v526_v14 = vpop.f32.mrf.mxu3  ;;  %v557_v20 = vpop.f32.mrf.mxu1  ;;  %v539_v22 = vadd.f32 %v538_v19, %v4933_v6  ;;  %v639_v46 = vsub.f32 1.0, %v638_v48  ;;  %v3445_v11 = vld [vmem:[#allocation2 + $0x1a0] sm:$0xf]  ;;  %v4129_v3 = vld [vmem:[#allocation2 + $0x16c] sm:$0xf0] }
  0xc6   :  { %v3446_v16 = vor.u32 %v4137_v12, %v3445_v11  ;;  %v3669_v19 = vld [vmem:[#allocation2 + $0x360] sm:$0xf]  ;;  %2152 = vmatpush.bf16.msra.mxu0 %v3318_v10  ;;  %v4984_v37 = vor.u32 1.1754944e-38, %v678_v1  ;;  %v3286_v1 = vor.u32 %v4097_v62, %v3285_v61  ;;  %v3414_v10 = vor.u32 %v4129_v3, %v3413_v2  ;;  %v4153_v11 = vld [vmem:[#allocation2 + $0x22c] sm:$0xf0] }
  0xc7   :  { %v4939_v21 = vadd.f32 %v526_v14, %v508_v13  ;;  %v558_v34 = vadd.f32 %v557_v20, %v539_v22  ;;  %v3541_v13 = vld [vmem:[#allocation2 + $0x260] sm:$0xf]  ;;  %v640_v15 = vmul.f32 %v4936_v17, %v639_v46  ;;  %v4193_v20 = vld [vmem:[#allocation2 + $0x36c] sm:$0xf0]  ;;  %v3302_v46 = vor.u32 %v4101_v29, %v3301_v28 }
  0xc8   :  { %v3542_v25 = vor.u32 %v4161_v18, %v3541_v13  ;;  %v3670_v26 = vor.u32 %v4193_v20, %v3669_v19  ;;  %2171 = vmatpush.bf16.msra.mxu1 %v3446_v16  ;;  %v3509_v4 = vld [vmem:[#allocation2 + $0x220] sm:$0xf]  ;;  %v4185_v13 = vld [vmem:[#allocation2 + $0x32c] sm:$0xf0]  ;;  %v843_v29 = vlaneseq }
  0xc9   :  { %v4287_v30 = vpop.eup %4286  ;;  %v3225_v31 = vmul.f32 -1.442695, %v4939_v21  ;;  %v3637_v12 = vld [vmem:[#allocation2 + $0x320] sm:$0xf]  ;;  %v3510_v19 = vor.u32 %v4153_v11, %v3509_v4  ;;  %v4143_v11 = vld [vmem:[#allocation2 + $0x1e4] sm:$0xf] }
  0xca   :  { %v4945_v33 = vpop.eup %4288  ;;  %v4947_v57 = vadd.f32 1.0, %v4287_v30  ;;  %v3429_v30 = vld [vmem:[#allocation2 + $0x180] sm:$0xf]  ;;  %2192 = vmatpush.bf16.msra.mxu2 %v3542_v25  ;;  %2211 = vmatpush.bf16.msra.mxu3 %v3670_v26  ;;  %v5051_v2 = vshrl.u32 %v843_v29, 7 }
  0xcb   :  { %v4951_v38 = vmul.f32 %v4945_v33, %v4931_v5  ;;  %4290 = vpow2.f32 %v3225_v31  ;;  %v676_v31 = vand.u32 2147483647, %v4931_v5  ;;  %2153 = vmatpush.bf16.msra.mxu0 %v3302_v46  ;;  %vm673_vm5 = vweird.f32 %v4945_v33  ;;  %v3269_v26 = vld [vmem:[#allocation2 + $0x40] sm:$0xf] }
  0xcc   :  { %4292 = vrcp.f32 %v4947_v57  ;;  %v576_v47 = vpop.f32.mrf.mxu2  ;;  %v540_v60 = vpop.f32.mrf.mxu0  ;;  %v706_v42 = vand.u32 2147483647, %v4947_v57  ;;  %v708_v55 = vand.u32 2147483648, %v4947_v57  ;;  %v3397_v28 = vld [vmem:[#allocation2 + $0x140] sm:$0xf]  ;;  %vm5031_vm7 = vmor %vm672_vm6, %vm673_vm5  ;;  %vm702_vm8 = vweird.f32 %v4947_v57 }
  0xcd   :  { %v595_v49 = vpop.f32.mrf.mxu3  ;;  %v577_v58 = vadd.f32 %v576_v47, %v558_v34  ;;  %v669_v0 = vsub.f32 1.0, %v4951_v38  ;;  %v541_v8 = vadd.f32 %v540_v60, %v4933_v6  ;;  %v559_v9 = vpop.f32.mrf.mxu1  ;;  %v4981_v34 = vadd.f32 %v4936_v17, %v640_v15  ;;  %v3365_v29 = vld [vmem:[#allocation2 + $0x100] sm:$0xf] }
  0xce   :  { %v3430_v47 = vor.u32 %v4133_v32, %v3429_v30  ;;  %v3526_v60 = vor.u32 %v4157_v40, %v3525_v54  ;;  %vm4998_vm4 = vcmp.eq.f32.partialorder %v676_v31, 8.507059e+37  ;;  %v4125_v32 = vld [vmem:[#allocation2 + $0x14c] sm:$0xf0]  ;;  %v3493_v54 = vld [vmem:[#allocation2 + $0x200] sm:$0xf] }
  0xcf   :  { %v4959_v7 = vadd.f32 %v595_v49, %v577_v58  ;;  %v560_v53 = vadd.f32 %v559_v9, %v541_v8  ;;  %v670_v36 = vmul.f32 %v4945_v33, %v669_v0  ;;  %v4189_v49 = vld [vmem:[#allocation2 + $0x34c] sm:$0xf0]  ;;  %v645_v8 = vsel %vm4991_vm3, %v4936_v17, %v4981_v34  ;;  %2154 = vmatpush.bf16.msra.mxu0 %v3286_v1  ;;  %v4111_v1 = vld [vmem:[#allocation2 + $0xe4] sm:$0xf] }
  0xd0   :  { %2172 = vmatpush.bf16.msra.mxu1 %v3430_v47  ;;  %v3654_v50 = vor.u32 %v4189_v49, %v3653_v41  ;;  %2193 = vmatpush.bf16.msra.mxu2 %v3526_v60  ;;  %v3638_v17 = vor.u32 %v4185_v13, %v3637_v12  ;;  %v650_v34 = vsel %vm4974_vm2, %v4955_v56, %v645_v8  ;;  %v4149_v41 = vld [vmem:[#allocation2 + $0x20c] sm:$0xf0]  ;;  %v3479_v12 = vld [vmem:[#allocation2 + $0x1f0] sm:$0xf0] }
  0xd1   :  { %v4291_v14 = vpop.eup %4290  ;;  %v3220_v24 = vmul.f32 -1.442695, %v4959_v7  ;;  %v5009_v9 = vadd.f32 %v4945_v33, %v670_v36  ;;  %v3398_v40 = vor.u32 %v4125_v32, %v3397_v28  ;;  %v4181_v47 = vld [vmem:[#allocation2 + $0x30c] sm:$0xf0]  ;;  %v4139_v36 = vld [vmem:[#allocation2 + $0x1c4] sm:$0xf] }
  0xd2   :  { %v4963_v22 = vpop.eup %4292  ;;  %v4965_v23 = vadd.f32 1.0, %v4291_v14  ;;  %2212 = vmatpush.bf16.msra.mxu3 %v3654_v50  ;;  %v4121_v50 = vld [vmem:[#allocation2 + $0x12c] sm:$0xf0] }
  0xd3   :  { %v4971_v27 = vmul.f32 %v4963_v22, %v4947_v57  ;;  %v675_v56 = vsel %vm5031_vm7, %v4945_v33, %v5009_v9  ;;  %vm703_vm9 = vweird.f32 %v4963_v22  ;;  %v3381_v33 = vld [vmem:[#allocation2 + $0x120] sm:$0xf]  ;;  %v4085_v28 = vld [vmem:[#allocation2 + $0xc] sm:$0xf0] }
  0xd4   :  { %4294 = vrcp.f32 %v4965_v23  ;;  %v578_v38 = vpop.f32.mrf.mxu2  ;;  %v543_v44 = vpop.f32.mrf.mxu0  ;;  %v738_v15 = vand.u32 2147483648, %v4965_v23  ;;  %2173 = vmatpush.bf16.msra.mxu1 %v3414_v10  ;;  %2194 = vmatpush.bf16.msra.mxu2 %v3510_v19  ;;  %v736_v5 = vand.u32 2147483647, %v4965_v23  ;;  %v680_v3 = vsel %vm4998_vm4, %v4984_v37, %v675_v56  ;;  %v3351_v10 = vld [vmem:[#allocation2 + $0xf0] sm:$0xf0]  ;;  %vm5065_vm10 = vmor %vm702_vm8, %vm703_vm9 }
  0xd5   :  { %4296 = vpow2.f32 %v3220_v24  ;;  %v597_v39 = vpop.f32.mrf.mxu3  ;;  %v579_v43 = vadd.f32 %v578_v38, %v560_v53  ;;  %v699_v52 = vsub.f32 1.0, %v4971_v27  ;;  %v544_v58 = vadd.f32 %v543_v44, %v4933_v6  ;;  %v562_v18 = vpop.f32.mrf.mxu1  ;;  %v4093_v27 = vld [vmem:[#allocation2 + $0x4c] sm:$0xf0] }
  0xd6   :  { %v3270_v53 = vor.u32 %v4093_v27, %v3269_v26  ;;  %v5036_v38 = vor.u32 1.1754944e-38, %v708_v55  ;;  %v5043_v48 = vor.u32 1.1754944e-38, %v738_v15  ;;  %2213 = vmatpush.bf16.msra.mxu3 %v3638_v17  ;;  %v3253_v55 = vld [vmem:[#allocation2 + $0x20] sm:$0xf]  ;;  %v3382_v9 = vor.u32 %v4121_v50, %v3381_v33 }
  0xd7   :  { %v5002_v0 = vadd.f32 %v597_v39, %v579_v43  ;;  %v700_v24 = vmul.f32 %v4963_v22, %v699_v52  ;;  %v563_v25 = vadd.f32 %v562_v18, %v544_v58  ;;  %v3621_v43 = vld [vmem:[#allocation2 + $0x300] sm:$0xf]  ;;  %v3494_v52 = vor.u32 %v4149_v41, %v3493_v54  ;;  %v4089_v58 = vld [vmem:[#allocation2 + $0x2c] sm:$0xf0]  ;;  %v4107_v54 = vld [vmem:[#allocation2 + $0xc4] sm:$0xf] }
  0xd8   :  { %2155 = vmatpush.bf16.msra.mxu0 %v3270_v53  ;;  %2174 = vmatpush.bf16.msra.mxu1 %v3398_v40  ;;  %v3622_v61 = vor.u32 %v4181_v47, %v3621_v43  ;;  %v3254_v62 = vor.u32 %v4089_v58, %v3253_v55  ;;  %v3354_v18 = vor.u32 %v4111_v1, %v3351_v10  ;;  %v3237_v17 = vld [vmem:[#allocation2] sm:$0xf]  ;;  %v3463_v40 = vld [vmem:[#allocation2 + $0x1d0] sm:$0xf0]  ;;  %v852_v41 = vand.u32 15, %v5051_v2 }
  0xd9   :  { %v3222_v16 = vmul.f32 -1.442695, %v5002_v0  ;;  %v5047_v49 = vadd.f32 %v4963_v22, %v700_v24  ;;  %2195 = vmatpush.bf16.msra.mxu2 %v3494_v52  ;;  %v3482_v19 = vor.u32 %v4143_v11, %v3479_v12  ;;  %v5075_v24 = vmul.f32 %v650_v34, %v4919_v35  ;;  %v3335_v34 = vld [vmem:[#allocation2 + $0xd0] sm:$0xf0]  ;;  %v4241_v52 = vld [vmem:[#allocation2 + $0x4ec] sm:$0xf0] }
  0xda   :  { %v5012_v14 = vpop.eup %4294  ;;  %2214 = vmatpush.bf16.msra.mxu3 %v3622_v61  ;;  %v3338_v33 = vor.u32 %v4107_v54, %v3335_v34  ;;  %v3989_v61 = vld [vmem:[#allocation2 + $0x5e0] sm:$0xf]  ;;  %vm5104_vm0 = vcmp.ne.s32.totalorder %v852_v41, 0  ;;  %v4422_v11 = vmov 0   ;;  %vm732_vm1 = vweird.f32 %v4965_v23  ;;  %v4237_v54 = vld [vmem:[#allocation2 + $0x4cc] sm:$0xf0] }
  0xdb   :  { %v4297_v20 = vpop.eup %4296  ;;  %v5020_v30 = vmul.f32 %v5012_v14, %v4965_v23  ;;  %4298 = vpow2.f32 %v3222_v16  ;;  %v705_v26 = vsel %vm5065_vm10, %v4963_v22, %v5047_v49  ;;  %vm733_vm15 = vweird.f32 %v5012_v14  ;;  %vm908_vm3 = vmpackc.low %vm5104_vm0, %vm5104_vm0  ;;  %v4269_v41 = vld [vmem:[#allocation2 + $0x5cc] sm:$0xf0]  ;;  %v4099_v47 = vld [vmem:[#allocation2 + $0x84] sm:$0xf] }
  0xdc   :  { %v5022_v31 = vadd.f32 1.0, %v4297_v20  ;;  %v581_v39 = vpop.f32.mrf.mxu2  ;;  %v545_v46 = vpop.f32.mrf.mxu0  ;;  %2156 = vmatpush.bf16.msra.mxu0 %v3254_v62  ;;  %2175 = vmatpush.bf16.msra.mxu1 %v3382_v9  ;;  %v4273_v62 = vld [vmem:[#allocation2 + $0x5ec] sm:$0xf0]  ;;  %v4103_v9 = vld [vmem:[#allocation2 + $0xa4] sm:$0xf]  ;;  %v913_v12 = vsel %vm5093_vm13, 65537, %v4422_v11  ;;  %vm5168_vm9 = vmor %vm732_vm1, %vm733_vm15 }
  0xdd   :  { %v600_v44 = vpop.f32.mrf.mxu3  ;;  %v582_v51 = vadd.f32 %v581_v39, %v563_v25  ;;  %v729_v60 = vsub.f32 1.0, %v5020_v30  ;;  %v546_v8 = vadd.f32 %v545_v46, %v4933_v6  ;;  %v5078_v25 = vmul.f32 %v680_v3, %v4922_v45  ;;  %v564_v27 = vpop.f32.mrf.mxu1  ;;  %v4117_v30 = vld [vmem:[#allocation2 + $0x10c] sm:$0xf0]  ;;  %2264 = vmatpush.bf16.msrb.mxu2 %v3354_v18  ;;  %v4135_v18 = vld [vmem:[#allocation2 + $0x1a4] sm:$0xf] }
  0xde   :  { %4300 = vrcp.f32 %v5022_v31  ;;  %v661_v15 = vand.u32 2147483647, %v5022_v31  ;;  %v663_v16 = vand.u32 2147483648, %v5022_v31  ;;  %2283 = vmatpush.bf16.msrb.mxu3 %v3482_v19  ;;  %v3366_v46 = vor.u32 %v4117_v30, %v3365_v29  ;;  %v3845_v29 = vld [vmem:[#allocation2 + $0x4c0] sm:$0xf] }
  0xdf   :  { %v5056_v4 = vadd.f32 %v600_v44, %v582_v51  ;;  %v730_v53 = vmul.f32 %v5012_v14, %v729_v60  ;;  %v565_v45 = vadd.f32 %v564_v27, %v546_v8  ;;  %v3238_v44 = vor.u32 %v4085_v28, %v3237_v17  ;;  %v3861_v51 = vld [vmem:[#allocation2 + $0x4e0] sm:$0xf]  ;;  %v3447_v28 = vld [vmem:[#allocation2 + $0x1b0] sm:$0xf0]  ;;  %v4265_v10 = vld [vmem:[#allocation2 + $0x5ac] sm:$0xf0] }
  0xe0   :  { %vm5088_vm11 = vcmp.eq.f32.partialorder %v661_v15, 8.507059e+37  ;;  %v664_v55 = vor.u32 1.1754944e-38, %v663_v16  ;;  %v3466_v60 = vor.u32 %v4139_v36, %v3463_v40  ;;  %2176 = vmatpush.bf16.msra.mxu1 %v3366_v46  ;;  %v3990_v15 = vor.u32 %v4273_v62, %v3989_v61  ;;  %v3319_v16 = vld [vmem:[#allocation2 + $0xb0] sm:$0xf0]  ;;  %v3973_v40 = vld [vmem:[#allocation2 + $0x5c0] sm:$0xf] }
  0xe1   :  { %v4299_v13 = vpop.eup %4298  ;;  %v3224_v63 = vmul.f32 -1.442695, %v5056_v4  ;;  %2157 = vmatpush.bf16.msra.mxu0 %v3238_v44  ;;  %2265 = vmatpush.bf16.msrb.mxu2 %v3338_v33  ;;  %vm657_vm2 = vweird.f32 %v5022_v31  ;;  %v3322_v27 = vor.u32 %v4103_v9, %v3319_v16  ;;  %v917_v44 = vunpack.c.l.b16 %v913_v12  ;;  %v4131_v33 = vld [vmem:[#allocation2 + $0x184] sm:$0xf]  ;;  %v3829_v62 = vld [vmem:[#allocation2 + $0x4a0] sm:$0xf] }
  0xe2   :  { %v5069_v6 = vadd.f32 1.0, %v4299_v13  ;;  %2284 = vmatpush.bf16.msrb.mxu3 %v3466_v60  ;;  %v3862_v13 = vor.u32 %v4241_v52, %v3861_v51  ;;  %v3846_v46 = vor.u32 %v4237_v54, %v3845_v29  ;;  %v3303_v51 = vld [vmem:[#allocation2 + $0x90] sm:$0xf0]  ;;  %v5142_v39 = vunpack.c.l.b16 %v4422_v11  ;;  %v4095_v12 = vld [vmem:[#allocation2 + $0x64] sm:$0xf] }
  0xe3   :  { %v3431_v60 = vld [vmem:[#allocation2 + $0x190] sm:$0xf0]  ;;  %v3306_v9 = vor.u32 %v4099_v47, %v3303_v51  ;;  %v5151_v16 = vunpack.i.l.s16 %v917_v44  ;;  %vm820_vm13 = vcmask 1040384   ;;  %v4261_v51 = vld [vmem:[#allocation2 + $0x58c] sm:$0xf0]  ;;  %vm5200_vm0 = vcmp.eq.f32.partialorder %v706_v42, 8.507059e+37 }
  0xe4   :  { %v5072_v20 = vpop.eup %4300  ;;  %4302 = vrcp.f32 %v5069_v6  ;;  %v583_v32 = vpop.f32.mrf.mxu2  ;;  %v691_v1 = vand.u32 2147483647, %v5069_v6  ;;  %v693_v3 = vand.u32 2147483648, %v5069_v6  ;;  %2245 = vmatpush.bf16.msrb.mxu1 %v3990_v15  ;;  %vm687_vm7 = vweird.f32 %v5069_v6  ;;  %v4087_v23 = vld [vmem:[#allocation2 + $0x24] sm:$0xf] }
  0xe5   :  { %v653_v35 = vmul.f32 %v5072_v20, %v5022_v31  ;;  %4304 = vpow2.f32 %v3224_v63  ;;  %v584_v56 = vadd.f32 %v583_v32, %v565_v45  ;;  %vm658_vm14 = vweird.f32 %v5072_v20  ;;  %v602_v58 = vpop.f32.mrf.mxu3  ;;  %2226 = vmatpush.bf16.msrb.mxu0 %v3862_v13  ;;  %2266 = vmatpush.bf16.msrb.mxu2 %v3322_v27  ;;  %v3765_v22 = vld [vmem:[#allocation2 + $0x420] sm:$0xf]  ;;  %v4217_v49 = vld [vmem:[#allocation2 + $0x42c] sm:$0xf0] }
  0xe6   :  { %vm659_vm4 = vmor %vm657_vm2, %vm658_vm14  ;;  %v912_v31 = vsel %vm908_vm3, 65537, %v4422_v11  ;;  %v3450_v32 = vor.u32 %v4135_v18, %v3447_v28  ;;  %vm5129_vm5 = vcmp.eq.f32.partialorder %v691_v1, 8.507059e+37  ;;  %v694_v52 = vor.u32 1.1754944e-38, %v693_v3 }
  0xe7   :  { %v654_v43 = vsub.f32 1.0, %v653_v35  ;;  %v5102_v8 = vadd.f32 %v602_v58, %v584_v56  ;;  %v5121_v35 = vadd.f32 %v5012_v14, %v730_v53  ;;  %v916_v58 = vunpack.c.l.b16 %v912_v31  ;;  %v3415_v31 = vld [vmem:[#allocation2 + $0x170] sm:$0xf0] }
  0xe8   :  { %2285 = vmatpush.bf16.msrb.mxu3 %v3450_v32  ;;  %v3974_v3 = vor.u32 %v4269_v41, %v3973_v40  ;;  %v3434_v18 = vor.u32 %v4131_v33, %v3431_v60  ;;  %v3813_v32 = vld [vmem:[#allocation2 + $0x480] sm:$0xf]  ;;  %vm5211_vm2 = vcmp.eq.f32.partialorder %v736_v5, 8.507059e+37  ;;  %v3255_v5 = vld [vmem:[#allocation2 + $0x30] sm:$0xf0] }
  0xe9   :  { %v655_v50 = vmul.f32 %v5072_v20, %v654_v43  ;;  %v3226_v17 = vmul.f32 -1.442695, %v5102_v8  ;;  %2227 = vmatpush.bf16.msrb.mxu0 %v3846_v46  ;;  %v5162_v29 = vunpack.i.l.s16 %v916_v58  ;;  %2267 = vmatpush.bf16.msrb.mxu2 %v3306_v9  ;;  %v735_v46 = vsel %vm5168_vm9, %v5012_v14, %v5121_v35  ;;  %v3271_v58 = vld [vmem:[#allocation2 + $0x50] sm:$0xf0]  ;;  %v3749_v35 = vld [vmem:[#allocation2 + $0x400] sm:$0xf] }
  0xea   :  { %v5111_v19 = vpop.eup %4302  ;;  %2246 = vmatpush.bf16.msrb.mxu1 %v3974_v3  ;;  %v3797_v3 = vld [vmem:[#allocation2 + $0x460] sm:$0xf] }
  0xeb   :  { %v656_v63 = vadd.f32 %v5072_v20, %v655_v50  ;;  %v4305_v30 = vpop.eup %4304  ;;  %v683_v45 = vmul.f32 %v5111_v19, %v5069_v6  ;;  %4306 = vpow2.f32 %v3226_v17  ;;  %vm688_vm6 = vweird.f32 %v5111_v19  ;;  %v4233_v50 = vld [vmem:[#allocation2 + $0x4ac] sm:$0xf0]  ;;  %v4127_v17 = vld [vmem:[#allocation2 + $0x164] sm:$0xf] }
  0xec   :  { %v5133_v53 = vadd.f32 1.0, %v4305_v30  ;;  %vm5158_vm8 = vmor %vm687_vm7, %vm688_vm6  ;;  %v3830_v30 = vor.u32 %v4233_v50, %v3829_v62  ;;  %2286 = vmatpush.bf16.msrb.mxu3 %v3434_v18  ;;  %v3418_v41 = vor.u32 %v4127_v17, %v3415_v31  ;;  %v3399_v62 = vld [vmem:[#allocation2 + $0x150] sm:$0xf0]  ;;  %vm926_vm1 = vcmp.ne.s32.totalorder %v5162_v29, %v5142_v39  ;;  %v4119_v31 = vld [vmem:[#allocation2 + $0x124] sm:$0xf] }
  0xed   :  { %v660_v34 = vsel %vm659_vm4, %v5072_v20, %v656_v63  ;;  %v684_v56 = vsub.f32 1.0, %v683_v45  ;;  %v3287_v63 = vld [vmem:[#allocation2 + $0x70] sm:$0xf0]  ;;  %v846_v17 = vadd.s32 16, %v5051_v2  ;;  %v740_v29 = vsel %vm5211_vm2, %v5043_v48, %v735_v46  ;;  %v4213_v46 = vld [vmem:[#allocation2 + $0x40c] sm:$0xf0] }
  0xee   :  { %v665_v43 = vsel %vm5088_vm11, %v664_v55, %v660_v34  ;;  %4308 = vrcp.f32 %v5133_v53  ;;  %v5145_v55 = vunpack.c.h.b16 %v4422_v11  ;;  %v721_v1 = vand.u32 2147483647, %v5133_v53  ;;  %2228 = vmatpush.bf16.msrb.mxu0 %v3830_v30 }
  0xef   :  { %v758_v20 = vmul.f32 %v665_v43, %v4959_v7  ;;  %v685_v61 = vmul.f32 %v5111_v19, %v684_v56  ;;  %v3957_v7 = vld [vmem:[#allocation2 + $0x5a0] sm:$0xf]  ;;  %v723_v15 = vand.u32 2147483648, %v5133_v53  ;;  %v3290_v40 = vor.u32 %v4095_v12, %v3287_v63  ;;  %v4229_v43 = vld [vmem:[#allocation2 + $0x48c] sm:$0xf0] }
  0xf0   :  { %v3958_v45 = vor.u32 %v4265_v10, %v3957_v7  ;;  %v3941_v56 = vld [vmem:[#allocation2 + $0x580] sm:$0xf]  ;;  %vm717_vm11 = vweird.f32 %v5133_v53  ;;  %vm5189_vm14 = vcmp.eq.f32.partialorder %v721_v1, 8.507059e+37  ;;  %vm927_vm15 = vcmp.ne.s32.totalorder %v5151_v16, %v5145_v55  ;;  %2287 = vmatpush.bf16.msrb.mxu3 %v3418_v41  ;;  %v4225_v12 = vld [vmem:[#allocation2 + $0x46c] sm:$0xf0] }
  0xf1   :  { %v686_v13 = vadd.f32 %v5111_v19, %v685_v61  ;;  %v4307_v27 = vpop.eup %4306  ;;  %v5154_v28 = vpack.c.bf16 %v758_v20, %v5075_v24  ;;  %v4091_v20 = vld [vmem:[#allocation2 + $0x44] sm:$0xf]  ;;  %v5193_v36 = vor.u32 1.1754944e-38, %v723_v15  ;;  %2268 = vmatpush.bf16.msrb.mxu2 %v3290_v40  ;;  %v3942_v1 = vor.u32 %v4261_v51, %v3941_v56  ;;  %v3383_v41 = vld [vmem:[#allocation2 + $0x130] sm:$0xf0] }
  0xf2   :  { %v5175_v34 = vadd.f32 1.0, %v4307_v27  ;;  %2247 = vmatpush.bf16.msrb.mxu1 %v3958_v45  ;;  %v3274_v57 = vor.u32 %v4091_v20, %v3271_v58  ;;  %v4257_v27 = vld [vmem:[#allocation2 + $0x56c] sm:$0xf0]  ;;  %v3258_v40 = vor.u32 %v4087_v23, %v3255_v5  ;;  %v3386_v20 = vor.u32 %v4119_v31, %v3383_v41  ;;  %v4271_v24 = vld [vmem:[#allocation2 + $0x5e4] sm:$0xf] }
  0xf3   :  { %v690_v54 = vsel %vm5158_vm8, %v5111_v19, %v686_v13  ;;  %v3814_v19 = vor.u32 %v4229_v43, %v3813_v32  ;;  %v773_v50 = vunpack.c.l.b16 %v5154_v28  ;;  %v3925_v13 = vld [vmem:[#allocation2 + $0x560] sm:$0xf]  ;;  %v774_v18 = vunpack.c.h.b16 %v5154_v28  ;;  %v4221_v58 = vld [vmem:[#allocation2 + $0x44c] sm:$0xf0]  ;;  %vm5279_vm8 = vmand %vm820_vm13, %vm785_vm12 }
  0xf4   :  { %v5177_v44 = vpop.eup %4308  ;;  %v695_v47 = vsel %vm5129_vm5, %v694_v52, %v690_v54  ;;  %4310 = vrcp.f32 %v5175_v34  ;;  %v4123_v52 = vld [vmem:[#allocation2 + $0x144] sm:$0xf]  ;;  %v753_v7 = vand.u32 2147483648, %v5175_v34  ;;  %v751_v63 = vand.u32 2147483647, %v5175_v34 }
  0xf5   :  { %v760_v33 = vmul.f32 %v695_v47, %v5002_v0  ;;  %v713_v60 = vmul.f32 %v5177_v44, %v5133_v53  ;;  %v3402_v42 = vor.u32 %v4123_v52, %v3399_v62  ;;  %2229 = vmatpush.bf16.msrb.mxu0 %v3814_v19  ;;  %vm718_vm3 = vweird.f32 %v5177_v44  ;;  %2269 = vmatpush.bf16.msrb.mxu2 %v3274_v57  ;;  %v3781_v43 = vld [vmem:[#allocation2 + $0x440] sm:$0xf]  ;;  %v3847_v52 = vld [vmem:[#allocation2 + $0x4d0] sm:$0xf0] }
  0xf6   :  { %v5220_v32 = vor.u32 1.1754944e-38, %v753_v7  ;;  %2248 = vmatpush.bf16.msrb.mxu1 %v3942_v1  ;;  %v866_v28 = vand.u32 15, %v846_v17  ;;  %v3926_v54 = vor.u32 %v4257_v27, %v3925_v13  ;;  %vm5233_vm4 = vmor %vm717_vm11, %vm718_vm3  ;;  %vm5239_vm5 = vcmp.eq.f32.partialorder %v751_v63, 8.507059e+37  ;;  %v4115_v17 = vld [vmem:[#allocation2 + $0x104] sm:$0xf] }
  0xf7   :  { %v766_v9 = vpack.c.bf16 %v760_v33, %v5078_v25  ;;  %v714_v10 = vsub.f32 1.0, %v713_v60  ;;  %v3798_v25 = vor.u32 %v4225_v12, %v3797_v3  ;;  %2288 = vmatpush.bf16.msrb.mxu3 %v3402_v42  ;;  %v3909_v33 = vld [vmem:[#allocation2 + $0x540] sm:$0xf]  ;;  %v4253_v60 = vld [vmem:[#allocation2 + $0x54c] sm:$0xf0]  ;;  %v3782_v1 = vor.u32 %v4221_v58, %v3781_v43  ;;  %vm5295_vm11 = vmpackc.low %vm927_vm15, %vm926_vm1 }
  0xf8   :  { %vm5243_vm6 = vcmp.ne.s32.totalorder %v866_v28, 0  ;;  %v4083_v3 = vld [vmem:[#allocation2 + $0x4] sm:$0xf]  ;;  %v5248_v53 = vadd.s32 8, %v5051_v2  ;;  %v3239_v12 = vld [vmem:[#allocation2 + $0x10] sm:$0xf0]  ;;  %v710_v61 = vsel %vm5200_vm0, %v5036_v38, %v705_v26  ;;  %vm747_vm9 = vweird.f32 %v5175_v34 }
  0xf9   :  { %v775_v6 = vunpack.c.l.b16 %v766_v9  ;;  %v776_v30 = vunpack.c.h.b16 %v766_v9  ;;  %v715_v45 = vmul.f32 %v5177_v44, %v714_v10  ;;  %2230 = vmatpush.bf16.msrb.mxu0 %v3798_v25  ;;  %vm910_vm7 = vmpackc.low %vm5243_vm6, %vm5243_vm6  ;;  %2270 = vmatpush.bf16.msrb.mxu2 %v3258_v40  ;;  %v3367_v25 = vld [vmem:[#allocation2 + $0x110] sm:$0xf0]  ;;  %v4239_v28 = vld [vmem:[#allocation2 + $0x4e4] sm:$0xf]  ;;  %v3766_v48 = vor.u32 %v4217_v49, %v3765_v22 }
  0xfa   :  { %v5222_v56 = vpop.eup %4310  ;;  %2249 = vmatpush.bf16.msrb.mxu1 %v3926_v54  ;;  %v5305_v26 = vsel %vm910_vm7, 65537, %v4422_v11  ;;  %v3863_v54 = vld [vmem:[#allocation2 + $0x4f0] sm:$0xf0]  ;;  %v3370_v14 = vor.u32 %v4115_v17, %v3367_v25  ;;  %v761_v15 = vmul.f32 %v710_v61, %v4927_v59  ;;  %v4267_v7 = vld [vmem:[#allocation2 + $0x5c4] sm:$0xf]  ;;  %v859_v61 = vand.u32 15, %v5248_v53 }
  0xfb   :  { %v5224_v47 = vpack.c.b16 %v775_v6, %v773_v50  ;;  %v5226_v19 = vpack.c.b16 %v776_v30, %v774_v18  ;;  %v716_v51 = vadd.f32 %v5177_v44, %v715_v45  ;;  %v743_v62 = vmul.f32 %v5222_v56, %v5175_v34  ;;  %2289 = vmatpush.bf16.msrb.mxu3 %v3386_v20  ;;  %v3893_v30 = vld [vmem:[#allocation2 + $0x520] sm:$0xf]  ;;  %v4249_v45 = vld [vmem:[#allocation2 + $0x52c] sm:$0xf0]  ;;  %v4207_v17 = vld [vmem:[#allocation2 + $0x3e4] sm:$0xf] }
  0xfc   :  { %vm748_vm10 = vweird.f32 %v5222_v56  ;;  %v3242_v6 = vor.u32 %v4083_v3, %v3239_v12  ;;  %v4245_v34 = vld [vmem:[#allocation2 + $0x50c] sm:$0xf0]  ;;  %v763_v20 = vmul.f32 %v740_v29, %v4939_v21  ;;  %v3894_v21 = vor.u32 %v4249_v45, %v3893_v30  ;;  %v3735_v27 = vld [vmem:[#allocation2 + $0x3f0] sm:$0xf0]  ;;  %v4231_v22 = vld [vmem:[#allocation2 + $0x4a4] sm:$0xf] }
  0xfd   :  { %v720_v9 = vsel %vm5233_vm4, %v5177_v44, %v716_v51  ;;  %2196 = vmatmul.bf16.vlgmr.msra.gmra.mxu2 %v5224_v47  ;;  %2215 = vmatmul.bf16.vlgmr.msra.gmra.mxu3 %v5226_v19  ;;  %v787_v10 = vshrl.u32 %v5224_v47, 16  ;;  %v790_v57 = vshll.u32 %v5224_v47, 16  ;;  %v794_v42 = vshrl.u32 %v5226_v19, 16  ;;  %vm749_vm13 = vmor %vm747_vm9, %vm748_vm10  ;;  %v3877_v51 = vld [vmem:[#allocation2 + $0x500] sm:$0xf] }
  0xfe   :  { %v725_v13 = vsel %vm5189_vm14, %v5193_v36, %v720_v9  ;;  %v744_v18 = vsub.f32 1.0, %v743_v62  ;;  %v797_v63 = vshll.u32 %v5226_v19, 16  ;;  %v3910_v44 = vor.u32 %v4253_v60, %v3909_v33  ;;  %2231 = vmatpush.bf16.msrb.mxu0 %v3782_v1  ;;  %2271 = vmatpush.bf16.msrb.mxu2 %v3242_v6  ;;  %v4235_v60 = vld [vmem:[#allocation2 + $0x4c4] sm:$0xf]  ;;  %v3975_v1 = vld [vmem:[#allocation2 + $0x5d0] sm:$0xf0] }
  0xff   :  { %v5275_v36 = vrot.slane %v787_v10, 7  ;;  %v5285_v37 = vrot.slane %v794_v42, 7  ;;  %v762_v23 = vmul.f32 %v725_v13, %v5056_v4  ;;  %v3991_v4 = vld [vmem:[#allocation2 + $0x5f0] sm:$0xf0]  ;;  %2290 = vmatpush.bf16.msrb.mxu3 %v3370_v14  ;;  %v3750_v13 = vor.u32 %v4213_v46, %v3749_v35  ;;  %v4263_v38 = vld [vmem:[#allocation2 + $0x5a4] sm:$0xf] }
 0x100   :  { %v745_v0 = vmul.f32 %v5222_v56, %v744_v18  ;;  %2250 = vmatpush.bf16.msrb.mxu1 %v3910_v44  ;;  %v3994_v12 = vor.u32 %v4271_v24, %v3991_v4  ;;  %v4175_v18 = vld [vmem:[#allocation2 + $0x2e4] sm:$0xf]  ;;  %v3607_v44 = vld [vmem:[#allocation2 + $0x2f0] sm:$0xf0]  ;;  %v918_v25 = vunpack.c.l.b16 %v5305_v26  ;;  %v3850_v50 = vor.u32 %v4235_v60, %v3847_v52 }
 0x101   :  { %v792_v5 = vor.u32 %v790_v57, %v5275_v36  ;;  %v799_v31 = vor.u32 %v797_v63, %v5285_v37  ;;  %v767_v3 = vpack.c.bf16 %v762_v23, %v761_v15  ;;  %v3959_v6 = vld [vmem:[#allocation2 + $0x5b0] sm:$0xf0]  ;;  %vm5349_vm14 = vcmp.ne.s32.totalorder %v859_v61, 15  ;;  %v4171_v29 = vld [vmem:[#allocation2 + $0x2c4] sm:$0xf] }
 0x102   :  { %v746_v40 = vadd.f32 %v5222_v56, %v745_v0  ;;  %2232 = vmatpush.bf16.msrb.mxu0 %v3766_v48  ;;  %v3978_v0 = vor.u32 %v4267_v7, %v3975_v1  ;;  %v3610_v26 = vor.u32 %v4175_v18, %v3607_v44  ;;  %v3738_v45 = vor.u32 %v4207_v17, %v3735_v27  ;;  %v3591_v23 = vld [vmem:[#allocation2 + $0x2d0] sm:$0xf0]  ;;  %vm953_vm0 = vmpackc.low %vm5349_vm14, %vm5349_vm14  ;;  %v4227_v4 = vld [vmem:[#allocation2 + $0x484] sm:$0xf] }
 0x103   :  { %v822_v41 = vsel %vm5279_vm8, 0, %v792_v5  ;;  %v823_v43 = vsel %vm5279_vm8, 0, %v799_v31  ;;  %2359 = vmatpush.bf16.msra.mxu3 %v3994_v12  ;;  %v777_v5 = vunpack.c.l.b16 %v767_v3  ;;  %v778_v31 = vunpack.c.h.b16 %v767_v3  ;;  %v3719_v24 = vld [vmem:[#allocation2 + $0x3d0] sm:$0xf0]  ;;  %v4167_v52 = vld [vmem:[#allocation2 + $0x2a4] sm:$0xf] }
 0x104   :  { %v750_v58 = vsel %vm749_vm13, %v5222_v56, %v746_v40  ;;  %v5335_v33 = vsel %vm5295_vm11, %v822_v41, 0  ;;  %v5339_v59 = vsel %vm5295_vm11, %v823_v43, 0  ;;  %v3866_v56 = vor.u32 %v4239_v28, %v3863_v54  ;;  %2251 = vmatpush.bf16.msrb.mxu1 %v3894_v21  ;;  %v4203_v54 = vld [vmem:[#allocation2 + $0x3c4] sm:$0xf]  ;;  %v3815_v41 = vld [vmem:[#allocation2 + $0x490] sm:$0xf0] }
 0x105   :  { %v755_v62 = vsel %vm5239_vm5, %v5220_v32, %v750_v58  ;;  %2158 = vmatmul.bf16.vlgmr.msra.gmra.mxu0 %v5335_v33  ;;  %2177 = vmatmul.bf16.vlgmr.msra.gmra.mxu1 %v5339_v59  ;;  %v3878_v32 = vor.u32 %v4245_v34, %v3877_v51  ;;  %v3229_v40 = vunpack.i.l.s16 %v918_v25  ;;  %v3962_v48 = vor.u32 %v4263_v38, %v3959_v6  ;;  %v4259_v43 = vld [vmem:[#allocation2 + $0x584] sm:$0xf]  ;;  %v3943_v51 = vld [vmem:[#allocation2 + $0x590] sm:$0xf0] }
 0x106   :  { %v764_v9 = vmul.f32 %v755_v62, %v5102_v8  ;;  %2340 = vmatpush.bf16.msra.mxu2 %v3866_v56  ;;  %2233 = vmatpush.bf16.msrb.mxu0 %v3750_v13  ;;  %v3831_v8 = vld [vmem:[#allocation2 + $0x4b0] sm:$0xf0]  ;;  %v3594_v15 = vor.u32 %v4171_v29, %v3591_v23  ;;  %v3722_v34 = vor.u32 %v4203_v54, %v3719_v24  ;;  %v957_v60 = vsel %vm953_vm0, 65537, %v4422_v11  ;;  %v4199_v7 = vld [vmem:[#allocation2 + $0x3a4] sm:$0xf] }
 0x107   :  { %v3834_v14 = vor.u32 %v4231_v22, %v3831_v8  ;;  %2360 = vmatpush.bf16.msra.mxu3 %v3978_v0  ;;  %vm933_vm1 = vcmp.ne.s32.totalorder %v3229_v40, %v5142_v39  ;;  %v3818_v62 = vor.u32 %v4227_v4, %v3815_v41  ;;  %v3946_v21 = vor.u32 %v4259_v43, %v3943_v51  ;;  %v3575_v56 = vld [vmem:[#allocation2 + $0x2b0] sm:$0xf0]  ;;  %v4223_v18 = vld [vmem:[#allocation2 + $0x464] sm:$0xf] }
 0x108   :  { %v768_v49 = vpack.c.bf16 %v764_v9, %v763_v20  ;;  %2252 = vmatpush.bf16.msrb.mxu1 %v3878_v32  ;;  %v3703_v1 = vld [vmem:[#allocation2 + $0x3b0] sm:$0xf0]  ;;  %v3578_v44 = vor.u32 %v4167_v52, %v3575_v56  ;;  %v4255_v32 = vld [vmem:[#allocation2 + $0x564] sm:$0xf]  ;;  %vm5382_vm2 = vmpackc.low %vm927_vm15, %vm933_vm1  ;;  %v961_v23 = vunpack.c.l.b16 %v957_v60  ;;  %v825_v52 = vrot.slane %v790_v57, 1 }
 0x109   :  { %v3706_v17 = vor.u32 %v4199_v7, %v3703_v1  ;;  %v3799_v25 = vld [vmem:[#allocation2 + $0x470] sm:$0xf0]  ;;  %v4195_v6 = vld [vmem:[#allocation2 + $0x384] sm:$0xf]  ;;  %v829_v7 = vrot.slane %v797_v63, 1  ;;  %vm839_vm7 = vcmask 1047552  }
 0x10a   :  { %v779_v53 = vunpack.c.l.b16 %v768_v49  ;;  %v780_v28 = vunpack.c.h.b16 %v768_v49  ;;  %2341 = vmatpush.bf16.msra.mxu2 %v3850_v50  ;;  %2302 = vmatpush.bf16.msra.mxu0 %v3610_v26  ;;  %v3927_v50 = vld [vmem:[#allocation2 + $0x570] sm:$0xf0]  ;;  %v4163_v49 = vld [vmem:[#allocation2 + $0x284] sm:$0xf]  ;;  %v3802_v8 = vor.u32 %v4223_v18, %v3799_v25  ;;  %v847_v26 = vadd.s32 24, %v5051_v2 }
 0x10b   :  { %2361 = vmatpush.bf16.msra.mxu3 %v3962_v48  ;;  %v3559_v0 = vld [vmem:[#allocation2 + $0x290] sm:$0xf0]  ;;  %v3930_v38 = vor.u32 %v4255_v32, %v3927_v50  ;;  %v4191_v4 = vld [vmem:[#allocation2 + $0x364] sm:$0xf]  ;;  %v3232_v41 = vunpack.i.l.s16 %v961_v23  ;;  %vm824_vm4 = vsmask.f32 7424 }
 0x10c   :  { %v5356_v35 = vpack.c.b16 %v779_v53, %v777_v5  ;;  %v5358_v46 = vpack.c.b16 %v780_v28, %v778_v31  ;;  %2321 = vmatpush.bf16.msra.mxu1 %v3738_v45  ;;  %v3687_v30 = vld [vmem:[#allocation2 + $0x390] sm:$0xf0]  ;;  %v3562_v5 = vor.u32 %v4163_v49, %v3559_v0  ;;  %v4219_v31 = vld [vmem:[#allocation2 + $0x444] sm:$0xf]  ;;  %v873_v48 = vand.u32 15, %v847_v26  ;;  %vm5455_vm8 = vmand %vm839_vm7, %vm824_vm4 }
 0x10d   :  { %v3783_v53 = vld [vmem:[#allocation2 + $0x450] sm:$0xf0]  ;;  %v3690_v2 = vor.u32 %v4195_v6, %v3687_v30  ;;  %vm971_vm3 = vcmp.ne.s32.totalorder %v3232_v41, %v5145_v55  ;;  %v4211_v32 = vld [vmem:[#allocation2 + $0x404] sm:$0xf]  ;;  %v826_v6 = vor.u32 %v825_v52, %v787_v10 }
 0x10e   :  { %2201 = vmatmul.bf16.gmra.mxu2 %v5356_v35  ;;  %2220 = vmatmul.bf16.gmra.mxu3 %v5358_v46  ;;  %v801_v20 = vshrl.u32 %v5356_v35, 16  ;;  %v809_v58 = vshrl.u32 %v5358_v46, 16  ;;  %v804_v9 = vshll.u32 %v5356_v35, 16  ;;  %v812_v13 = vshll.u32 %v5358_v46, 16  ;;  %v3911_v24 = vld [vmem:[#allocation2 + $0x550] sm:$0xf0] }
 0x10f   :  { %2342 = vmatpush.bf16.msra.mxu2 %v3834_v14  ;;  %2303 = vmatpush.bf16.msra.mxu0 %v3594_v15  ;;  %v3543_v40 = vld [vmem:[#allocation2 + $0x270] sm:$0xf0]  ;;  %v3786_v14 = vor.u32 %v4219_v31, %v3783_v53  ;;  %vm5411_vm15 = vcmp.ne.s32.totalorder %v873_v48, 15  ;;  %v4183_v0 = vld [vmem:[#allocation2 + $0x324] sm:$0xf] }
 0x110   :  { %v803_v3 = vrot.slane %v801_v20, 7  ;;  %v811_v12 = vrot.slane %v809_v58, 7  ;;  %2322 = vmatpush.bf16.msra.mxu1 %v3722_v34  ;;  %2362 = vmatpush.bf16.msra.mxu3 %v3946_v21  ;;  %v3671_v15 = vld [vmem:[#allocation2 + $0x370] sm:$0xf0]  ;;  %v4215_v34 = vld [vmem:[#allocation2 + $0x424] sm:$0xf]  ;;  %vm955_vm6 = vmpackc.low %vm5411_vm15, %vm5411_vm15 }
 0x111   :  { %v3767_v60 = vld [vmem:[#allocation2 + $0x430] sm:$0xf0]  ;;  %v4247_v21 = vld [vmem:[#allocation2 + $0x524] sm:$0xf]  ;;  %v5405_v1 = vrot.slane %v804_v9, 1  ;;  %v5409_v18 = vrot.slane %v812_v13, 1 }
 0x112   :  { %v806_v61 = vor.u32 %v804_v9, %v803_v3  ;;  %v814_v22 = vor.u32 %v812_v13, %v811_v12  ;;  %v3895_v56 = vld [vmem:[#allocation2 + $0x530] sm:$0xf0]  ;;  %v4155_v3 = vld [vmem:[#allocation2 + $0x244] sm:$0xf]  ;;  %v3770_v57 = vor.u32 %v4215_v34, %v3767_v60  ;;  %v4210_v31 = vld [vmem:[#allocation2 + $0x3f4] sm:$0xf0] }
 0x113   :  { %2343 = vmatpush.bf16.msra.mxu2 %v3818_v62  ;;  %2304 = vmatpush.bf16.msra.mxu0 %v3578_v44  ;;  %v3674_v62 = vor.u32 %v4191_v4, %v3671_v15  ;;  %v3527_v12 = vld [vmem:[#allocation2 + $0x250] sm:$0xf0]  ;;  %v3898_v63 = vor.u32 %v4247_v21, %v3895_v56  ;;  %v3597_v48 = vld [vmem:[#allocation2 + $0x2c8] sm:$0xf]  ;;  %v4174_v4 = vld [vmem:[#allocation2 + $0x2d4] sm:$0xf0] }
 0x114   :  { %v807_v45 = vsel %vm785_vm12, %v5275_v36, %v806_v61  ;;  %v815_v29 = vsel %vm785_vm12, %v5285_v37, %v814_v22  ;;  %2323 = vmatpush.bf16.msra.mxu1 %v3706_v17  ;;  %v4251_v36 = vld [vmem:[#allocation2 + $0x544] sm:$0xf]  ;;  %2363 = vmatpush.bf16.msra.mxu3 %v3930_v38  ;;  %vm970_vm12 = vcmp.ne.s32.totalorder %v5151_v16, %v5142_v39  ;;  %v3655_v25 = vld [vmem:[#allocation2 + $0x350] sm:$0xf0]  ;;  %v3613_v38 = vld [vmem:[#allocation2 + $0x2e8] sm:$0xf] }
 0x115   :  { %v5393_v28 = vsel %vm5382_vm2, %v807_v45, 0  ;;  %v5397_v54 = vsel %vm5382_vm2, %v815_v29, 0  ;;  %v4159_v37 = vld [vmem:[#allocation2 + $0x264] sm:$0xf]  ;;  %v3914_v43 = vor.u32 %v4251_v36, %v3911_v24  ;;  %v3530_v9 = vor.u32 %v4155_v3, %v3527_v12  ;;  %v3751_v50 = vld [vmem:[#allocation2 + $0x410] sm:$0xf0]  ;;  %vm5425_vm5 = vmpackc.low %vm971_vm3, %vm970_vm12 }
 0x116   :  { %2163 = vmatmul.bf16.gmra.mxu0 %v5393_v28  ;;  %2182 = vmatmul.bf16.gmra.mxu1 %v5397_v54  ;;  %v3546_v51 = vor.u32 %v4159_v37, %v3543_v40  ;;  %v4187_v17 = vld [vmem:[#allocation2 + $0x344] sm:$0xf]  ;;  %v3879_v27 = vld [vmem:[#allocation2 + $0x510] sm:$0xf0]  ;;  %v3754_v26 = vor.u32 %v4211_v32, %v3751_v50  ;;  %v4178_v45 = vld [vmem:[#allocation2 + $0x2f4] sm:$0xf0]  ;;  %v830_v29 = vor.u32 %v829_v7, %v794_v42 }
 0x117   :  { %2344 = vmatpush.bf16.msra.mxu2 %v3802_v8  ;;  %2305 = vmatpush.bf16.msra.mxu0 %v3562_v5  ;;  %v4243_v61 = vld [vmem:[#allocation2 + $0x504] sm:$0xf]  ;;  %v3658_v13 = vor.u32 %v4187_v17, %v3655_v25  ;;  %v3511_v49 = vld [vmem:[#allocation2 + $0x230] sm:$0xf0]  ;;  %v3741_v5 = vld [vmem:[#allocation2 + $0x3e8] sm:$0xf]  ;;  %v828_v40 = vsel %vm824_vm4, %v826_v6, %v5405_v1  ;;  %v3598_v21 = vor.u32 %v4174_v4, %v3597_v48 }
 0x118   :  { %2324 = vmatpush.bf16.msra.mxu1 %v3690_v2  ;;  %2364 = vmatpush.bf16.msra.mxu3 %v3914_v43  ;;  %v4151_v22 = vld [vmem:[#allocation2 + $0x224] sm:$0xf]  ;;  %v3639_v8 = vld [vmem:[#allocation2 + $0x330] sm:$0xf0]  ;;  %v3882_v10 = vor.u32 %v4243_v61, %v3879_v27  ;;  %v3614_v2 = vor.u32 %v4178_v45, %v3613_v38  ;;  %v832_v42 = vsel %vm824_vm4, %v830_v29, %v5409_v18  ;;  %v959_v41 = vsel %vm955_vm6, 65537, %v4422_v11 }
 0x119   :  { %v3514_v23 = vor.u32 %v4151_v22, %v3511_v49  ;;  %v3642_v53 = vor.u32 %v4183_v0, %v3639_v8  ;;  %v4147_v36 = vld [vmem:[#allocation2 + $0x204] sm:$0xf]  ;;  %v3495_v24 = vld [vmem:[#allocation2 + $0x210] sm:$0xf0]  ;;  %v3742_v15 = vor.u32 %v4210_v31, %v3741_v5  ;;  %v4206_v34 = vld [vmem:[#allocation2 + $0x3d4] sm:$0xf0]  ;;  %v963_v3 = vunpack.c.l.b16 %v959_v41 }
 0x11a   :  { %v4179_v37 = vld [vmem:[#allocation2 + $0x304] sm:$0xf]  ;;  %v3498_v43 = vor.u32 %v4147_v36, %v3495_v24  ;;  %v5446_v60 = vsel %vm5425_vm5, %v828_v40, 0  ;;  %v5450_v52 = vsel %vm5425_vm5, %v832_v42, 0  ;;  %v3357_v11 = vld [vmem:[#allocation2 + $0xe8] sm:$0xf]  ;;  %v834_v5 = vor.u32 %v5409_v18, %v809_v58 }
 0x11b   :  { %2345 = vmatpush.bf16.msra.mxu2 %v3786_v14  ;;  %2306 = vmatpush.bf16.msra.mxu0 %v3546_v51  ;;  %v3623_v14 = vld [vmem:[#allocation2 + $0x310] sm:$0xf0]  ;;  %v3725_v51 = vld [vmem:[#allocation2 + $0x3c8] sm:$0xf]  ;;  %v4114_v56 = vld [vmem:[#allocation2 + $0xf4] sm:$0xf0]  ;;  %v3234_v8 = vunpack.i.l.s16 %v963_v3 }
 0x11c   :  { %2325 = vmatpush.bf16.msra.mxu1 %v3674_v62  ;;  %2365 = vmatpush.bf16.msra.mxu3 %v3898_v63  ;;  %v3626_v62 = vor.u32 %v4179_v37, %v3623_v14  ;;  %v3485_v7 = vld [vmem:[#allocation2 + $0x1e8] sm:$0xf]  ;;  %v3726_v12 = vor.u32 %v4206_v34, %v3725_v51  ;;  %v3358_v44 = vor.u32 %v4114_v56, %v3357_v11  ;;  %v4170_v25 = vld [vmem:[#allocation2 + $0x2b4] sm:$0xf0] }
 0x11d   :  { %v3581_v17 = vld [vmem:[#allocation2 + $0x2a8] sm:$0xf]  ;;  %v4202_v32 = vld [vmem:[#allocation2 + $0x3b4] sm:$0xf0]  ;;  %vm978_vm10 = vcmp.ne.s32.totalorder %v3234_v8, %v5145_v55 }
 0x11e   :  { %2272 = vmatmul.bf16.vlgmr.msrb.gmra.mxu2 %v5335_v33  ;;  %2291 = vmatmul.bf16.vlgmr.msrb.gmra.mxu3 %v5339_v59  ;;  %v3341_v50 = vld [vmem:[#allocation2 + $0xc8] sm:$0xf]  ;;  %v3582_v61 = vor.u32 %v4170_v25, %v3581_v17  ;;  %v4142_v22 = vld [vmem:[#allocation2 + $0x1d4] sm:$0xf0]  ;;  %vm979_vm11 = vmpackc.low %vm978_vm10, %vm970_vm12 }
 0x11f   :  { %2346 = vmatpush.bf16.msra.mxu2 %v3770_v57  ;;  %2307 = vmatpush.bf16.msra.mxu0 %v3530_v9  ;;  %v4146_v57 = vld [vmem:[#allocation2 + $0x1f4] sm:$0xf0]  ;;  %v3709_v9 = vld [vmem:[#allocation2 + $0x3a8] sm:$0xf] }
 0x120   :  { %2326 = vmatpush.bf16.msra.mxu1 %v3658_v13  ;;  %2366 = vmatpush.bf16.msra.mxu3 %v3882_v10  ;;  %v3486_v63 = vor.u32 %v4146_v57, %v3485_v7  ;;  %v4110_v13 = vld [vmem:[#allocation2 + $0xd4] sm:$0xf0]  ;;  %v3469_v27 = vld [vmem:[#allocation2 + $0x1c8] sm:$0xf]  ;;  %v3710_v38 = vor.u32 %v4202_v32, %v3709_v9 }
 0x121   :  { %v3565_v49 = vld [vmem:[#allocation2 + $0x288] sm:$0xf]  ;;  %v4166_v0 = vld [vmem:[#allocation2 + $0x294] sm:$0xf0]  ;;  %v3342_v6 = vor.u32 %v4110_v13, %v3341_v50  ;;  %v3470_v30 = vor.u32 %v4142_v22, %v3469_v27 }
 0x122   :  { %v4198_v45 = vld [vmem:[#allocation2 + $0x394] sm:$0xf0]  ;;  %v3566_v10 = vor.u32 %v4166_v0, %v3565_v49  ;;  %v3325_v31 = vld [vmem:[#allocation2 + $0xa8] sm:$0xf] }
 0x123   :  { %2347 = vmatpush.bf16.msra.mxu2 %v3754_v26  ;;  %2308 = vmatpush.bf16.msra.mxu0 %v3514_v23  ;;  %v3693_v26 = vld [vmem:[#allocation2 + $0x388] sm:$0xf]  ;;  %v833_v23 = vor.u32 %v5405_v1, %v801_v20  ;;  %v4138_v37 = vld [vmem:[#allocation2 + $0x1b4] sm:$0xf0] }
 0x124   :  { %2327 = vmatpush.bf16.msra.mxu1 %v3642_v53  ;;  %2435 = vmatpush.bf16.msrb.mxu3 %v3742_v15  ;;  %v4106_v53 = vld [vmem:[#allocation2 + $0xb4] sm:$0xf0]  ;;  %v3694_v36 = vor.u32 %v4198_v45, %v3693_v26  ;;  %v3549_v40 = vld [vmem:[#allocation2 + $0x268] sm:$0xf] }
 0x125   :  { %v3326_v24 = vor.u32 %v4106_v53, %v3325_v31  ;;  %v4162_v42 = vld [vmem:[#allocation2 + $0x274] sm:$0xf0]  ;;  %v3677_v48 = vld [vmem:[#allocation2 + $0x368] sm:$0xf]  ;;  %v841_v41 = vsel %vm5455_vm8, %v833_v23, 0 }
 0x126   :  { %2234 = vmatmul.bf16.vlgmr.msrb.gmra.mxu0 %v5446_v60  ;;  %2253 = vmatmul.bf16.vlgmr.msrb.gmra.mxu1 %v5450_v52  ;;  %v4194_v20 = vld [vmem:[#allocation2 + $0x374] sm:$0xf0]  ;;  %v3309_v1 = vld [vmem:[#allocation2 + $0x88] sm:$0xf]  ;;  %v3550_v4 = vor.u32 %v4162_v42, %v3549_v40  ;;  %v5477_v3 = vsel %vm979_vm11, %v841_v41, 0 }
 0x127   :  { %2416 = vmatpush.bf16.msrb.mxu2 %v3614_v2  ;;  %2309 = vmatpush.bf16.msra.mxu0 %v3498_v43  ;;  %v3453_v2 = vld [vmem:[#allocation2 + $0x1a8] sm:$0xf]  ;;  %v4102_v58 = vld [vmem:[#allocation2 + $0x94] sm:$0xf0]  ;;  %v842_v43 = vsel %vm5455_vm8, %v834_v5, 0 }
 0x128   :  { %2328 = vmatpush.bf16.msra.mxu1 %v3626_v62  ;;  %2436 = vmatpush.bf16.msrb.mxu3 %v3726_v12  ;;  %v3454_v14 = vor.u32 %v4138_v37, %v3453_v2  ;;  %v3437_v18 = vld [vmem:[#allocation2 + $0x188] sm:$0xf]  ;;  %v4134_v15 = vld [vmem:[#allocation2 + $0x194] sm:$0xf0]  ;;  %v3678_v62 = vor.u32 %v4194_v20, %v3677_v48  ;;  %v5479_v12 = vsel %vm979_vm11, %v842_v43, 0 }
 0x129   :  { %v3533_v51 = vld [vmem:[#allocation2 + $0x248] sm:$0xf]  ;;  %v4158_v34 = vld [vmem:[#allocation2 + $0x254] sm:$0xf0]  ;;  %v3438_v11 = vor.u32 %v4134_v15, %v3437_v18  ;;  %v4112_v2 = vld [vmem:[#allocation2 + $0xec] sm:$0xf] }
 0x12a   :  { %v3661_v56 = vld [vmem:[#allocation2 + $0x348] sm:$0xf]  ;;  %v4190_v7 = vld [vmem:[#allocation2 + $0x354] sm:$0xf0]  ;;  %v3534_v39 = vor.u32 %v4158_v34, %v3533_v51  ;;  %v3359_v37 = vld [vmem:[#allocation2 + $0xf8] sm:$0xf0] }
 0x12b   :  { %2417 = vmatpush.bf16.msrb.mxu2 %v3598_v21  ;;  %2378 = vmatpush.bf16.msrb.mxu0 %v3358_v44  ;;  %v3310_v21 = vor.u32 %v4102_v58, %v3309_v1  ;;  %v3293_v55 = vld [vmem:[#allocation2 + $0x68] sm:$0xf]  ;;  %v4098_v16 = vld [vmem:[#allocation2 + $0x74] sm:$0xf0]  ;;  %v3662_v57 = vor.u32 %v4190_v7, %v3661_v56  ;;  %v4144_v40 = vld [vmem:[#allocation2 + $0x1ec] sm:$0xf]  ;;  %v3362_v48 = vor.u32 %v4112_v2, %v3359_v37 }
 0x12c   :  { %2397 = vmatpush.bf16.msrb.mxu1 %v3486_v63  ;;  %2437 = vmatpush.bf16.msrb.mxu3 %v3710_v38  ;;  %v3421_v44 = vld [vmem:[#allocation2 + $0x168] sm:$0xf]  ;;  %v3294_v17 = vor.u32 %v4098_v16, %v3293_v55  ;;  %v4130_v25 = vld [vmem:[#allocation2 + $0x174] sm:$0xf0]  ;;  %v3487_v42 = vld [vmem:[#allocation2 + $0x1f8] sm:$0xf0] }
 0x12d   :  { %v3517_v63 = vld [vmem:[#allocation2 + $0x228] sm:$0xf]  ;;  %v4154_v9 = vld [vmem:[#allocation2 + $0x234] sm:$0xf0]  ;;  %v3422_v32 = vor.u32 %v4130_v25, %v3421_v44  ;;  %v3490_v20 = vor.u32 %v4144_v40, %v3487_v42  ;;  %v4108_v15 = vld [vmem:[#allocation2 + $0xcc] sm:$0xf] }
 0x12e   :  { %2277 = vmatmul.bf16.gmra.mxu2 %v5393_v28  ;;  %2296 = vmatmul.bf16.gmra.mxu3 %v5397_v54  ;;  %v3645_v50 = vld [vmem:[#allocation2 + $0x328] sm:$0xf]  ;;  %v3518_v27 = vor.u32 %v4154_v9, %v3517_v63  ;;  %v4094_v22 = vld [vmem:[#allocation2 + $0x54] sm:$0xf0]  ;;  %v3343_v41 = vld [vmem:[#allocation2 + $0xd8] sm:$0xf0] }
 0x12f   :  { %2418 = vmatpush.bf16.msrb.mxu2 %v3582_v61  ;;  %2379 = vmatpush.bf16.msrb.mxu0 %v3342_v6  ;;  %v4186_v61 = vld [vmem:[#allocation2 + $0x334] sm:$0xf0]  ;;  %v3277_v13 = vld [vmem:[#allocation2 + $0x48] sm:$0xf]  ;;  %v4140_v43 = vld [vmem:[#allocation2 + $0x1cc] sm:$0xf] }
 0x130   :  { %2398 = vmatpush.bf16.msrb.mxu1 %v3470_v30  ;;  %2438 = vmatpush.bf16.msrb.mxu3 %v3694_v36  ;;  %v3405_v49 = vld [vmem:[#allocation2 + $0x148] sm:$0xf]  ;;  %v4126_v0 = vld [vmem:[#allocation2 + $0x154] sm:$0xf0]  ;;  %v3646_v6 = vor.u32 %v4186_v61, %v3645_v50  ;;  %v3278_v30 = vor.u32 %v4094_v22, %v3277_v13  ;;  %v3471_v51 = vld [vmem:[#allocation2 + $0x1d8] sm:$0xf0] }
 0x131   :  { %v3501_v8 = vld [vmem:[#allocation2 + $0x208] sm:$0xf]  ;;  %v4150_v38 = vld [vmem:[#allocation2 + $0x214] sm:$0xf0]  ;;  %v3406_v45 = vor.u32 %v4126_v0, %v3405_v49  ;;  %v4104_v44 = vld [vmem:[#allocation2 + $0xac] sm:$0xf] }
 0x132   :  { %v3629_v26 = vld [vmem:[#allocation2 + $0x308] sm:$0xf]  ;;  %v4182_v29 = vld [vmem:[#allocation2 + $0x314] sm:$0xf0]  ;;  %v3502_v5 = vor.u32 %v4150_v38, %v3501_v8  ;;  %v4136_v63 = vld [vmem:[#allocation2 + $0x1ac] sm:$0xf] }
 0x133   :  { %2419 = vmatpush.bf16.msrb.mxu2 %v3566_v10  ;;  %2380 = vmatpush.bf16.msrb.mxu0 %v3326_v24  ;;  %v3261_v10 = vld [vmem:[#allocation2 + $0x28] sm:$0xf]  ;;  %v4090_v23 = vld [vmem:[#allocation2 + $0x34] sm:$0xf0]  ;;  %v3630_v36 = vor.u32 %v4182_v29, %v3629_v26  ;;  %v3455_v9 = vld [vmem:[#allocation2 + $0x1b8] sm:$0xf0] }
 0x134   :  { %2399 = vmatpush.bf16.msrb.mxu1 %v3454_v14  ;;  %2439 = vmatpush.bf16.msrb.mxu3 %v3678_v62  ;;  %v3389_v31 = vld [vmem:[#allocation2 + $0x128] sm:$0xf]  ;;  %v4122_v53 = vld [vmem:[#allocation2 + $0x134] sm:$0xf0]  ;;  %v3262_v24 = vor.u32 %v4090_v23, %v3261_v10  ;;  %v3346_v62 = vor.u32 %v4108_v15, %v3343_v41  ;;  %v3458_v50 = vor.u32 %v4136_v63, %v3455_v9  ;;  %v4100_v49 = vld [vmem:[#allocation2 + $0x8c] sm:$0xf] }
 0x135   :  { %v3390_v14 = vor.u32 %v4122_v53, %v3389_v31  ;;  %v3245_v1 = vld [vmem:[#allocation2 + $0x8] sm:$0xf]  ;;  %v4118_v18 = vld [vmem:[#allocation2 + $0x114] sm:$0xf0]  ;;  %v3311_v0 = vld [vmem:[#allocation2 + $0x98] sm:$0xf0] }
 0x136   :  { %2239 = vmatmul.bf16.gmra.mxu0 %v5477_v3  ;;  %2258 = vmatmul.bf16.gmra.mxu1 %v5479_v12  ;;  %v3373_v58 = vld [vmem:[#allocation2 + $0x108] sm:$0xf]  ;;  %v4242_v7 = vld [vmem:[#allocation2 + $0x4f4] sm:$0xf0]  ;;  %v4132_v8 = vld [vmem:[#allocation2 + $0x18c] sm:$0xf] }
 0x137   :  { %2420 = vmatpush.bf16.msrb.mxu2 %v3550_v4  ;;  %2381 = vmatpush.bf16.msrb.mxu0 %v3310_v21  ;;  %v4086_v4 = vld [vmem:[#allocation2 + $0x14] sm:$0xf0]  ;;  %v3374_v21 = vor.u32 %v4118_v18, %v3373_v58  ;;  %v3869_v56 = vld [vmem:[#allocation2 + $0x4e8] sm:$0xf]  ;;  %v4096_v31 = vld [vmem:[#allocation2 + $0x6c] sm:$0xf] }
 0x138   :  { %2400 = vmatpush.bf16.msrb.mxu1 %v3438_v11  ;;  %2440 = vmatpush.bf16.msrb.mxu3 %v3662_v57  ;;  %v3246_v34 = vor.u32 %v4086_v4, %v3245_v1  ;;  %v3474_v11 = vor.u32 %v4140_v43, %v3471_v51  ;;  %v3870_v55 = vor.u32 %v4242_v7, %v3869_v56  ;;  %v4274_v16 = vld [vmem:[#allocation2 + $0x5f4] sm:$0xf0]  ;;  %v3327_v57 = vld [vmem:[#allocation2 + $0xb8] sm:$0xf0]  ;;  %v3981_v13 = vld [vmem:[#allocation2 + $0x5c8] sm:$0xf] }
 0x139   :  { %v3330_v25 = vor.u32 %v4104_v44, %v3327_v57  ;;  %v4238_v61 = vld [vmem:[#allocation2 + $0x4d4] sm:$0xf0]  ;;  %v3965_v10 = vld [vmem:[#allocation2 + $0x5a8] sm:$0xf]  ;;  %v3295_v53 = vld [vmem:[#allocation2 + $0x78] sm:$0xf0] }
 0x13a   :  { %v4234_v29 = vld [vmem:[#allocation2 + $0x4b4] sm:$0xf0]  ;;  %v3423_v37 = vld [vmem:[#allocation2 + $0x178] sm:$0xf0]  ;;  %v3821_v40 = vld [vmem:[#allocation2 + $0x488] sm:$0xf] }
 0x13b   :  { %2421 = vmatpush.bf16.msrb.mxu2 %v3534_v39  ;;  %2382 = vmatpush.bf16.msrb.mxu0 %v3294_v17  ;;  %v3997_v39 = vld [vmem:[#allocation2 + $0x5e8] sm:$0xf]  ;;  %v4092_v4 = vld [vmem:[#allocation2 + $0x4c] sm:$0xf]  ;;  %v3279_v58 = vld [vmem:[#allocation2 + $0x58] sm:$0xf0] }
 0x13c   :  { %2401 = vmatpush.bf16.msrb.mxu1 %v3422_v32  ;;  %2441 = vmatpush.bf16.msrb.mxu3 %v3646_v6  ;;  %v3998_v17 = vor.u32 %v4274_v16, %v3997_v39  ;;  %v3853_v32 = vld [vmem:[#allocation2 + $0x4c8] sm:$0xf]  ;;  %v3314_v6 = vor.u32 %v4100_v49, %v3311_v0  ;;  %v4124_v18 = vld [vmem:[#allocation2 + $0x14c] sm:$0xf]  ;;  %v3282_v41 = vor.u32 %v4092_v4, %v3279_v58  ;;  %v3407_v43 = vld [vmem:[#allocation2 + $0x158] sm:$0xf0] }
 0x13d   :  { %v3854_v22 = vor.u32 %v4238_v61, %v3853_v32  ;;  %v3410_v51 = vor.u32 %v4124_v18, %v3407_v43  ;;  %v4258_v56 = vld [vmem:[#allocation2 + $0x574] sm:$0xf0]  ;;  %v4088_v7 = vld [vmem:[#allocation2 + $0x2c] sm:$0xf]  ;;  %v3263_v39 = vld [vmem:[#allocation2 + $0x38] sm:$0xf0] }
 0x13e   :  { %2348 = vmatmul.bf16.vlgmr.msra.gmra.mxu2 %v5446_v60  ;;  %2367 = vmatmul.bf16.vlgmr.msra.gmra.mxu3 %v5450_v52  ;;  %v3266_v16 = vor.u32 %v4088_v7, %v3263_v39  ;;  %v4120_v44 = vld [vmem:[#allocation2 + $0x12c] sm:$0xf]  ;;  %v3391_v57 = vld [vmem:[#allocation2 + $0x138] sm:$0xf0]  ;;  %v4222_v63 = vld [vmem:[#allocation2 + $0x454] sm:$0xf0] }
 0x13f   :  { %2422 = vmatpush.bf16.msrb.mxu2 %v3518_v27  ;;  %2383 = vmatpush.bf16.msrb.mxu0 %v3278_v30  ;;  %v4270_v27 = vld [vmem:[#allocation2 + $0x5d4] sm:$0xf0]  ;;  %v3439_v30 = vld [vmem:[#allocation2 + $0x198] sm:$0xf0]  ;;  %v3917_v9 = vld [vmem:[#allocation2 + $0x548] sm:$0xf] }
 0x140   :  { %2402 = vmatpush.bf16.msrb.mxu1 %v3406_v45  ;;  %2442 = vmatpush.bf16.msrb.mxu3 %v3630_v36  ;;  %v3982_v38 = vor.u32 %v4270_v27, %v3981_v13  ;;  %v3442_v26 = vor.u32 %v4132_v8, %v3439_v30  ;;  %v3837_v45 = vld [vmem:[#allocation2 + $0x4a8] sm:$0xf]  ;;  %v3298_v36 = vor.u32 %v4096_v31, %v3295_v53  ;;  %v4254_v32 = vld [vmem:[#allocation2 + $0x554] sm:$0xf0]  ;;  %v4084_v61 = vld [vmem:[#allocation2 + $0xc] sm:$0xf] }
 0x141   :  { %v3838_v23 = vor.u32 %v4234_v29, %v3837_v45  ;;  %v3247_v13 = vld [vmem:[#allocation2 + $0x18] sm:$0xf0]  ;;  %v4116_v27 = vld [vmem:[#allocation2 + $0x10c] sm:$0xf]  ;;  %v3773_v8 = vld [vmem:[#allocation2 + $0x428] sm:$0xf] }
 0x142   :  { %v3250_v49 = vor.u32 %v4084_v61, %v3247_v13  ;;  %v3375_v0 = vld [vmem:[#allocation2 + $0x118] sm:$0xf0]  ;;  %v4250_v45 = vld [vmem:[#allocation2 + $0x534] sm:$0xf0]  ;;  %v4240_v29 = vld [vmem:[#allocation2 + $0x4ec] sm:$0xf] }
 0x143   :  { %2423 = vmatpush.bf16.msrb.mxu2 %v3502_v5  ;;  %2384 = vmatpush.bf16.msrb.mxu0 %v3262_v24  ;;  %v4266_v5 = vld [vmem:[#allocation2 + $0x5b4] sm:$0xf0]  ;;  %v4128_v24 = vld [vmem:[#allocation2 + $0x16c] sm:$0xf]  ;;  %v3999_v31 = vld [vmem:[#allocation2 + $0x5f8] sm:$0xf0] }
 0x144   :  { %2403 = vmatpush.bf16.msrb.mxu1 %v3390_v14  ;;  %2511 = vmatpush.bf16.msra.mxu3 %v3490_v20  ;;  %v3966_v2 = vor.u32 %v4266_v5, %v3965_v10  ;;  %v3426_v42 = vor.u32 %v4128_v24, %v3423_v37  ;;  %v4230_v14 = vld [vmem:[#allocation2 + $0x494] sm:$0xf0]  ;;  %v4272_v5 = vld [vmem:[#allocation2 + $0x5ec] sm:$0xf]  ;;  %v3983_v4 = vld [vmem:[#allocation2 + $0x5d8] sm:$0xf0] }
 0x145   :  { %v4262_v20 = vld [vmem:[#allocation2 + $0x594] sm:$0xf0]  ;;  %v3822_v1 = vor.u32 %v4230_v14, %v3821_v40  ;;  %v3885_v40 = vld [vmem:[#allocation2 + $0x508] sm:$0xf]  ;;  %v4236_v14 = vld [vmem:[#allocation2 + $0x4cc] sm:$0xf] }
 0x146   :  { %2310 = vmatmul.bf16.vlgmr.msra.gmra.mxu0 %v5224_v47  ;;  %2329 = vmatmul.bf16.vlgmr.msra.gmra.mxu1 %v5226_v19  ;;  %v4214_v24 = vld [vmem:[#allocation2 + $0x414] sm:$0xf0]  ;;  %v4208_v43 = vld [vmem:[#allocation2 + $0x3ec] sm:$0xf]  ;;  %v3967_v39 = vld [vmem:[#allocation2 + $0x5b8] sm:$0xf0] }
 0x147   :  { %2492 = vmatpush.bf16.msra.mxu2 %v3362_v48  ;;  %2385 = vmatpush.bf16.msrb.mxu0 %v3246_v34  ;;  %v3949_v48 = vld [vmem:[#allocation2 + $0x588] sm:$0xf]  ;;  %v4264_v7 = vld [vmem:[#allocation2 + $0x5ac] sm:$0xf]  ;;  %v3951_v61 = vld [vmem:[#allocation2 + $0x598] sm:$0xf0] }
 0x148   :  { %2404 = vmatpush.bf16.msrb.mxu1 %v3374_v21  ;;  %2512 = vmatpush.bf16.msra.mxu3 %v3474_v11  ;;  %v3950_v15 = vor.u32 %v4262_v20, %v3949_v48  ;;  %v3805_v34 = vld [vmem:[#allocation2 + $0x468] sm:$0xf]  ;;  %v3855_v20 = vld [vmem:[#allocation2 + $0x4d8] sm:$0xf0] }
 0x149   :  { %v3933_v21 = vld [vmem:[#allocation2 + $0x568] sm:$0xf]  ;;  %v3858_v58 = vor.u32 %v4236_v14, %v3855_v20  ;;  %v3919_v14 = vld [vmem:[#allocation2 + $0x558] sm:$0xf0] }
 0x14b   :  { %2493 = vmatpush.bf16.msra.mxu2 %v3346_v62  ;;  %2454 = vmatpush.bf16.msra.mxu0 %v3870_v55  ;;  %v4226_v62 = vld [vmem:[#allocation2 + $0x474] sm:$0xf0]  ;;  %v3934_v55 = vor.u32 %v4258_v56, %v3933_v21  ;;  %v3839_v21 = vld [vmem:[#allocation2 + $0x4b8] sm:$0xf0] }
 0x14c   :  { %2473 = vmatpush.bf16.msra.mxu1 %v3998_v17  ;;  %2513 = vmatpush.bf16.msra.mxu3 %v3458_v50  ;;  %v3806_v11 = vor.u32 %v4226_v62, %v3805_v34  ;;  %v3789_v17 = vld [vmem:[#allocation2 + $0x448] sm:$0xf]  ;;  %v3743_v34 = vld [vmem:[#allocation2 + $0x3f8] sm:$0xf0]  ;;  %v4232_v62 = vld [vmem:[#allocation2 + $0x4ac] sm:$0xf] }
 0x14d   :  { %v3790_v50 = vor.u32 %v4222_v63, %v3789_v17  ;;  %v3842_v56 = vor.u32 %v4232_v62, %v3839_v21  ;;  %v4204_v17 = vld [vmem:[#allocation2 + $0x3cc] sm:$0xf]  ;;  %v3903_v21 = vld [vmem:[#allocation2 + $0x538] sm:$0xf0] }
 0x14e   :  { %2353 = vmatmul.bf16.gmra.mxu2 %v5477_v3  ;;  %2372 = vmatmul.bf16.gmra.mxu3 %v5479_v12  ;;  %v4228_v63 = vld [vmem:[#allocation2 + $0x48c] sm:$0xf] }
 0x14f   :  { %2494 = vmatpush.bf16.msra.mxu2 %v3330_v25  ;;  %2455 = vmatpush.bf16.msra.mxu0 %v3854_v22  ;;  %v3394_v25 = vor.u32 %v4120_v44, %v3391_v57  ;;  %v3918_v22 = vor.u32 %v4254_v32, %v3917_v9  ;;  %v3599_v44 = vld [vmem:[#allocation2 + $0x2d8] sm:$0xf0]  ;;  %v4248_v62 = vld [vmem:[#allocation2 + $0x52c] sm:$0xf] }
 0x150   :  { %2474 = vmatpush.bf16.msra.mxu1 %v3982_v38  ;;  %2514 = vmatpush.bf16.msra.mxu3 %v3442_v26  ;;  %v4218_v38 = vld [vmem:[#allocation2 + $0x434] sm:$0xf0]  ;;  %v3901_v26 = vld [vmem:[#allocation2 + $0x528] sm:$0xf]  ;;  %v3823_v32 = vld [vmem:[#allocation2 + $0x498] sm:$0xf0] }
 0x151   :  { %v3774_v30 = vor.u32 %v4218_v38, %v3773_v8  ;;  %v3902_v10 = vor.u32 %v4250_v45, %v3901_v26  ;;  %v3826_v13 = vor.u32 %v4228_v63, %v3823_v32  ;;  %v3711_v38 = vld [vmem:[#allocation2 + $0x3b8] sm:$0xf0] }
 0x152   :  { %v3759_v63 = vld [vmem:[#allocation2 + $0x418] sm:$0xf0] }
 0x153   :  { %2495 = vmatpush.bf16.msra.mxu2 %v3314_v6  ;;  %2456 = vmatpush.bf16.msra.mxu0 %v3838_v23  ;;  %v3378_v6 = vor.u32 %v4116_v27, %v3375_v0  ;;  %v3871_v23 = vld [vmem:[#allocation2 + $0x4f8] sm:$0xf0]  ;;  %v4200_v0 = vld [vmem:[#allocation2 + $0x3ac] sm:$0xf] }
 0x154   :  { %2475 = vmatpush.bf16.msra.mxu1 %v3966_v2  ;;  %2515 = vmatpush.bf16.msra.mxu3 %v3426_v42  ;;  %v3874_v53 = vor.u32 %v4240_v29, %v3871_v23  ;;  %v4002_v2 = vor.u32 %v4272_v5, %v3999_v31  ;;  %v4246_v42 = vld [vmem:[#allocation2 + $0x514] sm:$0xf0]  ;;  %v3714_v26 = vor.u32 %v4200_v0, %v3711_v38  ;;  %v4256_v29 = vld [vmem:[#allocation2 + $0x56c] sm:$0xf]  ;;  %v3567_v31 = vld [vmem:[#allocation2 + $0x298] sm:$0xf0] }
 0x155   :  { %v3886_v48 = vor.u32 %v4246_v42, %v3885_v40  ;;  %v4164_v23 = vld [vmem:[#allocation2 + $0x28c] sm:$0xf]  ;;  %v3791_v40 = vld [vmem:[#allocation2 + $0x458] sm:$0xf0] }
 0x156   :  { %2315 = vmatmul.bf16.gmra.mxu0 %v5356_v35  ;;  %2334 = vmatmul.bf16.gmra.mxu1 %v5358_v46  ;;  %v4252_v42 = vld [vmem:[#allocation2 + $0x54c] sm:$0xf]  ;;  %v3887_v32 = vld [vmem:[#allocation2 + $0x518] sm:$0xf0] }
 0x157   :  { %2496 = vmatpush.bf16.msra.mxu2 %v3298_v36  ;;  %2457 = vmatpush.bf16.msra.mxu0 %v3822_v1  ;;  %v3757_v36 = vld [vmem:[#allocation2 + $0x408] sm:$0xf]  ;;  %v4268_v1 = vld [vmem:[#allocation2 + $0x5cc] sm:$0xf]  ;;  %v3922_v20 = vor.u32 %v4252_v42, %v3919_v14  ;;  %v3647_v0 = vld [vmem:[#allocation2 + $0x338] sm:$0xf0] }
 0x158   :  { %2476 = vmatpush.bf16.msra.mxu1 %v3950_v15  ;;  %2516 = vmatpush.bf16.msra.mxu3 %v3410_v51  ;;  %v3758_v37 = vor.u32 %v4214_v24, %v3757_v36  ;;  %v3986_v18 = vor.u32 %v4268_v1, %v3983_v4  ;;  %v4176_v15 = vld [vmem:[#allocation2 + $0x2ec] sm:$0xf]  ;;  %v3695_v36 = vld [vmem:[#allocation2 + $0x398] sm:$0xf0] }
 0x159   :  { %v4220_v24 = vld [vmem:[#allocation2 + $0x44c] sm:$0xf]  ;;  %v3551_v4 = vld [vmem:[#allocation2 + $0x278] sm:$0xf0] }
 0x15a   :  { %v4160_v1 = vld [vmem:[#allocation2 + $0x26c] sm:$0xf] }
 0x15b   :  { %2497 = vmatpush.bf16.msra.mxu2 %v3282_v41  ;;  %2458 = vmatpush.bf16.msra.mxu0 %v3806_v11  ;;  %v3615_v41 = vld [vmem:[#allocation2 + $0x2f8] sm:$0xf0]  ;;  %v3746_v11 = vor.u32 %v4208_v43, %v3743_v34  ;;  %v4148_v38 = vld [vmem:[#allocation2 + $0x20c] sm:$0xf] }
 0x15c   :  { %2477 = vmatpush.bf16.msra.mxu1 %v3934_v55  ;;  %2517 = vmatpush.bf16.msra.mxu3 %v3394_v25  ;;  %v3618_v51 = vor.u32 %v4176_v15, %v3615_v41  ;;  %v4172_v55 = vld [vmem:[#allocation2 + $0x2cc] sm:$0xf]  ;;  %v3727_v25 = vld [vmem:[#allocation2 + $0x3d8] sm:$0xf0] }
 0x15d   :  { %v3602_v57 = vor.u32 %v4172_v55, %v3599_v44  ;;  %v3730_v9 = vor.u32 %v4204_v17, %v3727_v25  ;;  %v3679_v15 = vld [vmem:[#allocation2 + $0x378] sm:$0xf0]  ;;  %v4216_v41 = vld [vmem:[#allocation2 + $0x42c] sm:$0xf] }
 0x15e   :  { %2424 = vmatmul.bf16.vlgmr.msrb.gmra.mxu2 %v5224_v47  ;;  %2443 = vmatmul.bf16.vlgmr.msrb.gmra.mxu3 %v5226_v19  ;;  %v3775_v43 = vld [vmem:[#allocation2 + $0x438] sm:$0xf0]  ;;  %v4188_v44 = vld [vmem:[#allocation2 + $0x34c] sm:$0xf] }
 0x15f   :  { %2498 = vmatpush.bf16.msra.mxu2 %v3266_v16  ;;  %2459 = vmatpush.bf16.msra.mxu0 %v3790_v50  ;;  %v3970_v16 = vor.u32 %v4264_v7, %v3967_v39  ;;  %v4260_v50 = vld [vmem:[#allocation2 + $0x58c] sm:$0xf]  ;;  %v3778_v34 = vor.u32 %v4216_v41, %v3775_v43  ;;  %v3535_v7 = vld [vmem:[#allocation2 + $0x258] sm:$0xf0] }
 0x160   :  { %2478 = vmatpush.bf16.msra.mxu1 %v3918_v22  ;;  %2518 = vmatpush.bf16.msra.mxu3 %v3378_v6  ;;  %v3954_v27 = vor.u32 %v4260_v50, %v3951_v61  ;;  %v4168_v22 = vld [vmem:[#allocation2 + $0x2ac] sm:$0xf] }
 0x161   :  { %v4224_v6 = vld [vmem:[#allocation2 + $0x46c] sm:$0xf] }
 0x162   :  { %v4212_v17 = vld [vmem:[#allocation2 + $0x40c] sm:$0xf] }
 0x163   :  { %2499 = vmatpush.bf16.msra.mxu2 %v3250_v49  ;;  %2460 = vmatpush.bf16.msra.mxu0 %v3774_v30  ;;  %v3583_v49 = vld [vmem:[#allocation2 + $0x2b8] sm:$0xf0] }
 0x164   :  { %2587 = vmatpush.bf16.msrb.mxu3 %v4002_v2  ;;  %2479 = vmatpush.bf16.msra.mxu1 %v3902_v10  ;;  %v3586_v8 = vor.u32 %v4168_v22, %v3583_v49  ;;  %v3807_v30 = vld [vmem:[#allocation2 + $0x478] sm:$0xf0]  ;;  %v4196_v2 = vld [vmem:[#allocation2 + $0x38c] sm:$0xf] }
 0x165   :  { %v3810_v45 = vor.u32 %v4224_v6, %v3807_v30  ;;  %v3935_v10 = vld [vmem:[#allocation2 + $0x578] sm:$0xf0]  ;;  %v4184_v22 = vld [vmem:[#allocation2 + $0x32c] sm:$0xf] }
 0x166   :  { %2386 = vmatmul.bf16.vlgmr.msrb.gmra.mxu0 %v5335_v33  ;;  %2405 = vmatmul.bf16.vlgmr.msrb.gmra.mxu1 %v5339_v59  ;;  %v3938_v5 = vor.u32 %v4256_v29, %v3935_v10  ;;  %v3503_v6 = vld [vmem:[#allocation2 + $0x218] sm:$0xf0] }
 0x167   :  { %2568 = vmatpush.bf16.msrb.mxu2 %v3874_v53  ;;  %2461 = vmatpush.bf16.msra.mxu0 %v3758_v37  ;;  %v3570_v53 = vor.u32 %v4164_v23, %v3567_v31  ;;  %v3698_v37 = vor.u32 %v4196_v2, %v3695_v36  ;;  %v3506_v30 = vor.u32 %v4148_v38, %v3503_v6  ;;  %v4180_v23 = vld [vmem:[#allocation2 + $0x30c] sm:$0xf] }
 0x168   :  { %2480 = vmatpush.bf16.msra.mxu1 %v3886_v48  ;;  %2588 = vmatpush.bf16.msrb.mxu3 %v3986_v18  ;;  %v3794_v48 = vor.u32 %v4220_v24, %v3791_v40  ;;  %v3554_v18 = vor.u32 %v4160_v1, %v3551_v4 }
 0x16b   :  { %2569 = vmatpush.bf16.msrb.mxu2 %v3858_v58  ;;  %2530 = vmatpush.bf16.msrb.mxu0 %v3618_v51  ;;  %v4192_v58 = vld [vmem:[#allocation2 + $0x36c] sm:$0xf] }
 0x16c   :  { %2549 = vmatpush.bf16.msrb.mxu1 %v3746_v11  ;;  %2589 = vmatpush.bf16.msrb.mxu3 %v3970_v16  ;;  %v3682_v51 = vor.u32 %v4192_v58, %v3679_v15  ;;  %v4156_v11 = vld [vmem:[#allocation2 + $0x24c] sm:$0xf] }
 0x16d   :  { %v3538_v39 = vor.u32 %v4156_v11, %v3535_v7 }
 0x16e   :  { %2429 = vmatmul.bf16.gmra.mxu2 %v5356_v35  ;;  %2448 = vmatmul.bf16.gmra.mxu3 %v5358_v46 }
 0x16f   :  { %2570 = vmatpush.bf16.msrb.mxu2 %v3842_v56  ;;  %2531 = vmatpush.bf16.msrb.mxu0 %v3602_v57  ;;  %v3906_v56 = vor.u32 %v4248_v62, %v3903_v21  ;;  %v3663_v57 = vld [vmem:[#allocation2 + $0x358] sm:$0xf0] }
 0x170   :  { %2550 = vmatpush.bf16.msrb.mxu1 %v3730_v9  ;;  %2590 = vmatpush.bf16.msrb.mxu3 %v3954_v27  ;;  %v3666_v25 = vor.u32 %v4188_v44, %v3663_v57  ;;  %v4244_v9 = vld [vmem:[#allocation2 + $0x50c] sm:$0xf]  ;;  %v3519_v27 = vld [vmem:[#allocation2 + $0x238] sm:$0xf0] }
 0x173   :  { %2571 = vmatpush.bf16.msrb.mxu2 %v3826_v13  ;;  %2532 = vmatpush.bf16.msrb.mxu0 %v3586_v8  ;;  %v3890_v13 = vor.u32 %v4244_v9, %v3887_v32  ;;  %v3650_v8 = vor.u32 %v4184_v22, %v3647_v0 }
 0x174   :  { %2551 = vmatpush.bf16.msrb.mxu1 %v3714_v26  ;;  %2591 = vmatpush.bf16.msrb.mxu3 %v3938_v5  ;;  %v3631_v5 = vld [vmem:[#allocation2 + $0x318] sm:$0xf0] }
 0x175   :  { %v3634_v31 = vor.u32 %v4180_v23, %v3631_v5 }
 0x176   :  { %2391 = vmatmul.bf16.gmra.mxu0 %v5393_v28  ;;  %2410 = vmatmul.bf16.gmra.mxu1 %v5397_v54 }
 0x177   :  { %2572 = vmatpush.bf16.msrb.mxu2 %v3810_v45  ;;  %2533 = vmatpush.bf16.msrb.mxu0 %v3570_v53  ;;  %v5510_v53 = vld [vmem:[%s5806_s4] sm:$0xf] }
 0x178   :  { %2552 = vmatpush.bf16.msrb.mxu1 %v3698_v37  ;;  %2592 = vmatpush.bf16.msrb.mxu3 %v3922_v20  ;;  %v1182_v24 = vperm.slane %v5510_v53, 0  ;;  %v5544_v0 = vperm.slane %v5510_v53, 1 }
 0x17b   :  { %2573 = vmatpush.bf16.msrb.mxu2 %v3794_v48  ;;  %2534 = vmatpush.bf16.msrb.mxu0 %v3554_v18 }
 0x17c   :  { %2553 = vmatpush.bf16.msrb.mxu1 %v3682_v51  ;;  %2593 = vmatpush.bf16.msrb.mxu3 %v3906_v56 }
 0x17e   :  { %2500 = vmatmul.bf16.vlgmr.msra.gmra.mxu2 %v5335_v33  ;;  %2519 = vmatmul.bf16.vlgmr.msra.gmra.mxu3 %v5339_v59  ;;  %v3762_v33 = vor.u32 %v4212_v17, %v3759_v63  ;;  %v4152_v59 = vld [vmem:[#allocation2 + $0x22c] sm:$0xf] }
 0x17f   :  { %2574 = vmatpush.bf16.msrb.mxu2 %v3778_v34  ;;  %2535 = vmatpush.bf16.msrb.mxu0 %v3538_v39  ;;  %v3522_v49 = vor.u32 %v4152_v59, %v3519_v27 }
 0x180   :  { %v2197_v55 = vpop.f32.mrf.mxu2  ;;  %v5501_v16 = vpop.f32.mrf.mxu3  ;;  %2554 = vmatpush.bf16.msrb.mxu1 %v3666_v25  ;;  %2594 = vmatpush.bf16.msrb.mxu3 %v3890_v13 }
 0x182   :  { %v2159_v50 = vpop.f32.mrf.mxu0  ;;  %v2178_v61 = vpop.f32.mrf.mxu1 }
 0x183   :  { %2575 = vmatpush.bf16.msrb.mxu2 %v3762_v33  ;;  %2536 = vmatpush.bf16.msrb.mxu0 %v3522_v49  ;;  %v2160_v42 = vadd.f32 %v2159_v50, %v1182_v24 }
 0x184   :  { %2555 = vmatpush.bf16.msrb.mxu1 %v3650_v8 }
 0x186   :  { %2462 = vmatmul.bf16.vlgmr.msra.gmra.mxu0 %v5446_v60  ;;  %2481 = vmatmul.bf16.vlgmr.msra.gmra.mxu1 %v5450_v52 }
 0x187   :  { %2537 = vmatpush.bf16.msrb.mxu0 %v3506_v30 }
 0x188   :  { %v2199_v26 = vpop.f32.mrf.mxu2  ;;  %v2218_v45 = vpop.f32.mrf.mxu3  ;;  %2556 = vmatpush.bf16.msrb.mxu1 %v3634_v31 }
 0x18a   :  { %v2161_v29 = vpop.f32.mrf.mxu0  ;;  %v2180_v10 = vpop.f32.mrf.mxu1 }
 0x18b   :  { %v2162_v4 = vadd.f32 %v2161_v29, %v1182_v24 }
 0x18d   :  { %v2181_v15 = vadd.f32 %v2180_v10, %v2162_v4 }
 0x18e   :  { %2505 = vmatmul.bf16.gmra.mxu2 %v5393_v28  ;;  %2524 = vmatmul.bf16.gmra.mxu3 %v5397_v54  ;;  %v2179_v54 = vadd.f32 %v2178_v61, %v2160_v42 }
 0x18f   :  { %v2200_v62 = vadd.f32 %v2199_v26, %v2181_v15 }
 0x190   :  { %v2198_v1 = vadd.f32 %v2197_v55, %v2179_v54 }
 0x191   :  { %v2202_v2 = vpop.f32.mrf.mxu2  ;;  %v2221_v36 = vpop.f32.mrf.mxu3  ;;  %v2219_v39 = vadd.f32 %v2218_v45, %v2200_v62  ;;  %v4376_v62 = vld [vmem:[%s5802_s0] sm:$0xff] }
 0x192   :  { %v2217_v41 = vadd.f32 %v5501_v16, %v2198_v1 }
 0x193   :  { %v2164_v37 = vpop.f32.mrf.mxu0  ;;  %v2183_v40 = vpop.f32.mrf.mxu1 }
 0x194   :  { %v2165_v21 = vadd.f32 %v2164_v37, %v1182_v24 }
 0x196   :  { %2467 = vmatmul.bf16.gmra.mxu0 %v5477_v3  ;;  %2486 = vmatmul.bf16.gmra.mxu1 %v5479_v12  ;;  %v2184_v7 = vadd.f32 %v2183_v40, %v2165_v21 }
 0x198   :  { %v2203_v57 = vadd.f32 %v2202_v2, %v2184_v7 }
 0x199   :  { %v2204_v28 = vpop.f32.mrf.mxu2  ;;  %v2223_v14 = vpop.f32.mrf.mxu3 }
 0x19a   :  { %v2222_v61 = vadd.f32 %v2221_v36, %v2203_v57 }
 0x19b   :  { %v2166_v48 = vpop.f32.mrf.mxu0  ;;  %v2185_v20 = vpop.f32.mrf.mxu1 }
 0x19c   :  { %v2167_v17 = vadd.f32 %v2166_v48, %v1182_v24 }
 0x19e   :  { %2576 = vmatmul.bf16.vlgmr.msrb.gmra.mxu2 %v5446_v60  ;;  %2595 = vmatmul.bf16.vlgmr.msrb.gmra.mxu3 %v5450_v52  ;;  %v2186_v50 = vadd.f32 %v2185_v20, %v2167_v17 }
 0x1a0   :  { %v2205_v27 = vadd.f32 %v2204_v28, %v2186_v50 }
 0x1a1   :  { %v2273_v58 = vpop.f32.mrf.mxu2  ;;  %v5517_v18 = vpop.f32.mrf.mxu3 }
 0x1a2   :  { %v2224_v26 = vadd.f32 %v2223_v14, %v2205_v27  ;;  %v2274_v10 = vadd.f32 %v2273_v58, %v5544_v0 }
 0x1a3   :  { %v2235_v43 = vpop.f32.mrf.mxu0  ;;  %v2254_v51 = vpop.f32.mrf.mxu1 }
 0x1a4   :  { %v2236_v34 = vadd.f32 %v2235_v43, %v2217_v41  ;;  %v2293_v42 = vadd.f32 %v5517_v18, %v2274_v10 }
 0x1a6   :  { %v5520_v11 = vadd.f32 %v2254_v51, %v2236_v34  ;;  %2538 = vmatmul.bf16.vlgmr.msrb.gmra.mxu0 %v5224_v47  ;;  %2557 = vmatmul.bf16.vlgmr.msrb.gmra.mxu1 %v5226_v19 }
 0x1a8   :  { %v4003_v60 = vmul.f32 -1.442695, %v5520_v11 }
 0x1a9   :  { %v5525_v52 = vpop.f32.mrf.mxu2  ;;  %v5527_v56 = vpop.f32.mrf.mxu3 }
 0x1aa   :  { %4312 = vpow2.f32 %v4003_v60 }
 0x1ab   :  { %v2237_v55 = vpop.f32.mrf.mxu0  ;;  %v2256_v16 = vpop.f32.mrf.mxu1 }
 0x1ac   :  { %v2238_v44 = vadd.f32 %v2237_v55, %v2219_v39  ;;  %v2276_v39 = vadd.f32 %v5525_v52, %v5544_v0 }
 0x1ae   :  { %v5529_v25 = vadd.f32 %v2256_v16, %v2238_v44  ;;  %2581 = vmatmul.bf16.gmra.mxu2 %v5477_v3  ;;  %2600 = vmatmul.bf16.gmra.mxu3 %v5479_v12 }
 0x1b0   :  { %v4313_v47 = vpop.eup %4312  ;;  %v4007_v19 = vmul.f32 -1.442695, %v5529_v25 }
 0x1b1   :  { %v2654_v63 = vadd.f32 1.0, %v4313_v47  ;;  %v5534_v9 = vpop.f32.mrf.mxu2  ;;  %v5536_v32 = vpop.f32.mrf.mxu3 }
 0x1b2   :  { %4314 = vpow2.f32 %v4007_v19 }
 0x1b3   :  { %4316 = vrcp.f32 %v2654_v63  ;;  %v2240_v33 = vpop.f32.mrf.mxu0  ;;  %v2259_v13 = vpop.f32.mrf.mxu1  ;;  %v2681_v23 = vand.u32 2147483648, %v2654_v63  ;;  %v2679_v31 = vand.u32 2147483647, %v2654_v63  ;;  %vm2675_vm13 = vweird.f32 %v2654_v63 }
 0x1b4   :  { %v2241_v59 = vadd.f32 %v2240_v33, %v2222_v61  ;;  %v2295_v61 = vadd.f32 %v5527_v56, %v2276_v39  ;;  %v4377_v56 = vld [vmem:[%s5802_s0 + $0x20] sm:$0xff] }
 0x1b5   :  { %v2682_v28 = vor.u32 1.1754944e-38, %v2681_v23  ;;  %vm2680_vm0 = vcmp.eq.f32.partialorder %v2679_v31, 8.507059e+37 }
 0x1b6   :  { %v5538_v22 = vadd.f32 %v2259_v13, %v2241_v59  ;;  %2543 = vmatmul.bf16.gmra.mxu0 %v5356_v35  ;;  %2562 = vmatmul.bf16.gmra.mxu1 %v5358_v46 }
 0x1b8   :  { %v4315_v3 = vpop.eup %4314  ;;  %v4011_v12 = vmul.f32 -1.442695, %v5538_v22 }
 0x1b9   :  { %v4317_v49 = vpop.eup %4316  ;;  %v2658_v8 = vadd.f32 1.0, %v4315_v3  ;;  %v5546_v38 = vpop.f32.mrf.mxu2 }
 0x1ba   :  { %v5548_v6 = vpop.f32.mrf.mxu3  ;;  %v2671_v30 = vmul.f32 %v4317_v49, %v2654_v63  ;;  %4318 = vpow2.f32 %v4011_v12  ;;  %vm2676_vm9 = vweird.f32 %v4317_v49 }
 0x1bb   :  { %4320 = vrcp.f32 %v2658_v8  ;;  %v2242_v45 = vpop.f32.mrf.mxu0  ;;  %v2261_v35 = vpop.f32.mrf.mxu1  ;;  %vm2677_vm14 = vmor %vm2675_vm13, %vm2676_vm9  ;;  %v2739_v18 = vand.u32 2147483647, %v2658_v8  ;;  %v2741_v34 = vand.u32 2147483648, %v2658_v8  ;;  %vm2735_vm2 = vweird.f32 %v2658_v8 }
 0x1bc   :  { %v2672_v29 = vsub.f32 1.0, %v2671_v30  ;;  %v2243_v46 = vadd.f32 %v2242_v45, %v2224_v26 }
 0x1bd   :  { %v2742_v57 = vor.u32 1.1754944e-38, %v2741_v34  ;;  %vm2740_vm15 = vcmp.eq.f32.partialorder %v2739_v18, 8.507059e+37 }
 0x1be   :  { %v2673_v5 = vmul.f32 %v4317_v49, %v2672_v29  ;;  %v5551_v2 = vadd.f32 %v2261_v35, %v2243_v46 }
 0x1c0   :  { %v4319_v36 = vpop.eup %4318  ;;  %v2674_v24 = vadd.f32 %v4317_v49, %v2673_v5  ;;  %v4015_v37 = vmul.f32 -1.442695, %v5551_v2 }
 0x1c1   :  { %v4321_v40 = vpop.eup %4320  ;;  %v5555_v14 = vadd.f32 1.0, %v4319_v36  ;;  %v2349_v54 = vpop.f32.mrf.mxu2 }
 0x1c2   :  { %v2368_v48 = vpop.f32.mrf.mxu3  ;;  %v2678_v20 = vsel %vm2677_vm14, %v4317_v49, %v2674_v24  ;;  %v2731_v1 = vmul.f32 %v4321_v40, %v2658_v8  ;;  %4322 = vpow2.f32 %v4015_v37  ;;  %vm2736_vm1 = vweird.f32 %v4321_v40 }
 0x1c3   :  { %v2683_v4 = vsel %vm2680_vm0, %v2682_v28, %v2678_v20  ;;  %4324 = vrcp.f32 %v5555_v14  ;;  %v2311_v58 = vpop.f32.mrf.mxu0  ;;  %v2330_v15 = vpop.f32.mrf.mxu1  ;;  %vm2737_vm12 = vmor %vm2735_vm2, %vm2736_vm1  ;;  %v2279_v49 = vadd.f32 %v5534_v9, %v5544_v0  ;;  %v2799_v8 = vand.u32 2147483647, %v5555_v14 }
 0x1c4   :  { %v2910_v41 = vmul.f32 %v2683_v4, %v5520_v11  ;;  %v2732_v43 = vsub.f32 1.0, %v2731_v1  ;;  %v2312_v51 = vadd.f32 %v2311_v58, %v2293_v42  ;;  %v2801_v30 = vand.u32 2147483648, %v5555_v14 }
 0x1c5   :  { %vm2795_vm4 = vweird.f32 %v5555_v14  ;;  %v2298_v31 = vadd.f32 %v5536_v32, %v2279_v49  ;;  %vm2800_vm6 = vcmp.eq.f32.partialorder %v2799_v8, 8.507059e+37 }
 0x1c6   :  { %v2926_v21 = vadd.f32 %v4376_v62, %v2910_v41  ;;  %v2733_v60 = vmul.f32 %v4321_v40, %v2732_v43  ;;  %v2331_v7 = vadd.f32 %v2330_v15, %v2312_v51  ;;  %v2802_v46 = vor.u32 1.1754944e-38, %v2801_v30  ;;  %v4378_v41 = vld [vmem:[%s5802_s0 + $0x40] sm:$0xff] }
 0x1c8   :  { %v4323_v55 = vpop.eup %4322  ;;  %2942 = vst [vmem:[%s5807_s5] sm:$0xff] %v2926_v21  ;;  %v2734_v11 = vadd.f32 %v4321_v40, %v2733_v60  ;;  %v2350_v16 = vadd.f32 %v2349_v54, %v2331_v7 }
 0x1c9   :  { %v4325_v44 = vpop.eup %4324  ;;  %v5567_v17 = vadd.f32 1.0, %v4323_v55  ;;  %v2351_v47 = vpop.f32.mrf.mxu2 }
 0x1ca   :  { %v2370_v19 = vpop.f32.mrf.mxu3  ;;  %v2738_v63 = vsel %vm2737_vm12, %v4321_v40, %v2734_v11  ;;  %v2791_v50 = vmul.f32 %v4325_v44, %v5555_v14  ;;  %v5570_v52 = vadd.f32 %v2368_v48, %v2350_v16  ;;  %vm2796_vm3 = vweird.f32 %v4325_v44 }
 0x1cb   :  { %v2743_v33 = vsel %vm2740_vm15, %v2742_v57, %v2738_v63  ;;  %4326 = vrcp.f32 %v5567_v17  ;;  %v2313_v13 = vpop.f32.mrf.mxu0  ;;  %v2332_v59 = vpop.f32.mrf.mxu1  ;;  %vm2797_vm5 = vmor %vm2795_vm4, %vm2796_vm3  ;;  %v2281_v48 = vadd.f32 %v5546_v38, %v5544_v0  ;;  %v2859_v4 = vand.u32 2147483647, %v5567_v17 }
 0x1cc   :  { %v2914_v27 = vmul.f32 %v2743_v33, %v5529_v25  ;;  %v2792_v3 = vsub.f32 1.0, %v2791_v50  ;;  %v4004_v12 = vmul.f32 -1.442695, %v5570_v52  ;;  %v2314_v26 = vadd.f32 %v2313_v13, %v2295_v61 }
 0x1cd   :  { %v2861_v32 = vand.u32 2147483648, %v5567_v17  ;;  %vm2855_vm8 = vweird.f32 %v5567_v17  ;;  %v2300_v21 = vadd.f32 %v5548_v6, %v2281_v48  ;;  %vm2860_vm11 = vcmp.eq.f32.partialorder %v2859_v4, 8.507059e+37 }
 0x1ce   :  { %v2930_v45 = vadd.f32 %v4377_v56, %v2914_v27  ;;  %v2793_v35 = vmul.f32 %v4325_v44, %v2792_v3  ;;  %4328 = vpow2.f32 %v4004_v12  ;;  %v2333_v25 = vadd.f32 %v2332_v59, %v2314_v26 }
 0x1cf   :  { %v2862_v18 = vor.u32 1.1754944e-38, %v2861_v32 }
 0x1d0   :  { %2946 = vst [vmem:[%s5807_s5 + $0x20] sm:$0xff] %v2930_v45  ;;  %v2794_v29 = vadd.f32 %v4325_v44, %v2793_v35  ;;  %v2352_v10 = vadd.f32 %v2351_v47, %v2333_v25 }
 0x1d1   :  { %v4327_v9 = vpop.eup %4326  ;;  %v2354_v23 = vpop.f32.mrf.mxu2 }
 0x1d2   :  { %v2373_v5 = vpop.f32.mrf.mxu3  ;;  %v2798_v36 = vsel %vm2797_vm5, %v4325_v44, %v2794_v29  ;;  %v2851_v24 = vmul.f32 %v4327_v9, %v5567_v17  ;;  %v5589_v40 = vadd.f32 %v2370_v19, %v2352_v10  ;;  %vm2856_vm7 = vweird.f32 %v4327_v9  ;;  %v4379_v19 = vld [vmem:[%s5802_s0 + $0x60] sm:$0xff] }
 0x1d3   :  { %v2803_v37 = vsel %vm2800_vm6, %v2802_v46, %v2798_v36  ;;  %v2316_v42 = vpop.f32.mrf.mxu0  ;;  %v2335_v28 = vpop.f32.mrf.mxu1  ;;  %vm2857_vm10 = vmor %vm2855_vm8, %vm2856_vm7  ;;  %v4380_v36 = vld [vmem:[%s5802_s0 + $0x8] sm:$0xff] }
 0x1d4   :  { %v4329_v54 = vpop.eup %4328  ;;  %v2918_v14 = vmul.f32 %v2803_v37, %v5538_v22  ;;  %v2852_v20 = vsub.f32 1.0, %v2851_v24  ;;  %v2317_v1 = vadd.f32 %v2316_v42, %v2298_v31  ;;  %v4008_v15 = vmul.f32 -1.442695, %v5589_v40 }
 0x1d5   :  { %v2655_v58 = vadd.f32 1.0, %v4329_v54 }
 0x1d6   :  { %v2934_v43 = vadd.f32 %v4378_v41, %v2918_v14  ;;  %v2853_v51 = vmul.f32 %v4327_v9, %v2852_v20  ;;  %v2336_v22 = vadd.f32 %v2335_v28, %v2317_v1 }
 0x1d7   :  { %4330 = vrcp.f32 %v2655_v58  ;;  %v2694_v3 = vand.u32 2147483647, %v2655_v58  ;;  %vm2690_vm13 = vweird.f32 %v2655_v58 }
 0x1d8   :  { %2950 = vst [vmem:[%s5807_s5 + $0x40] sm:$0xff] %v2934_v43  ;;  %v2854_v0 = vadd.f32 %v4327_v9, %v2853_v51  ;;  %4332 = vpow2.f32 %v4008_v15  ;;  %v2355_v38 = vadd.f32 %v2354_v23, %v2336_v22 }
 0x1d9   :  { %v2356_v34 = vpop.f32.mrf.mxu2  ;;  %vm2695_vm0 = vcmp.eq.f32.partialorder %v2694_v3, 8.507059e+37 }
 0x1da   :  { %v2375_v62 = vpop.f32.mrf.mxu3  ;;  %v2858_v60 = vsel %vm2857_vm10, %v4327_v9, %v2854_v0  ;;  %v5605_v7 = vadd.f32 %v2373_v5, %v2355_v38  ;;  %v5638_v0 = vperm.slane %v5510_v53, 2 }
 0x1db   :  { %v2863_v39 = vsel %vm2860_vm11, %v2862_v18, %v2858_v60  ;;  %v2318_v55 = vpop.f32.mrf.mxu0  ;;  %v2337_v11 = vpop.f32.mrf.mxu1 }
 0x1dc   :  { %v2922_v16 = vmul.f32 %v2863_v39, %v5551_v2  ;;  %v4012_v44 = vmul.f32 -1.442695, %v5605_v7  ;;  %v2319_v57 = vadd.f32 %v2318_v55, %v2300_v21  ;;  %v2696_v2 = vand.u32 2147483648, %v2655_v58  ;;  %v4381_v39 = vld [vmem:[%s5802_s0 + $0x28] sm:$0xff] }
 0x1dd   :  { %v4331_v17 = vpop.eup %4330 }
 0x1de   :  { %v4333_v47 = vpop.eup %4332  ;;  %v2938_v63 = vadd.f32 %v4379_v19, %v2922_v16  ;;  %v2686_v6 = vmul.f32 %v4331_v17, %v2655_v58  ;;  %4334 = vpow2.f32 %v4012_v44  ;;  %v2338_v61 = vadd.f32 %v2337_v11, %v2319_v57 }
 0x1df   :  { %v2659_v50 = vadd.f32 1.0, %v4333_v47  ;;  %vm2691_vm9 = vweird.f32 %v4331_v17  ;;  %v2697_v45 = vor.u32 1.1754944e-38, %v2696_v2 }
 0x1e0   :  { %2954 = vst [vmem:[%s5807_s5 + $0x60] sm:$0xff] %v2938_v63  ;;  %v2687_v33 = vsub.f32 1.0, %v2686_v6  ;;  %v2357_v12 = vadd.f32 %v2356_v34, %v2338_v61  ;;  %vm2692_vm14 = vmor %vm2690_vm13, %vm2691_vm9 }
 0x1e1   :  { %4336 = vrcp.f32 %v2659_v50  ;;  %v5615_v13 = vpop.f32.mrf.mxu2  ;;  %v2756_v42 = vand.u32 2147483648, %v2659_v50  ;;  %v2754_v14 = vand.u32 2147483647, %v2659_v50  ;;  %vm2750_vm2 = vweird.f32 %v2659_v50 }
 0x1e2   :  { %v5617_v59 = vpop.f32.mrf.mxu3  ;;  %v2688_v27 = vmul.f32 %v4331_v17, %v2687_v33  ;;  %v5621_v56 = vadd.f32 %v2375_v62, %v2357_v12 }
 0x1e3   :  { %v2387_v49 = vpop.f32.mrf.mxu0  ;;  %v5619_v8 = vpop.f32.mrf.mxu1  ;;  %v2757_v32 = vor.u32 1.1754944e-38, %v2756_v42  ;;  %vm2755_vm15 = vcmp.eq.f32.partialorder %v2754_v14, 8.507059e+37 }
 0x1e4   :  { %v4335_v30 = vpop.eup %4334  ;;  %v2689_v26 = vadd.f32 %v4331_v17, %v2688_v27  ;;  %v4016_v29 = vmul.f32 -1.442695, %v5621_v56 }
 0x1e5   :  { %v2663_v35 = vadd.f32 1.0, %v4335_v30 }
 0x1e6   :  { %v2693_v25 = vsel %vm2692_vm14, %v4331_v17, %v2689_v26 }
 0x1e7   :  { %v4337_v9 = vpop.eup %4336  ;;  %v2698_v46 = vsel %vm2695_vm0, %v2697_v45, %v2693_v25  ;;  %4338 = vrcp.f32 %v2663_v35  ;;  %v2814_v51 = vand.u32 2147483647, %v2663_v35  ;;  %v2816_v22 = vand.u32 2147483648, %v2663_v35 }
 0x1e8   :  { %v2911_v10 = vmul.f32 %v2698_v46, %v5570_v52  ;;  %v2746_v23 = vmul.f32 %v4337_v9, %v2659_v50  ;;  %4340 = vpow2.f32 %v4016_v29  ;;  %vm2751_vm1 = vweird.f32 %v4337_v9  ;;  %v4382_v50 = vld [vmem:[%s5802_s0 + $0x48] sm:$0xff] }
 0x1e9   :  { %v5625_v5 = vpop.f32.mrf.mxu2  ;;  %vm2752_vm12 = vmor %vm2750_vm2, %vm2751_vm1  ;;  %vm2810_vm4 = vweird.f32 %v2663_v35  ;;  %v2817_v16 = vor.u32 1.1754944e-38, %v2816_v22  ;;  %vm2815_vm6 = vcmp.eq.f32.partialorder %v2814_v51, 8.507059e+37 }
 0x1ea   :  { %v5627_v31 = vpop.f32.mrf.mxu3  ;;  %v2927_v24 = vadd.f32 %v4380_v36, %v2911_v10  ;;  %v2747_v37 = vsub.f32 1.0, %v2746_v23 }
 0x1eb   :  { %v2389_v28 = vpop.f32.mrf.mxu0  ;;  %v5632_v54 = vpop.f32.mrf.mxu1 }
 0x1ec   :  { %2943 = vst [vmem:[%s5807_s5 + $0x8] sm:$0xff] %v2927_v24  ;;  %v2748_v52 = vmul.f32 %v4337_v9, %v2747_v37  ;;  %v2390_v26 = vadd.f32 %v2389_v28, %v5638_v0  ;;  %v4383_v37 = vld [vmem:[%s5802_s0 + $0x68] sm:$0xff] }
 0x1ed   :  { %v4339_v48 = vpop.eup %4338 }
 0x1ee   :  { %v2749_v20 = vadd.f32 %v4337_v9, %v2748_v52  ;;  %v2806_v1 = vmul.f32 %v4339_v48, %v2663_v35  ;;  %v4341_v4 = vpop.eup %4340  ;;  %vm2811_vm3 = vweird.f32 %v4339_v48  ;;  %v2409_v46 = vadd.f32 %v5632_v54, %v2390_v26 }
 0x1ef   :  { %v2667_v41 = vadd.f32 1.0, %v4341_v4  ;;  %vm2812_vm5 = vmor %vm2810_vm4, %vm2811_vm3 }
 0x1f0   :  { %v2753_v58 = vsel %vm2752_vm12, %v4337_v9, %v2749_v20  ;;  %v2807_v15 = vsub.f32 1.0, %v2806_v1  ;;  %v2428_v28 = vadd.f32 %v5625_v5, %v2409_v46 }
 0x1f1   :  { %v2758_v43 = vsel %vm2755_vm15, %v2757_v32, %v2753_v58  ;;  %v5640_v38 = vpop.f32.mrf.mxu2  ;;  %4342 = vrcp.f32 %v2667_v41  ;;  %v2876_v12 = vand.u32 2147483648, %v2667_v41  ;;  %vm2870_vm8 = vweird.f32 %v2667_v41 }
 0x1f2   :  { %v5642_v18 = vpop.f32.mrf.mxu3  ;;  %v2915_v34 = vmul.f32 %v2758_v43, %v5589_v40  ;;  %v2808_v62 = vmul.f32 %v4339_v48, %v2807_v15  ;;  %v2388_v40 = vadd.f32 %v2387_v49, %v5638_v0  ;;  %v2874_v49 = vand.u32 2147483647, %v2667_v41 }
 0x1f3   :  { %v2392_v21 = vpop.f32.mrf.mxu0  ;;  %v2411_v60 = vpop.f32.mrf.mxu1  ;;  %v2877_v35 = vor.u32 1.1754944e-38, %v2876_v12  ;;  %v2447_v20 = vadd.f32 %v5627_v31, %v2428_v28 }
 0x1f4   :  { %v2931_v55 = vadd.f32 %v4381_v39, %v2915_v34  ;;  %v2809_v11 = vadd.f32 %v4339_v48, %v2808_v62  ;;  %v2407_v33 = vadd.f32 %v5619_v8, %v2388_v40  ;;  %vm2875_vm11 = vcmp.eq.f32.partialorder %v2874_v49, 8.507059e+37 }
 0x1f5   :  { %v2393_v52 = vadd.f32 %v2392_v21, %v5638_v0 }
 0x1f6   :  { %2947 = vst [vmem:[%s5807_s5 + $0x28] sm:$0xff] %v2931_v55  ;;  %v2813_v44 = vsel %vm2812_vm5, %v4339_v48, %v2809_v11  ;;  %v2426_v30 = vadd.f32 %v5615_v13, %v2407_v33 }
 0x1f7   :  { %v2818_v57 = vsel %vm2815_vm6, %v2817_v16, %v2813_v44  ;;  %v4343_v17 = vpop.eup %4342  ;;  %v2412_v48 = vadd.f32 %v2411_v60, %v2393_v52  ;;  %v5699_v44 = vperm.slane %v5510_v53, 3 }
 0x1f8   :  { %v2919_v47 = vmul.f32 %v2818_v57, %v5605_v7  ;;  %v2866_v19 = vmul.f32 %v4343_v17, %v2667_v41  ;;  %vm2871_vm7 = vweird.f32 %v4343_v17  ;;  %v2445_v10 = vadd.f32 %v5617_v59, %v2426_v30 }
 0x1f9   :  { %v2432_v63 = vpop.f32.mrf.mxu2  ;;  %vm2872_vm10 = vmor %vm2870_vm8, %vm2871_vm7  ;;  %v2431_v32 = vadd.f32 %v5640_v38, %v2412_v48 }
 0x1fa   :  { %v5653_v6 = vpop.f32.mrf.mxu3  ;;  %v2935_v61 = vadd.f32 %v4382_v50, %v2919_v47  ;;  %v2867_v2 = vsub.f32 1.0, %v2866_v19 }
 0x1fb   :  { %v2394_v27 = vpop.f32.mrf.mxu0  ;;  %v2413_v3 = vpop.f32.mrf.mxu1  ;;  %v2450_v31 = vadd.f32 %v5642_v18, %v2431_v32 }
 0x1fc   :  { %2951 = vst [vmem:[%s5807_s5 + $0x48] sm:$0xff] %v2935_v61  ;;  %v2868_v7 = vmul.f32 %v4343_v17, %v2867_v2  ;;  %v2395_v58 = vadd.f32 %v2394_v27, %v5638_v0 }
 0x1fe   :  { %v2869_v45 = vadd.f32 %v4343_v17, %v2868_v7  ;;  %v2414_v62 = vadd.f32 %v2413_v3, %v2395_v58 }
 0x200   :  { %v2873_v8 = vsel %vm2872_vm10, %v4343_v17, %v2869_v45  ;;  %v2433_v39 = vadd.f32 %v2432_v63, %v2414_v62 }
 0x201   :  { %v2501_v25 = vpop.f32.mrf.mxu2  ;;  %v2878_v9 = vsel %vm2875_vm11, %v2877_v35, %v2873_v8 }
 0x202   :  { %v5664_v29 = vpop.f32.mrf.mxu3  ;;  %v2923_v23 = vmul.f32 %v2878_v9, %v5621_v56  ;;  %v2452_v47 = vadd.f32 %v5653_v6, %v2433_v39  ;;  %v2502_v33 = vadd.f32 %v2501_v25, %v5699_v44 }
 0x203   :  { %v2463_v36 = vpop.f32.mrf.mxu0  ;;  %v2482_v13 = vpop.f32.mrf.mxu1 }
 0x204   :  { %v2464_v24 = vadd.f32 %v2463_v36, %v2445_v10  ;;  %v2939_v42 = vadd.f32 %v4383_v37, %v2923_v23  ;;  %v2521_v6 = vadd.f32 %v5664_v29, %v2502_v33 }
 0x206   :  { %v5674_v14 = vadd.f32 %v2482_v13, %v2464_v24  ;;  %2955 = vst [vmem:[%s5807_s5 + $0x68] sm:$0xff] %v2939_v42  ;;  %v4384_v42 = vld [vmem:[%s5802_s0 + $0x10] sm:$0xff] }
 0x208   :  { %v4005_v59 = vmul.f32 -1.442695, %v5674_v14 }
 0x209   :  { %v5680_v56 = vpop.f32.mrf.mxu2 }
 0x20a   :  { %v5682_v54 = vpop.f32.mrf.mxu3  ;;  %4344 = vpow2.f32 %v4005_v59  ;;  %v2504_v48 = vadd.f32 %v5680_v56, %v5699_v44 }
 0x20b   :  { %v2465_v1 = vpop.f32.mrf.mxu0  ;;  %v2484_v5 = vpop.f32.mrf.mxu1 }
 0x20c   :  { %v2466_v4 = vadd.f32 %v2465_v1, %v2447_v20  ;;  %v2523_v56 = vadd.f32 %v5682_v54, %v2504_v48  ;;  %v4385_v54 = vld [vmem:[%s5802_s0 + $0x30] sm:$0xff] }
 0x20e   :  { %v5687_v15 = vadd.f32 %v2484_v5, %v2466_v4 }
 0x210   :  { %v4345_v41 = vpop.eup %4344  ;;  %v4009_v43 = vmul.f32 -1.442695, %v5687_v15 }
 0x211   :  { %v2656_v51 = vadd.f32 1.0, %v4345_v41  ;;  %v5690_v22 = vpop.f32.mrf.mxu2 }
 0x212   :  { %v5692_v34 = vpop.f32.mrf.mxu3  ;;  %4346 = vpow2.f32 %v4009_v43  ;;  %v2507_v39 = vadd.f32 %v5690_v22, %v5699_v44 }
 0x213   :  { %4348 = vrcp.f32 %v2656_v51  ;;  %v2468_v21 = vpop.f32.mrf.mxu0  ;;  %v2487_v60 = vpop.f32.mrf.mxu1  ;;  %v2711_v2 = vand.u32 2147483648, %v2656_v51  ;;  %v2709_v53 = vand.u32 2147483647, %v2656_v51  ;;  %vm2705_vm13 = vweird.f32 %v2656_v51 }
 0x214   :  { %v2469_v38 = vadd.f32 %v2468_v21, %v2450_v31  ;;  %v2526_v33 = vadd.f32 %v5692_v34, %v2507_v39 }
 0x215   :  { %v2712_v26 = vor.u32 1.1754944e-38, %v2711_v2  ;;  %vm2710_vm0 = vcmp.eq.f32.partialorder %v2709_v53, 8.507059e+37 }
 0x216   :  { %v5695_v0 = vadd.f32 %v2487_v60, %v2469_v38 }
 0x218   :  { %v4347_v55 = vpop.eup %4346  ;;  %v4013_v11 = vmul.f32 -1.442695, %v5695_v0 }
 0x219   :  { %v4349_v16 = vpop.eup %4348  ;;  %v2660_v40 = vadd.f32 1.0, %v4347_v55  ;;  %v5701_v57 = vpop.f32.mrf.mxu2 }
 0x21a   :  { %v2701_v17 = vmul.f32 %v4349_v16, %v2656_v51  ;;  %4350 = vpow2.f32 %v4013_v11  ;;  %v5703_v18 = vpop.f32.mrf.mxu3  ;;  %vm2706_vm9 = vweird.f32 %v4349_v16 }
 0x21b   :  { %4352 = vrcp.f32 %v2660_v40  ;;  %v2470_v19 = vpop.f32.mrf.mxu0  ;;  %v2489_v63 = vpop.f32.mrf.mxu1  ;;  %vm2707_vm14 = vmor %vm2705_vm13, %vm2706_vm9  ;;  %v2769_v24 = vand.u32 2147483647, %v2660_v40  ;;  %v2771_v29 = vand.u32 2147483648, %v2660_v40  ;;  %vm2765_vm2 = vweird.f32 %v2660_v40 }
 0x21c   :  { %v2702_v50 = vsub.f32 1.0, %v2701_v17  ;;  %v2471_v61 = vadd.f32 %v2470_v19, %v2452_v47 }
 0x21d   :  { %v2772_v4 = vor.u32 1.1754944e-38, %v2771_v29  ;;  %vm2770_vm15 = vcmp.eq.f32.partialorder %v2769_v24, 8.507059e+37 }
 0x21e   :  { %v2703_v27 = vmul.f32 %v4349_v16, %v2702_v50  ;;  %v5707_v3 = vadd.f32 %v2489_v63, %v2471_v61 }
 0x220   :  { %v4351_v12 = vpop.eup %4350  ;;  %v2704_v7 = vadd.f32 %v4349_v16, %v2703_v27  ;;  %v4017_v49 = vmul.f32 -1.442695, %v5707_v3 }
 0x221   :  { %v4353_v30 = vpop.eup %4352  ;;  %v5711_v45 = vadd.f32 1.0, %v4351_v12  ;;  %v2577_v25 = vpop.f32.mrf.mxu2 }
 0x222   :  { %v2708_v35 = vsel %vm2707_vm14, %v4349_v16, %v2704_v7  ;;  %v2761_v8 = vmul.f32 %v4353_v30, %v2660_v40  ;;  %4354 = vpow2.f32 %v4017_v49  ;;  %v2596_v37 = vpop.f32.mrf.mxu3  ;;  %vm2766_vm1 = vweird.f32 %v4353_v30 }
 0x223   :  { %v2713_v9 = vsel %vm2710_vm0, %v2712_v26, %v2708_v35  ;;  %4356 = vrcp.f32 %v5711_v45  ;;  %v2539_v46 = vpop.f32.mrf.mxu0  ;;  %v2558_v10 = vpop.f32.mrf.mxu1  ;;  %vm2767_vm12 = vmor %vm2765_vm2, %vm2766_vm1  ;;  %v2829_v55 = vand.u32 2147483647, %v5711_v45  ;;  %v2831_v11 = vand.u32 2147483648, %v5711_v45 }
 0x224   :  { %v2912_v23 = vmul.f32 %v2713_v9, %v5674_v14  ;;  %v2762_v36 = vsub.f32 1.0, %v2761_v8  ;;  %v2540_v13 = vadd.f32 %v2539_v46, %v2521_v6  ;;  %vm2825_vm4 = vweird.f32 %v5711_v45  ;;  %v4386_v46 = vld [vmem:[%s5802_s0 + $0x50] sm:$0xff] }
 0x225   :  { %v2832_v50 = vor.u32 1.1754944e-38, %v2831_v11  ;;  %vm2830_vm6 = vcmp.eq.f32.partialorder %v2829_v55, 8.507059e+37  ;;  %v2509_v6 = vadd.f32 %v5701_v57, %v5699_v44 }
 0x226   :  { %v2928_v28 = vadd.f32 %v4384_v42, %v2912_v23  ;;  %v2763_v52 = vmul.f32 %v4353_v30, %v2762_v36  ;;  %v2559_v59 = vadd.f32 %v2558_v10, %v2540_v13 }
 0x227   :  { %v2528_v29 = vadd.f32 %v5703_v18, %v2509_v6 }
 0x228   :  { %v4355_v20 = vpop.eup %4354  ;;  %2944 = vst [vmem:[%s5807_s5 + $0x10] sm:$0xff] %v2928_v28  ;;  %v2764_v14 = vadd.f32 %v4353_v30, %v2763_v52  ;;  %v2578_v1 = vadd.f32 %v2577_v25, %v2559_v59 }
 0x229   :  { %v4357_v5 = vpop.eup %4356  ;;  %v5723_v32 = vadd.f32 1.0, %v4355_v20  ;;  %v2579_v16 = vpop.f32.mrf.mxu2 }
 0x22a   :  { %v2768_v58 = vsel %vm2767_vm12, %v4353_v30, %v2764_v14  ;;  %v2821_v41 = vmul.f32 %v4357_v5, %v5711_v45  ;;  %v5726_v43 = vadd.f32 %v2596_v37, %v2578_v1  ;;  %vm2826_vm3 = vweird.f32 %v4357_v5 }
 0x22b   :  { %v2773_v51 = vsel %vm2770_vm15, %v2772_v4, %v2768_v58  ;;  %4358 = vrcp.f32 %v5723_v32  ;;  %v2541_v62 = vpop.f32.mrf.mxu0  ;;  %v2560_v31 = vpop.f32.mrf.mxu1  ;;  %vm2827_vm5 = vmor %vm2825_vm4, %vm2826_vm3  ;;  %v2889_v8 = vand.u32 2147483647, %v5723_v32  ;;  %v2891_v34 = vand.u32 2147483648, %v5723_v32 }
 0x22c   :  { %v2916_v21 = vmul.f32 %v2773_v51, %v5687_v15  ;;  %v2822_v60 = vsub.f32 1.0, %v2821_v41  ;;  %v4006_v38 = vmul.f32 -1.442695, %v5726_v43  ;;  %v2542_v40 = vadd.f32 %v2541_v62, %v2523_v56  ;;  %v2598_v15 = vpop.f32.mrf.mxu3 }
 0x22d   :  { %vm2885_vm8 = vweird.f32 %v5723_v32  ;;  %v2892_v13 = vor.u32 1.1754944e-38, %v2891_v34  ;;  %vm2890_vm11 = vcmp.eq.f32.partialorder %v2889_v8, 8.507059e+37 }
 0x22e   :  { %v2932_v17 = vadd.f32 %v4385_v54, %v2916_v21  ;;  %v2823_v47 = vmul.f32 %v4357_v5, %v2822_v60  ;;  %4360 = vpow2.f32 %v4006_v38  ;;  %v2561_v19 = vadd.f32 %v2560_v31, %v2542_v40 }
 0x230   :  { %2948 = vst [vmem:[%s5807_s5 + $0x30] sm:$0xff] %v2932_v17  ;;  %v2824_v22 = vadd.f32 %v4357_v5, %v2823_v47  ;;  %v2580_v61 = vadd.f32 %v2579_v16, %v2561_v19 }
 0x231   :  { %v4359_v63 = vpop.eup %4358  ;;  %v2582_v44 = vpop.f32.mrf.mxu2 }
 0x232   :  { %v2828_v2 = vsel %vm2827_vm5, %v4357_v5, %v2824_v22  ;;  %v2881_v27 = vmul.f32 %v4359_v63, %v5723_v32  ;;  %v5745_v12 = vadd.f32 %v2598_v15, %v2580_v61  ;;  %vm2886_vm7 = vweird.f32 %v4359_v63  ;;  %v4387_v5 = vld [vmem:[%s5802_s0 + $0x70] sm:$0xff]  ;;  %v4388_v22 = vld [vmem:[%s5802_s0 + $0x18] sm:$0xff] }
 0x233   :  { %v2833_v53 = vsel %vm2830_vm6, %v2832_v50, %v2828_v2  ;;  %v2544_v7 = vpop.f32.mrf.mxu0  ;;  %v2563_v35 = vpop.f32.mrf.mxu1  ;;  %vm2887_vm10 = vmor %vm2885_vm8, %vm2886_vm7 }
 0x234   :  { %v4361_v49 = vpop.eup %4360  ;;  %v2920_v30 = vmul.f32 %v2833_v53, %v5695_v0  ;;  %v2882_v26 = vsub.f32 1.0, %v2881_v27  ;;  %v2545_v45 = vadd.f32 %v2544_v7, %v2526_v33  ;;  %v4010_v9 = vmul.f32 -1.442695, %v5745_v12  ;;  %v2601_v24 = vpop.f32.mrf.mxu3 }
 0x235   :  { %v2657_v25 = vadd.f32 1.0, %v4361_v49 }
 0x236   :  { %v2936_v10 = vadd.f32 %v4386_v46, %v2920_v30  ;;  %v2883_v23 = vmul.f32 %v4359_v63, %v2882_v26  ;;  %v2564_v0 = vadd.f32 %v2563_v35, %v2545_v45 }
 0x237   :  { %4362 = vrcp.f32 %v2657_v25  ;;  %v2726_v56 = vand.u32 2147483648, %v2657_v25  ;;  %v2724_v31 = vand.u32 2147483647, %v2657_v25  ;;  %vm2720_vm13 = vweird.f32 %v2657_v25 }
 0x238   :  { %2952 = vst [vmem:[%s5807_s5 + $0x50] sm:$0xff] %v2936_v10  ;;  %v2884_v57 = vadd.f32 %v4359_v63, %v2883_v23  ;;  %4364 = vpow2.f32 %v4010_v9  ;;  %v2583_v36 = vadd.f32 %v2582_v44, %v2564_v0  ;;  %v4389_v9 = vld [vmem:[%s5802_s0 + $0x38] sm:$0xff] }
 0x239   :  { %v2584_v51 = vpop.f32.mrf.mxu2  ;;  %v2727_v11 = vor.u32 1.1754944e-38, %v2726_v56  ;;  %vm2725_vm0 = vcmp.eq.f32.partialorder %v2724_v31, 8.507059e+37 }
 0x23a   :  { %v2888_v37 = vsel %vm2887_vm10, %v4359_v63, %v2884_v57  ;;  %v5761_v42 = vadd.f32 %v2601_v24, %v2583_v36 }
 0x23b   :  { %v2893_v28 = vsel %vm2890_vm11, %v2892_v13, %v2888_v37  ;;  %v2546_v52 = vpop.f32.mrf.mxu0  ;;  %v2565_v18 = vpop.f32.mrf.mxu1  ;;  %v4390_v13 = vld [vmem:[%s5802_s0 + $0x58] sm:$0xff] }
 0x23c   :  { %v2924_v59 = vmul.f32 %v2893_v28, %v5707_v3  ;;  %v4014_v48 = vmul.f32 -1.442695, %v5761_v42  ;;  %v2547_v20 = vadd.f32 %v2546_v52, %v2528_v29  ;;  %v2603_v60 = vpop.f32.mrf.mxu3 }
 0x23d   :  { %v4363_v14 = vpop.eup %4362 }
 0x23e   :  { %v4365_v1 = vpop.eup %4364  ;;  %v2940_v4 = vadd.f32 %v4387_v5, %v2924_v59  ;;  %v2716_v32 = vmul.f32 %v4363_v14, %v2657_v25  ;;  %4366 = vpow2.f32 %v4014_v48  ;;  %v2566_v41 = vadd.f32 %v2565_v18, %v2547_v20 }
 0x23f   :  { %v2661_v58 = vadd.f32 1.0, %v4365_v1  ;;  %vm2721_vm9 = vweird.f32 %v4363_v14  ;;  %v4391_v1 = vld [vmem:[%s5802_s0 + $0x78] sm:$0xff] }
 0x240   :  { %2956 = vst [vmem:[%s5807_s5 + $0x70] sm:$0xff] %v2940_v4  ;;  %v2717_v3 = vsub.f32 1.0, %v2716_v32  ;;  %v2585_v21 = vadd.f32 %v2584_v51, %v2566_v41  ;;  %vm2722_vm14 = vmor %vm2720_vm13, %vm2721_vm9 }
 0x241   :  { %4368 = vrcp.f32 %v2661_v58  ;;  %v2786_v61 = vand.u32 2147483648, %v2661_v58  ;;  %v2784_v2 = vand.u32 2147483647, %v2661_v58  ;;  %vm2780_vm2 = vweird.f32 %v2661_v58 }
 0x242   :  { %v2718_v62 = vmul.f32 %v4363_v14, %v2717_v3  ;;  %v5771_v55 = vadd.f32 %v2603_v60, %v2585_v21 }
 0x243   :  { %v2787_v49 = vor.u32 1.1754944e-38, %v2786_v61  ;;  %vm2785_vm15 = vcmp.eq.f32.partialorder %v2784_v2, 8.507059e+37 }
 0x244   :  { %v4367_v38 = vpop.eup %4366  ;;  %v2719_v39 = vadd.f32 %v4363_v14, %v2718_v62  ;;  %v4018_v54 = vmul.f32 -1.442695, %v5771_v55 }
 0x245   :  { %v2665_v16 = vadd.f32 1.0, %v4367_v38 }
 0x246   :  { %v2723_v40 = vsel %vm2722_vm14, %v4363_v14, %v2719_v39 }
 0x247   :  { %v4369_v17 = vpop.eup %4368  ;;  %v2728_v47 = vsel %vm2725_vm0, %v2727_v11, %v2723_v40  ;;  %4370 = vrcp.f32 %v2665_v16  ;;  %v2844_v35 = vand.u32 2147483647, %v2665_v16  ;;  %v2846_v8 = vand.u32 2147483648, %v2665_v16 }
 0x248   :  { %v2913_v15 = vmul.f32 %v2728_v47, %v5726_v43  ;;  %v2776_v19 = vmul.f32 %v4369_v17, %v2661_v58  ;;  %4372 = vpow2.f32 %v4018_v54  ;;  %vm2781_vm1 = vweird.f32 %v4369_v17 }
 0x249   :  { %vm2782_vm12 = vmor %vm2780_vm2, %vm2781_vm1  ;;  %vm2840_vm4 = vweird.f32 %v2665_v16  ;;  %v2847_v23 = vor.u32 1.1754944e-38, %v2846_v8  ;;  %vm2845_vm6 = vcmp.eq.f32.partialorder %v2844_v35, 8.507059e+37 }
 0x24a   :  { %v2929_v63 = vadd.f32 %v4388_v22, %v2913_v15  ;;  %v2777_v50 = vsub.f32 1.0, %v2776_v19 }
 0x24c   :  { %2945 = vst [vmem:[%s5807_s5 + $0x18] sm:$0xff] %v2929_v63  ;;  %v2778_v33 = vmul.f32 %v4369_v17, %v2777_v50 }
 0x24d   :  { %v4371_v27 = vpop.eup %4370 }
 0x24e   :  { %v2779_v53 = vadd.f32 %v4369_v17, %v2778_v33  ;;  %v2836_v43 = vmul.f32 %v4371_v27, %v2665_v16  ;;  %v4373_v7 = vpop.eup %4372  ;;  %vm2841_vm3 = vweird.f32 %v4371_v27 }
 0x24f   :  { %v2669_v26 = vadd.f32 1.0, %v4373_v7  ;;  %vm2842_vm5 = vmor %vm2840_vm4, %vm2841_vm3 }
 0x250   :  { %v2783_v30 = vsel %vm2782_vm12, %v4369_v17, %v2779_v53  ;;  %v2837_v6 = vsub.f32 1.0, %v2836_v43 }
 0x251   :  { %v2788_v45 = vsel %vm2785_vm15, %v2787_v49, %v2783_v30  ;;  %4374 = vrcp.f32 %v2669_v26  ;;  %v2906_v37 = vand.u32 2147483648, %v2669_v26  ;;  %v2904_v52 = vand.u32 2147483647, %v2669_v26 }
 0x252   :  { %v2917_v34 = vmul.f32 %v2788_v45, %v5745_v12  ;;  %v2838_v25 = vmul.f32 %v4371_v27, %v2837_v6  ;;  %vm2900_vm8 = vweird.f32 %v2669_v26 }
 0x253   :  { %v2907_v48 = vor.u32 1.1754944e-38, %v2906_v37  ;;  %vm2905_vm11 = vcmp.eq.f32.partialorder %v2904_v52, 8.507059e+37 }
 0x254   :  { %v2933_v46 = vadd.f32 %v4389_v9, %v2917_v34  ;;  %v2839_v10 = vadd.f32 %v4371_v27, %v2838_v25 }
 0x256   :  { %2949 = vst [vmem:[%s5807_s5 + $0x38] sm:$0xff] %v2933_v46  ;;  %v2843_v0 = vsel %vm2842_vm5, %v4371_v27, %v2839_v10 }
 0x257   :  { %v2848_v44 = vsel %vm2845_vm6, %v2847_v23, %v2843_v0  ;;  %v4375_v12 = vpop.eup %4374 }
 0x258   :  { %v2921_v57 = vmul.f32 %v2848_v44, %v5761_v42  ;;  %v2896_v36 = vmul.f32 %v4375_v12, %v2669_v26  ;;  %vm2901_vm7 = vweird.f32 %v4375_v12 }
 0x259   :  { %vm2902_vm10 = vmor %vm2900_vm8, %vm2901_vm7 }
 0x25a   :  { %v2937_v24 = vadd.f32 %v4390_v13, %v2921_v57  ;;  %v2897_v29 = vsub.f32 1.0, %v2896_v36 }
 0x25c   :  { %2953 = vst [vmem:[%s5807_s5 + $0x58] sm:$0xff] %v2937_v24  ;;  %v2898_v28 = vmul.f32 %v4375_v12, %v2897_v29 }
 0x25e   :  { %v2899_v59 = vadd.f32 %v4375_v12, %v2898_v28 }
 0x260   :  { %v2903_v42 = vsel %vm2902_vm10, %v4375_v12, %v2899_v59 }
 0x261   :  { %v2908_v20 = vsel %vm2905_vm11, %v2907_v48, %v2903_v42 }
 0x262   :  { %v2925_v14 = vmul.f32 %v2908_v20, %v5771_v55 }
 0x264   :  { %v2941_v5 = vadd.f32 %v4391_v1, %v2925_v14 }
 0x266   :  { %2957 = vst [vmem:[%s5807_s5 + $0x78] sm:$0xff] %v2941_v5 }
 0x267   :  { %2962 = vsyncpa [#allocation3], 1 }

</bundles_post_ra>
